<compile_context>
chip_gen: v6e
topology: v6e:2x2x1
jax: 0.10.0
libtpu: 0.0.40
codegen_flags: <defaults>
</compile_context>

<pallas_src>
import math
import functools

import jax
import jax.numpy as jnp
from jax import lax
from jax.experimental import pallas as pl
from jax.experimental.pallas import tpu as pltpu

NEG_INF = -1e30
LN_EPS = 1e-5
NTAG_PAD = 128     # lane-dense emissions output width; sliced back to ntag in JAX


def _full_spec(arr):
    nd = arr.ndim

    def imap(i):
        return (0,) * nd

    return pl.BlockSpec(arr.shape, imap)


# ----------------------------------------------------------------------------
# Kernel 1: embedding combine + full encoder stack + BiLSTM input projection
# ----------------------------------------------------------------------------
def _flat_encoder_kernel(big_ref, lat_ref, pe_ref, padb_ref,
                         wbb_ref, wlc_ref, bc_ref,
                         wq_ref, wk_ref, wv_ref, bq_ref, bk_ref, bv_ref,
                         wo_ref, bo_ref, ln1g_ref, ln1b_ref,
                         w1_ref, b1_ref, w2_ref, b2_ref, ln2g_ref, ln2b_ref,
                         win_ref, bin_ref, o_ref,
                         *, nlayers, nhead, s_big, scale_embed, scale_attn):
    B, S, El = lat_ref.shape
    Eb = big_ref.shape[-1]
    E = pe_ref.shape[-1]
    hd = E // nhead
    M = B * S

    def layer_norm(v, g, b):
        mu = jnp.mean(v, axis=-1, keepdims=True)
        vc = v - mu
        var = jnp.mean(vc * vc, axis=-1, keepdims=True)
        return vc * lax.rsqrt(var + LN_EPS) * g + b

    # --- embedding combine (reference applies sqrt(E) twice: at gather AND here) ---
    # src = (big@Wbb + lat@(Wbl + Wlt) + (b_bl + b_lt)) * sqrt(E) + PE  (lat path prefolded)
    big2 = big_ref[...].reshape(M, Eb).astype(jnp.bfloat16)
    lat2 = lat_ref[...].reshape(M, El).astype(jnp.bfloat16)
    src = (jnp.dot(big2, wbb_ref[...], preferred_element_type=jnp.float32)
           + jnp.dot(lat2, wlc_ref[...], preferred_element_type=jnp.float32)
           + bc_ref[...]) * scale_embed
    x2 = (src.reshape(B, S, E) + pe_ref[...][None]).reshape(M, E)        # (B*S, E) f32

    # --- causal + key-padding additive bias, built once in-kernel (no HBM mask) ---
    rows = lax.broadcasted_iota(jnp.int32, (S, S), 0)
    cols = lax.broadcasted_iota(jnp.int32, (S, S), 1)
    causal = jnp.where(cols <= rows, 0.0, NEG_INF).astype(jnp.float32)
    bias3 = causal[None, :, :] + padb_ref[...]                           # (B, S, S)

    # --- encoder stack: every layer fused here, weights resident in VMEM ---
    for l in range(nlayers):
        xb = x2.astype(jnp.bfloat16)
        acc = jnp.zeros((M, E), jnp.float32)
        for h in range(nhead):                 # per-head pre-split weights ->
            hi = l * nhead + h                 # no lane slicing, no head concat
            q = (jnp.dot(xb, wq_ref[hi], preferred_element_type=jnp.float32)
                 + bq_ref[hi]) * scale_attn
            k = jnp.dot(xb, wk_ref[hi], preferred_element_type=jnp.float32) + bk_ref[hi]
            v = jnp.dot(xb, wv_ref[hi], preferred_element_type=jnp.float32) + bv_ref[hi]
            q3 = q.reshape(B, S, hd).astype(jnp.bfloat16)
            k3 = k.reshape(B, S, hd).astype(jnp.bfloat16)
            v3 = v.reshape(B, S, hd).astype(jnp.bfloat16)
            s = lax.dot_general(q3, k3, (((2,), (2,)), ((0,), (0,))),
                                preferred_element_type=jnp.float32) + bias3
            m = jnp.max(s, axis=-1, keepdims=True)
            p = jnp.exp(s - m)
            den = jnp.sum(p, axis=-1, keepdims=True)
            p = p * pl.reciprocal(den, approx=True)
            ctx = lax.dot_general(p.astype(jnp.bfloat16), v3,
                                  (((2,), (1,)), ((0,), (0,))),
                                  preferred_element_type=jnp.float32)
            acc = acc + jnp.dot(ctx.reshape(M, hd).astype(jnp.bfloat16), wo_ref[hi],
                                preferred_element_type=jnp.float32)
        x2 = layer_norm(x2 + acc + bo_ref[l], ln1g_ref[l], ln1b_ref[l])

        hdn = jnp.maximum(jnp.dot(x2.astype(jnp.bfloat16), w1_ref[l],
                                  preferred_element_type=jnp.float32) + b1_ref[l], 0.0)
        ff = jnp.dot(hdn.astype(jnp.bfloat16), w2_ref[l],
                     preferred_element_type=jnp.float32) + b2_ref[l]
        x2 = layer_norm(x2 + ff, ln2g_ref[l], ln2b_ref[l])

    # --- fused BiLSTM input projection (both directions, all 4 gates, one matmul) ---
    proj = jnp.dot(x2.astype(jnp.bfloat16), win_ref[...],
                   preferred_element_type=jnp.float32) + bin_ref[...]    # (B*S, 8*Hh)
    o_ref[...] = proj.reshape(B, S, proj.shape[-1])[:, :s_big, :]        # lane-dense 128


def pallas_flat_encoder(big_emb, lat_emb, pe, pad_bias, p, *, nhead, nlayers, s_big):
    B, S, _ = lat_emb.shape
    E = pe.shape[-1]
    G = p["lstm_w_in"].shape[-1]
    inputs = (big_emb, lat_emb, pe, pad_bias,
              p["w_bb"], p["w_lc"], p["b_c"],
              p["wq"], p["wk"], p["wv"], p["bq"], p["bk"], p["bv"],
              p["wo"], p["bo"], p["ln1_g"], p["ln1_b"],
              p["w1"], p["b1"], p["w2"], p["b2"], p["ln2_g"], p["ln2_b"],
              p["lstm_w_in"], p["lstm_b_in"])
    kernel = functools.partial(
        _flat_encoder_kernel, nlayers=nlayers, nhead=nhead, s_big=s_big,
        scale_embed=math.sqrt(E), scale_attn=1.0 / math.sqrt(E // nhead))
    return pl.pallas_call(
        kernel,
        out_shape=jax.ShapeDtypeStruct((B, s_big, G), jnp.float32),
        grid=(1,),
        in_specs=[_full_spec(a) for a in inputs],
        out_specs=pl.BlockSpec((B, s_big, G), lambda i: (0, 0, 0)),
        compiler_params=pltpu.CompilerParams(dimension_semantics=("arbitrary",)),
    )(*inputs)


# ----------------------------------------------------------------------------
# Kernel 2: direction-fused BiLSTM recurrence + emissions (lane-dense output)
# ----------------------------------------------------------------------------
def _bilstm_emissions_kernel(xg_ref, wri_ref, wrf_ref, wrg_ref, wro_ref,
                             wef_ref, web_ref, be_ref, o_ref):
    S, g4b, H2 = xg_ref.shape
    B = g4b // 4

    h = jnp.zeros((B, H2), jnp.float32)        # [h_fwd | h_bwd]
    c = jnp.zeros((B, H2), jnp.float32)
    hs = []
    for t in range(S):                         # static, fully-unrolled serial recurrence
        pre = xg_ref[t]                        # (4*B, 2*Hh): gate-major rows [i|f|g|o]
        hb = h.astype(jnp.bfloat16)
        ri = jnp.dot(hb, wri_ref[...], preferred_element_type=jnp.float32)
        rf = jnp.dot(hb, wrf_ref[...], preferred_element_type=jnp.float32)
        rg = jnp.dot(hb, wrg_ref[...], preferred_element_type=jnp.float32)
        ro = jnp.dot(hb, wro_ref[...], preferred_element_type=jnp.float32)
        ig = jax.nn.sigmoid(pre[0 * B:1 * B] + ri)
        fg = jax.nn.sigmoid(pre[1 * B:2 * B] + rf)
        gg = jnp.tanh(pre[2 * B:3 * B] + rg)
        og = jax.nn.sigmoid(pre[3 * B:4 * B] + ro)
        c = fg * c + ig * gg
        h = og * jnp.tanh(c)
        hs.append(h)                           # hs[t] = [h_fwd(t) | h_bwd(S-1-t)]

    # emissions projection hoisted out of the recurrence; time-reverse the bwd half
    bias = be_ref[...]
    for t in range(S):
        o_ref[t] = (jnp.dot(hs[t].astype(jnp.bfloat16), wef_ref[...],
                            preferred_element_type=jnp.float32)
                    + jnp.dot(hs[S - 1 - t].astype(jnp.bfloat16), web_ref[...],
                              preferred_element_type=jnp.float32)
                    + bias)


def pallas_bilstm_emissions(xg, p):
    S, g4b, _ = xg.shape
    B = g4b // 4
    inputs = (xg, p["w_ri"], p["w_rf"], p["w_rg"], p["w_ro"],
              p["we_f"], p["we_b"], p["b_e"])
    return pl.pallas_call(
        _bilstm_emissions_kernel,
        out_shape=jax.ShapeDtypeStruct((S, B, NTAG_PAD), jnp.float32),
        grid=(1,),
        in_specs=[_full_spec(a) for a in inputs],
        out_specs=pl.BlockSpec((S, B, NTAG_PAD), lambda i: (0, 0, 0)),
        compiler_params=pltpu.CompilerParams(dimension_semantics=("arbitrary",)),
    )(*inputs)


# ----------------------------------------------------------------------------
# CRF Viterbi decode (sequential, data-dependent -> plain JAX)
# ----------------------------------------------------------------------------
def crf_decode(emissions, mask, start_t, end_t, trans):
    # TODO(synk): torchcrf returns ragged python lists; here a padded (S,B) int array.
    S, B, T = emissions.shape
    score0 = start_t[None, :] + emissions[0]                    # (B, T)

    def fwd(score, inp):
        em, m = inp
        nxt = score[:, :, None] + trans[None] + em[:, None, :]  # (B, T_prev, T_cur)
        ind = jnp.argmax(nxt, axis=1)
        ns = jnp.max(nxt, axis=1)
        score = jnp.where(m[:, None], ns, score)
        return score, ind

    score, history = lax.scan(fwd, score0, (emissions[1:], mask[1:]))
    score = score + end_t[None, :]
    seq_ends = jnp.sum(mask.astype(jnp.int32), axis=0) - 1
    best_last = jnp.argmax(score, axis=-1)

    history_pad = jnp.concatenate([history, jnp.zeros((1, B, T), history.dtype)], axis=0)
    js = jnp.arange(S - 1, -1, -1)
    hist_rev = history_pad[js]

    def bwd(cur, inp):
        j, hist_j = inp
        taken = jnp.take_along_axis(hist_j, cur[:, None], axis=1)[:, 0]
        new = jnp.where(j == seq_ends, best_last,
                        jnp.where(j < seq_ends, taken, cur))
        return new, new

    _, tags_rev = lax.scan(bwd, best_last, (js, hist_rev))
    return tags_rev[::-1]                                        # (S, B)


# ----------------------------------------------------------------------------
# Model forward
# ----------------------------------------------------------------------------
def flat_forward(params, bigram, lattice, lattice_len, cfg):
    S_big, B = bigram.shape
    S_lat = lattice.shape[0]
    E = cfg["embedding_size"]
    Hh = cfg["bi_lstm_hidden"] // 2
    ntag = cfg["ntag"]
    sqrtE = math.sqrt(E)

    mask_crf = bigram != 1                                       # (S_big, B)

    # embedding gathers (JAX glue), batch-major layout for the fused encoder kernel
    big_emb = jnp.take(params["bigram_emb"], bigram.T, axis=0) * sqrtE    # (B,S_big,Eb)
    lat_emb = jnp.take(params["lattice_emb"], lattice.T, axis=0) * sqrtE  # (B,S_lat,El)
    # zero-extend bigram path to lattice length (tiny; the reference concatenates zeros)
    big_emb = jnp.pad(big_emb, ((0, 0), (0, S_lat - S_big), (0, 0)))      # (B,S_lat,Eb)

    pe = params["pe"][:S_lat]                                             # (S_lat, E)
    idx = jnp.arange(S_lat)
    pad_bias = jnp.where(idx[None, :] >= lattice_len[:, None],
                         NEG_INF, 0.0).astype(jnp.float32)[:, None, :]    # (B,1,S_lat)

    tproj = pallas_flat_encoder(big_emb, lat_emb, pe, pad_bias, params,
                                nhead=cfg["nhead"], nlayers=cfg["nlayers"],
                                s_big=S_big)                              # (B,S_big,8*Hh)

    # tiny gate/direction/time rearrangement for the direction-fused BiLSTM (plain JAX)
    tp = tproj.reshape(B, S_big, 4, 2, Hh)                # [gate, dir, Hh] column layout
    xg = jnp.concatenate([tp[:, :, :, 0, :],              # fwd gates at time t
                          tp[:, ::-1, :, 1, :]], axis=-1)  # bwd gates at time S-1-t
    xg = jnp.transpose(xg, (1, 2, 0, 3)).reshape(S_big, 4 * B, 2 * Hh)

    em_pad = pallas_bilstm_emissions(xg, params)                          # (S_big,B,128)
    emissions = em_pad[..., :ntag]

    tags = crf_decode(emissions, mask_crf,
                      params["crf_start"], params["crf_end"], params["crf_trans"])
    return tags, emissions


# ----------------------------------------------------------------------------
# Deterministic parameter init, stored directly in kernel layout:
#   * matmul weights pre-transposed (K,N) and bf16
#   * attention weights pre-split per head (L*nhead leading dim)
#   * lattice_linner folded into the lattice half of big_lat_linner
#   * BiLSTM recurrent weights block-diagonal per gate (fwd/bwd fused), bf16
#   * emissions weights split per direction and zero-padded to 128 output lanes
# ----------------------------------------------------------------------------
def make_pe(max_len, d_model):
    position = jnp.arange(max_len, dtype=jnp.float32)[:, None]
    div_term = jnp.exp(jnp.arange(0, d_model, 2, dtype=jnp.float32)
                       * (-math.log(10000.0) / d_model))
    pe = jnp.zeros((max_len, d_model), jnp.float32)
    pe = pe.at[:, 0::2].set(jnp.sin(position * div_term))
    pe = pe.at[:, 1::2].set(jnp.cos(position * div_term))
    return pe                                                   # (max_len, d_model)


def init_params(key, cfg):
    E = cfg["embedding_size"]
    H = cfg["bi_lstm_hidden"]
    Hh = H // 2
    Eb = cfg["bigram_embedding_size"]
    El = cfg["lattice_embedding_size"]
    nhid = cfg["nhid"]
    ntag = cfg["ntag"]
    nhead = cfg["nhead"]
    L = cfg["nlayers"]
    hd = E // nhead

    state = {"key": key}

    def nxt():
        state["key"], sub = jax.random.split(state["key"])
        return sub

    def rnd(shape, s=0.05):
        return jax.random.normal(nxt(), shape, jnp.float32) * s

    def uni(shape, r=0.1):
        return jax.random.uniform(nxt(), shape, jnp.float32, -r, r)

    def w16(shape, s=0.05):
        return rnd(shape, s).astype(jnp.bfloat16)

    def blockdiag(a, b):
        z = jnp.zeros((Hh, Hh), jnp.float32)
        return jnp.concatenate(
            [jnp.concatenate([a, z], axis=1), jnp.concatenate([z, b], axis=1)], axis=0)

    # linner (Linear(H, ntag)): weight uniform(-0.1, 0.1), bias zero (as in init_weights)
    wl = uni((H, ntag))
    we_f = jnp.zeros((H, NTAG_PAD), jnp.float32).at[:Hh, :ntag].set(wl[:Hh])
    we_b = jnp.zeros((H, NTAG_PAD), jnp.float32).at[Hh:, :ntag].set(wl[Hh:])

    params = dict(
        bigram_emb=rnd((cfg["nbigram"], Eb), 0.1),
        lattice_emb=rnd((cfg["nlattice"], El), 0.1),
        pe=make_pe(cfg["max_len"], E),
        # embedding combine (lattice_linner pre-folded into big_lat_linner's lattice half)
        w_bb=w16((Eb, E)), w_lc=w16((El, E)), b_c=rnd((1, E)),
        # encoder layers: per-head stacked, pre-transposed (K,N)
        wq=w16((L * nhead, E, hd)), wk=w16((L * nhead, E, hd)), wv=w16((L * nhead, E, hd)),
        bq=rnd((L * nhead, 1, hd)), bk=rnd((L * nhead, 1, hd)), bv=rnd((L * nhead, 1, hd)),
        wo=w16((L * nhead, hd, E)), bo=rnd((L, 1, E)),
        ln1_g=jnp.ones((L, 1, E), jnp.float32), ln1_b=jnp.zeros((L, 1, E), jnp.float32),
        w1=w16((L, E, nhid)), b1=rnd((L, 1, nhid)),
        w2=w16((L, nhid, E)), b2=rnd((L, 1, E)),
        ln2_g=jnp.ones((L, 1, E), jnp.float32), ln2_b=jnp.zeros((L, 1, E), jnp.float32),
        # BiLSTM input projection: column layout [gate-major i|f|g|o, dir-inner fwd|bwd]
        # TODO(synk): when porting trained weights, fold PyTorch b_ih + b_hh into lstm_b_in
        lstm_w_in=w16((E, 8 * Hh)), lstm_b_in=rnd((1, 8 * Hh)),
        # per-gate block-diagonal recurrent weights [[W_hh_fwd, 0], [0, W_hh_bwd]]
        w_ri=blockdiag(rnd((Hh, Hh)), rnd((Hh, Hh))).astype(jnp.bfloat16),
        w_rf=blockdiag(rnd((Hh, Hh)), rnd((Hh, Hh))).astype(jnp.bfloat16),
        w_rg=blockdiag(rnd((Hh, Hh)), rnd((Hh, Hh))).astype(jnp.bfloat16),
        w_ro=blockdiag(rnd((Hh, Hh)), rnd((Hh, Hh))).astype(jnp.bfloat16),
        we_f=we_f.astype(jnp.bfloat16), we_b=we_b.astype(jnp.bfloat16),
        b_e=jnp.zeros((1, NTAG_PAD), jnp.float32),
        crf_start=uni((ntag,)), crf_end=uni((ntag,)), crf_trans=uni((ntag, ntag)),
    )
    return params


# ----------------------------------------------------------------------------
if __name__ == "__main__":
    cfg = dict(
        embedding_size=32,          # must equal bi_lstm_hidden (implied by the module)
        bigram_embedding_size=16,
        lattice_embedding_size=16,  # bigram_emb + lattice_emb == bi_lstm_hidden
        bi_lstm_hidden=32,
        nhead=4,
        nhid=64,
        nlayers=2,
        ntag=6,
        nbigram=50,
        nlattice=60,
        max_len=128,
    )

    key = jax.random.PRNGKey(0)
    key, kp, kb, kl = jax.random.split(key, 4)
    params = init_params(kp, cfg)

    B = 2
    S_big = 6
    S_lat = 8

    # token ids: 1 is the padding id for the CRF mask (bigram != 1)
    bigram = jax.random.randint(kb, (S_big, B), 2, cfg["nbigram"], jnp.int32)
    bigram = bigram.at[4:, 1].set(1)  # pad the tail of the second batch element
    lattice = jax.random.randint(kl, (S_lat, B), 0, cfg["nlattice"], jnp.int32)
    lattice_len = jnp.array([8, 6], jnp.int32)

    fwd_fn = jax.jit(functools.partial(flat_forward, cfg=cfg))
    tags, emissions = fwd_fn(params, bigram, lattice, lattice_len)
    jax.block_until_ready((tags, emissions))
    assert tags.shape == (S_big, B)
    assert emissions.shape == (S_big, B, cfg["ntag"])
    assert bool(jnp.all(jnp.isfinite(emissions)))
    print("KERNEL_OK")
</pallas_src>

<mosaic_0001>
module attributes {stable_mosaic.version = 11 : i64} {
  func.func @_flat_encoder_kernel(%arg0: i32, %arg1: memref<2x8x16xf32, #tpu.memory_space<vmem>>, %arg2: memref<2x8x16xf32, #tpu.memory_space<vmem>>, %arg3: memref<8x32xf32, #tpu.memory_space<vmem>>, %arg4: memref<2x1x8xf32, #tpu.memory_space<vmem>>, %arg5: memref<16x32xbf16, #tpu.memory_space<vmem>>, %arg6: memref<16x32xbf16, #tpu.memory_space<vmem>>, %arg7: memref<1x32xf32, #tpu.memory_space<vmem>>, %arg8: memref<8x32x8xbf16, #tpu.memory_space<vmem>>, %arg9: memref<8x32x8xbf16, #tpu.memory_space<vmem>>, %arg10: memref<8x32x8xbf16, #tpu.memory_space<vmem>>, %arg11: memref<8x1x8xf32, #tpu.memory_space<vmem>>, %arg12: memref<8x1x8xf32, #tpu.memory_space<vmem>>, %arg13: memref<8x1x8xf32, #tpu.memory_space<vmem>>, %arg14: memref<8x8x32xbf16, #tpu.memory_space<vmem>>, %arg15: memref<2x1x32xf32, #tpu.memory_space<vmem>>, %arg16: memref<2x1x32xf32, #tpu.memory_space<vmem>>, %arg17: memref<2x1x32xf32, #tpu.memory_space<vmem>>, %arg18: memref<2x32x64xbf16, #tpu.memory_space<vmem>>, %arg19: memref<2x1x64xf32, #tpu.memory_space<vmem>>, %arg20: memref<2x64x32xbf16, #tpu.memory_space<vmem>>, %arg21: memref<2x1x32xf32, #tpu.memory_space<vmem>>, %arg22: memref<2x1x32xf32, #tpu.memory_space<vmem>>, %arg23: memref<2x1x32xf32, #tpu.memory_space<vmem>>, %arg24: memref<32x128xbf16, #tpu.memory_space<vmem>>, %arg25: memref<1x128xf32, #tpu.memory_space<vmem>>, %arg26: memref<2x6x128xf32, #tpu.memory_space<vmem>>) attributes {dimension_semantics = [#tpu.dimension_semantics<arbitrary>], iteration_bounds = array<i64: 1>, scalar_prefetch = 0 : i64, scratch_operands = 0 : i64, tpu.core_type = #tpu.core_type<tc>, window_params = [{pipeline_mode = #tpu.pipeline_mode<synchronous>, transform_indices = @transform_0, window_bounds = array<i64: 2, 8, 16>}, {pipeline_mode = #tpu.pipeline_mode<synchronous>, transform_indices = @transform_1, window_bounds = array<i64: 2, 8, 16>}, {pipeline_mode = #tpu.pipeline_mode<synchronous>, transform_indices = @transform_2, window_bounds = array<i64: 8, 32>}, {pipeline_mode = #tpu.pipeline_mode<synchronous>, transform_indices = @transform_3, window_bounds = array<i64: 2, 1, 8>}, {pipeline_mode = #tpu.pipeline_mode<synchronous>, transform_indices = @transform_4, window_bounds = array<i64: 16, 32>}, {pipeline_mode = #tpu.pipeline_mode<synchronous>, transform_indices = @transform_5, window_bounds = array<i64: 16, 32>}, {pipeline_mode = #tpu.pipeline_mode<synchronous>, transform_indices = @transform_6, window_bounds = array<i64: 1, 32>}, {pipeline_mode = #tpu.pipeline_mode<synchronous>, transform_indices = @transform_7, window_bounds = array<i64: 8, 32, 8>}, {pipeline_mode = #tpu.pipeline_mode<synchronous>, transform_indices = @transform_8, window_bounds = array<i64: 8, 32, 8>}, {pipeline_mode = #tpu.pipeline_mode<synchronous>, transform_indices = @transform_9, window_bounds = array<i64: 8, 32, 8>}, {pipeline_mode = #tpu.pipeline_mode<synchronous>, transform_indices = @transform_10, window_bounds = array<i64: 8, 1, 8>}, {pipeline_mode = #tpu.pipeline_mode<synchronous>, transform_indices = @transform_11, window_bounds = array<i64: 8, 1, 8>}, {pipeline_mode = #tpu.pipeline_mode<synchronous>, transform_indices = @transform_12, window_bounds = array<i64: 8, 1, 8>}, {pipeline_mode = #tpu.pipeline_mode<synchronous>, transform_indices = @transform_13, window_bounds = array<i64: 8, 8, 32>}, {pipeline_mode = #tpu.pipeline_mode<synchronous>, transform_indices = @transform_14, window_bounds = array<i64: 2, 1, 32>}, {pipeline_mode = #tpu.pipeline_mode<synchronous>, transform_indices = @transform_15, window_bounds = array<i64: 2, 1, 32>}, {pipeline_mode = #tpu.pipeline_mode<synchronous>, transform_indices = @transform_16, window_bounds = array<i64: 2, 1, 32>}, {pipeline_mode = #tpu.pipeline_mode<synchronous>, transform_indices = @transform_17, window_bounds = array<i64: 2, 32, 64>}, {pipeline_mode = #tpu.pipeline_mode<synchronous>, transform_indices = @transform_18, window_bounds = array<i64: 2, 1, 64>}, {pipeline_mode = #tpu.pipeline_mode<synchronous>, transform_indices = @transform_19, window_bounds = array<i64: 2, 64, 32>}, {pipeline_mode = #tpu.pipeline_mode<synchronous>, transform_indices = @transform_20, window_bounds = array<i64: 2, 1, 32>}, {pipeline_mode = #tpu.pipeline_mode<synchronous>, transform_indices = @transform_21, window_bounds = array<i64: 2, 1, 32>}, {pipeline_mode = #tpu.pipeline_mode<synchronous>, transform_indices = @transform_22, window_bounds = array<i64: 2, 1, 32>}, {pipeline_mode = #tpu.pipeline_mode<synchronous>, transform_indices = @transform_23, window_bounds = array<i64: 32, 128>}, {pipeline_mode = #tpu.pipeline_mode<synchronous>, transform_indices = @transform_24, window_bounds = array<i64: 1, 128>}, {pipeline_mode = #tpu.pipeline_mode<synchronous>, transform_indices = @transform_25, window_bounds = array<i64: 2, 6, 128>}]} {
    %c0 = arith.constant 0 : index
    %c0_0 = arith.constant 0 : index
    %c0_1 = arith.constant 0 : index
    %0 = vector.load %arg1[%c0, %c0_0, %c0_1] : memref<2x8x16xf32, #tpu.memory_space<vmem>>, vector<2x8x16xf32>
    %1 = vector.shape_cast %0 : vector<2x8x16xf32> to vector<16x16xf32>
    %2 = arith.truncf %1 : vector<16x16xf32> to vector<16x16xbf16>
    %c0_2 = arith.constant 0 : index
    %c0_3 = arith.constant 0 : index
    %c0_4 = arith.constant 0 : index
    %3 = vector.load %arg2[%c0_2, %c0_3, %c0_4] : memref<2x8x16xf32, #tpu.memory_space<vmem>>, vector<2x8x16xf32>
    %4 = vector.shape_cast %3 : vector<2x8x16xf32> to vector<16x16xf32>
    %5 = arith.truncf %4 : vector<16x16xf32> to vector<16x16xbf16>
    %c0_5 = arith.constant 0 : index
    %c0_6 = arith.constant 0 : index
    %6 = vector.load %arg5[%c0_5, %c0_6] : memref<16x32xbf16, #tpu.memory_space<vmem>>, vector<16x32xbf16>
    %cst = arith.constant dense<0.000000e+00> : vector<16x32xf32>
    %7 = tpu.matmul %2, %6, %cst {dimension_numbers = #tpu.dot_dimension_numbers<[1], [0], [0], [1], [0, 0, 1, 1], [], []>} : vector<16x16xbf16>, vector<16x32xbf16>, vector<16x32xf32> -> vector<16x32xf32>
    %c0_7 = arith.constant 0 : index
    %c0_8 = arith.constant 0 : index
    %8 = vector.load %arg6[%c0_7, %c0_8] : memref<16x32xbf16, #tpu.memory_space<vmem>>, vector<16x32xbf16>
    %cst_9 = arith.constant dense<0.000000e+00> : vector<16x32xf32>
    %9 = tpu.matmul %5, %8, %cst_9 {dimension_numbers = #tpu.dot_dimension_numbers<[1], [0], [0], [1], [0, 0, 1, 1], [], []>} : vector<16x16xbf16>, vector<16x32xbf16>, vector<16x32xf32> -> vector<16x32xf32>
    %10 = arith.addf %7, %9 : vector<16x32xf32>
    %c0_10 = arith.constant 0 : index
    %c0_11 = arith.constant 0 : index
    %11 = vector.load %arg7[%c0_10, %c0_11] : memref<1x32xf32, #tpu.memory_space<vmem>>, vector<1x32xf32>
    %12 = vector.broadcast %11 : vector<1x32xf32> to vector<16x32xf32>
    %13 = arith.addf %10, %12 : vector<16x32xf32>
    %cst_12 = arith.constant 5.65685415 : f32
    %14 = vector.broadcast %cst_12 : f32 to vector<16x32xf32>
    %15 = arith.mulf %13, %14 : vector<16x32xf32>
    %16 = vector.shape_cast %15 : vector<16x32xf32> to vector<2x8x32xf32>
    %c0_13 = arith.constant 0 : index
    %c0_14 = arith.constant 0 : index
    %17 = vector.load %arg3[%c0_13, %c0_14] : memref<8x32xf32, #tpu.memory_space<vmem>>, vector<8x32xf32>
    %18 = vector.shape_cast %17 : vector<8x32xf32> to vector<1x8x32xf32>
    %19 = vector.broadcast %18 : vector<1x8x32xf32> to vector<2x8x32xf32>
    %20 = arith.addf %16, %19 : vector<2x8x32xf32>
    %21 = vector.shape_cast %20 : vector<2x8x32xf32> to vector<16x32xf32>
    %22 = tpu.iota {dimensions = array<i32: 0>} : vector<8x8xi32>
    %23 = tpu.iota {dimensions = array<i32: 1>} : vector<8x8xi32>
    %24 = arith.cmpi sle, %23, %22 : vector<8x8xi32>
    %cst_15 = arith.constant 0.000000e+00 : f32
    %cst_16 = arith.constant -1.000000e+30 : f32
    %25 = vector.broadcast %cst_15 : f32 to vector<8x8xf32>
    %26 = vector.broadcast %cst_16 : f32 to vector<8x8xf32>
    %27 = arith.select %24, %25, %26 : vector<8x8xi1>, vector<8x8xf32>
    %28 = vector.shape_cast %27 : vector<8x8xf32> to vector<1x8x8xf32>
    %c0_17 = arith.constant 0 : index
    %c0_18 = arith.constant 0 : index
    %c0_19 = arith.constant 0 : index
    %29 = vector.load %arg4[%c0_17, %c0_18, %c0_19] : memref<2x1x8xf32, #tpu.memory_space<vmem>>, vector<2x1x8xf32>
    %30 = vector.broadcast %28 : vector<1x8x8xf32> to vector<2x8x8xf32>
    %31 = vector.broadcast %29 : vector<2x1x8xf32> to vector<2x8x8xf32>
    %32 = arith.addf %30, %31 : vector<2x8x8xf32>
    %33 = arith.truncf %21 : vector<16x32xf32> to vector<16x32xbf16>
    %cst_20 = arith.constant 0.000000e+00 : f32
    %34 = vector.broadcast %cst_20 : f32 to vector<16x32xf32>
    %c0_21 = arith.constant 0 : index
    %c0_22 = arith.constant 0 : index
    %c0_23 = arith.constant 0 : index
    %35 = vector.load %arg8[%c0_21, %c0_22, %c0_23] : memref<8x32x8xbf16, #tpu.memory_space<vmem>>, vector<1x32x8xbf16>
    %36 = vector.shape_cast %35 : vector<1x32x8xbf16> to vector<32x8xbf16>
    %cst_24 = arith.constant dense<0.000000e+00> : vector<16x8xf32>
    %37 = tpu.matmul %33, %36, %cst_24 {dimension_numbers = #tpu.dot_dimension_numbers<[1], [0], [0], [1], [0, 0, 1, 1], [], []>} : vector<16x32xbf16>, vector<32x8xbf16>, vector<16x8xf32> -> vector<16x8xf32>
    %c0_25 = arith.constant 0 : index
    %c0_26 = arith.constant 0 : index
    %c0_27 = arith.constant 0 : index
    %38 = vector.load %arg11[%c0_25, %c0_26, %c0_27] : memref<8x1x8xf32, #tpu.memory_space<vmem>>, vector<1x1x8xf32>
    %39 = vector.shape_cast %38 : vector<1x1x8xf32> to vector<1x8xf32>
    %40 = vector.broadcast %39 : vector<1x8xf32> to vector<16x8xf32>
    %41 = arith.addf %37, %40 : vector<16x8xf32>
    %cst_28 = arith.constant 0.353553385 : f32
    %42 = vector.broadcast %cst_28 : f32 to vector<16x8xf32>
    %43 = arith.mulf %41, %42 : vector<16x8xf32>
    %c0_29 = arith.constant 0 : index
    %c0_30 = arith.constant 0 : index
    %c0_31 = arith.constant 0 : index
    %44 = vector.load %arg9[%c0_29, %c0_30, %c0_31] : memref<8x32x8xbf16, #tpu.memory_space<vmem>>, vector<1x32x8xbf16>
    %45 = vector.shape_cast %44 : vector<1x32x8xbf16> to vector<32x8xbf16>
    %cst_32 = arith.constant dense<0.000000e+00> : vector<16x8xf32>
    %46 = tpu.matmul %33, %45, %cst_32 {dimension_numbers = #tpu.dot_dimension_numbers<[1], [0], [0], [1], [0, 0, 1, 1], [], []>} : vector<16x32xbf16>, vector<32x8xbf16>, vector<16x8xf32> -> vector<16x8xf32>
    %c0_33 = arith.constant 0 : index
    %c0_34 = arith.constant 0 : index
    %c0_35 = arith.constant 0 : index
    %47 = vector.load %arg12[%c0_33, %c0_34, %c0_35] : memref<8x1x8xf32, #tpu.memory_space<vmem>>, vector<1x1x8xf32>
    %48 = vector.shape_cast %47 : vector<1x1x8xf32> to vector<1x8xf32>
    %49 = vector.broadcast %48 : vector<1x8xf32> to vector<16x8xf32>
    %50 = arith.addf %46, %49 : vector<16x8xf32>
    %c0_36 = arith.constant 0 : index
    %c0_37 = arith.constant 0 : index
    %c0_38 = arith.constant 0 : index
    %51 = vector.load %arg10[%c0_36, %c0_37, %c0_38] : memref<8x32x8xbf16, #tpu.memory_space<vmem>>, vector<1x32x8xbf16>
    %52 = vector.shape_cast %51 : vector<1x32x8xbf16> to vector<32x8xbf16>
    %cst_39 = arith.constant dense<0.000000e+00> : vector<16x8xf32>
    %53 = tpu.matmul %33, %52, %cst_39 {dimension_numbers = #tpu.dot_dimension_numbers<[1], [0], [0], [1], [0, 0, 1, 1], [], []>} : vector<16x32xbf16>, vector<32x8xbf16>, vector<16x8xf32> -> vector<16x8xf32>
    %c0_40 = arith.constant 0 : index
    %c0_41 = arith.constant 0 : index
    %c0_42 = arith.constant 0 : index
    %54 = vector.load %arg13[%c0_40, %c0_41, %c0_42] : memref<8x1x8xf32, #tpu.memory_space<vmem>>, vector<1x1x8xf32>
    %55 = vector.shape_cast %54 : vector<1x1x8xf32> to vector<1x8xf32>
    %56 = vector.broadcast %55 : vector<1x8xf32> to vector<16x8xf32>
    %57 = arith.addf %53, %56 : vector<16x8xf32>
    %58 = vector.shape_cast %43 : vector<16x8xf32> to vector<2x8x8xf32>
    %59 = arith.truncf %58 : vector<2x8x8xf32> to vector<2x8x8xbf16>
    %60 = vector.shape_cast %50 : vector<16x8xf32> to vector<2x8x8xf32>
    %61 = arith.truncf %60 : vector<2x8x8xf32> to vector<2x8x8xbf16>
    %62 = vector.shape_cast %57 : vector<16x8xf32> to vector<2x8x8xf32>
    %63 = arith.truncf %62 : vector<2x8x8xf32> to vector<2x8x8xbf16>
    %cst_43 = arith.constant dense<0.000000e+00> : vector<2x8x8xf32>
    %64 = tpu.matmul %59, %61, %cst_43 {dimension_numbers = #tpu.dot_dimension_numbers<[2], [2], [1], [1], [0, 0, 0, 1, 1, 1], [0], [0]>} : vector<2x8x8xbf16>, vector<2x8x8xbf16>, vector<2x8x8xf32> -> vector<2x8x8xf32>
    %65 = arith.addf %64, %32 : vector<2x8x8xf32>
    %cst_44 = arith.constant dense<0xFF800000> : vector<2x8xf32>
    %66 = vector.multi_reduction <maximumf>, %65, %cst_44 [2] : vector<2x8x8xf32> to vector<2x8xf32>
    %67 = vector.shape_cast %66 : vector<2x8xf32> to vector<2x8x1xf32>
    %68 = vector.broadcast %67 : vector<2x8x1xf32> to vector<2x8x8xf32>
    %69 = arith.subf %65, %68 : vector<2x8x8xf32>
    %70 = math.exp %69 : vector<2x8x8xf32>
    %cst_45 = arith.constant dense<0.000000e+00> : vector<2x8xf32>
    %71 = vector.multi_reduction <add>, %70, %cst_45 [2] : vector<2x8x8xf32> to vector<2x8xf32>
    %72 = vector.shape_cast %71 : vector<2x8xf32> to vector<2x8x1xf32>
    %73 = tpu.reciprocal %72 {approx = true} : vector<2x8x1xf32> -> vector<2x8x1xf32>
    %74 = vector.broadcast %73 : vector<2x8x1xf32> to vector<2x8x8xf32>
    %75 = arith.mulf %70, %74 : vector<2x8x8xf32>
    %76 = arith.truncf %75 : vector<2x8x8xf32> to vector<2x8x8xbf16>
    %cst_46 = arith.constant dense<0.000000e+00> : vector<2x8x8xf32>
    %77 = tpu.matmul %76, %63, %cst_46 {dimension_numbers = #tpu.dot_dimension_numbers<[2], [1], [1], [2], [0, 0, 0, 1, 1, 2], [0], [0]>} : vector<2x8x8xbf16>, vector<2x8x8xbf16>, vector<2x8x8xf32> -> vector<2x8x8xf32>
    %78 = vector.shape_cast %77 : vector<2x8x8xf32> to vector<16x8xf32>
    %79 = arith.truncf %78 : vector<16x8xf32> to vector<16x8xbf16>
    %c0_47 = arith.constant 0 : index
    %c0_48 = arith.constant 0 : index
    %c0_49 = arith.constant 0 : index
    %80 = vector.load %arg14[%c0_47, %c0_48, %c0_49] : memref<8x8x32xbf16, #tpu.memory_space<vmem>>, vector<1x8x32xbf16>
    %81 = vector.shape_cast %80 : vector<1x8x32xbf16> to vector<8x32xbf16>
    %cst_50 = arith.constant dense<0.000000e+00> : vector<16x32xf32>
    %82 = tpu.matmul %79, %81, %cst_50 {dimension_numbers = #tpu.dot_dimension_numbers<[1], [0], [0], [1], [0, 0, 1, 1], [], []>} : vector<16x8xbf16>, vector<8x32xbf16>, vector<16x32xf32> -> vector<16x32xf32>
    %83 = arith.addf %34, %82 : vector<16x32xf32>
    %c1 = arith.constant 1 : index
    %c0_51 = arith.constant 0 : index
    %c0_52 = arith.constant 0 : index
    %84 = vector.load %arg8[%c1, %c0_51, %c0_52] : memref<8x32x8xbf16, #tpu.memory_space<vmem>>, vector<1x32x8xbf16>
    %85 = vector.shape_cast %84 : vector<1x32x8xbf16> to vector<32x8xbf16>
    %cst_53 = arith.constant dense<0.000000e+00> : vector<16x8xf32>
    %86 = tpu.matmul %33, %85, %cst_53 {dimension_numbers = #tpu.dot_dimension_numbers<[1], [0], [0], [1], [0, 0, 1, 1], [], []>} : vector<16x32xbf16>, vector<32x8xbf16>, vector<16x8xf32> -> vector<16x8xf32>
    %c1_54 = arith.constant 1 : index
    %c0_55 = arith.constant 0 : index
    %c0_56 = arith.constant 0 : index
    %87 = vector.load %arg11[%c1_54, %c0_55, %c0_56] : memref<8x1x8xf32, #tpu.memory_space<vmem>>, vector<1x1x8xf32>
    %88 = vector.shape_cast %87 : vector<1x1x8xf32> to vector<1x8xf32>
    %89 = vector.broadcast %88 : vector<1x8xf32> to vector<16x8xf32>
    %90 = arith.addf %86, %89 : vector<16x8xf32>
    %cst_57 = arith.constant 0.353553385 : f32
    %91 = vector.broadcast %cst_57 : f32 to vector<16x8xf32>
    %92 = arith.mulf %90, %91 : vector<16x8xf32>
    %c1_58 = arith.constant 1 : index
    %c0_59 = arith.constant 0 : index
    %c0_60 = arith.constant 0 : index
    %93 = vector.load %arg9[%c1_58, %c0_59, %c0_60] : memref<8x32x8xbf16, #tpu.memory_space<vmem>>, vector<1x32x8xbf16>
    %94 = vector.shape_cast %93 : vector<1x32x8xbf16> to vector<32x8xbf16>
    %cst_61 = arith.constant dense<0.000000e+00> : vector<16x8xf32>
    %95 = tpu.matmul %33, %94, %cst_61 {dimension_numbers = #tpu.dot_dimension_numbers<[1], [0], [0], [1], [0, 0, 1, 1], [], []>} : vector<16x32xbf16>, vector<32x8xbf16>, vector<16x8xf32> -> vector<16x8xf32>
    %c1_62 = arith.constant 1 : index
    %c0_63 = arith.constant 0 : index
    %c0_64 = arith.constant 0 : index
    %96 = vector.load %arg12[%c1_62, %c0_63, %c0_64] : memref<8x1x8xf32, #tpu.memory_space<vmem>>, vector<1x1x8xf32>
    %97 = vector.shape_cast %96 : vector<1x1x8xf32> to vector<1x8xf32>
    %98 = vector.broadcast %97 : vector<1x8xf32> to vector<16x8xf32>
    %99 = arith.addf %95, %98 : vector<16x8xf32>
    %c1_65 = arith.constant 1 : index
    %c0_66 = arith.constant 0 : index
    %c0_67 = arith.constant 0 : index
    %100 = vector.load %arg10[%c1_65, %c0_66, %c0_67] : memref<8x32x8xbf16, #tpu.memory_space<vmem>>, vector<1x32x8xbf16>
    %101 = vector.shape_cast %100 : vector<1x32x8xbf16> to vector<32x8xbf16>
    %cst_68 = arith.constant dense<0.000000e+00> : vector<16x8xf32>
    %102 = tpu.matmul %33, %101, %cst_68 {dimension_numbers = #tpu.dot_dimension_numbers<[1], [0], [0], [1], [0, 0, 1, 1], [], []>} : vector<16x32xbf16>, vector<32x8xbf16>, vector<16x8xf32> -> vector<16x8xf32>
    %c1_69 = arith.constant 1 : index
    %c0_70 = arith.constant 0 : index
    %c0_71 = arith.constant 0 : index
    %103 = vector.load %arg13[%c1_69, %c0_70, %c0_71] : memref<8x1x8xf32, #tpu.memory_space<vmem>>, vector<1x1x8xf32>
    %104 = vector.shape_cast %103 : vector<1x1x8xf32> to vector<1x8xf32>
    %105 = vector.broadcast %104 : vector<1x8xf32> to vector<16x8xf32>
    %106 = arith.addf %102, %105 : vector<16x8xf32>
    %107 = vector.shape_cast %92 : vector<16x8xf32> to vector<2x8x8xf32>
    %108 = arith.truncf %107 : vector<2x8x8xf32> to vector<2x8x8xbf16>
    %109 = vector.shape_cast %99 : vector<16x8xf32> to vector<2x8x8xf32>
    %110 = arith.truncf %109 : vector<2x8x8xf32> to vector<2x8x8xbf16>
    %111 = vector.shape_cast %106 : vector<16x8xf32> to vector<2x8x8xf32>
    %112 = arith.truncf %111 : vector<2x8x8xf32> to vector<2x8x8xbf16>
    %cst_72 = arith.constant dense<0.000000e+00> : vector<2x8x8xf32>
    %113 = tpu.matmul %108, %110, %cst_72 {dimension_numbers = #tpu.dot_dimension_numbers<[2], [2], [1], [1], [0, 0, 0, 1, 1, 1], [0], [0]>} : vector<2x8x8xbf16>, vector<2x8x8xbf16>, vector<2x8x8xf32> -> vector<2x8x8xf32>
    %114 = arith.addf %113, %32 : vector<2x8x8xf32>
    %cst_73 = arith.constant dense<0xFF800000> : vector<2x8xf32>
    %115 = vector.multi_reduction <maximumf>, %114, %cst_73 [2] : vector<2x8x8xf32> to vector<2x8xf32>
    %116 = vector.shape_cast %115 : vector<2x8xf32> to vector<2x8x1xf32>
    %117 = vector.broadcast %116 : vector<2x8x1xf32> to vector<2x8x8xf32>
    %118 = arith.subf %114, %117 : vector<2x8x8xf32>
    %119 = math.exp %118 : vector<2x8x8xf32>
    %cst_74 = arith.constant dense<0.000000e+00> : vector<2x8xf32>
    %120 = vector.multi_reduction <add>, %119, %cst_74 [2] : vector<2x8x8xf32> to vector<2x8xf32>
    %121 = vector.shape_cast %120 : vector<2x8xf32> to vector<2x8x1xf32>
    %122 = tpu.reciprocal %121 {approx = true} : vector<2x8x1xf32> -> vector<2x8x1xf32>
    %123 = vector.broadcast %122 : vector<2x8x1xf32> to vector<2x8x8xf32>
    %124 = arith.mulf %119, %123 : vector<2x8x8xf32>
    %125 = arith.truncf %124 : vector<2x8x8xf32> to vector<2x8x8xbf16>
    %cst_75 = arith.constant dense<0.000000e+00> : vector<2x8x8xf32>
    %126 = tpu.matmul %125, %112, %cst_75 {dimension_numbers = #tpu.dot_dimension_numbers<[2], [1], [1], [2], [0, 0, 0, 1, 1, 2], [0], [0]>} : vector<2x8x8xbf16>, vector<2x8x8xbf16>, vector<2x8x8xf32> -> vector<2x8x8xf32>
    %127 = vector.shape_cast %126 : vector<2x8x8xf32> to vector<16x8xf32>
    %128 = arith.truncf %127 : vector<16x8xf32> to vector<16x8xbf16>
    %c1_76 = arith.constant 1 : index
    %c0_77 = arith.constant 0 : index
    %c0_78 = arith.constant 0 : index
    %129 = vector.load %arg14[%c1_76, %c0_77, %c0_78] : memref<8x8x32xbf16, #tpu.memory_space<vmem>>, vector<1x8x32xbf16>
    %130 = vector.shape_cast %129 : vector<1x8x32xbf16> to vector<8x32xbf16>
    %cst_79 = arith.constant dense<0.000000e+00> : vector<16x32xf32>
    %131 = tpu.matmul %128, %130, %cst_79 {dimension_numbers = #tpu.dot_dimension_numbers<[1], [0], [0], [1], [0, 0, 1, 1], [], []>} : vector<16x8xbf16>, vector<8x32xbf16>, vector<16x32xf32> -> vector<16x32xf32>
    %132 = arith.addf %83, %131 : vector<16x32xf32>
    %c2 = arith.constant 2 : index
    %c0_80 = arith.constant 0 : index
    %c0_81 = arith.constant 0 : index
    %133 = vector.load %arg8[%c2, %c0_80, %c0_81] : memref<8x32x8xbf16, #tpu.memory_space<vmem>>, vector<1x32x8xbf16>
    %134 = vector.shape_cast %133 : vector<1x32x8xbf16> to vector<32x8xbf16>
    %cst_82 = arith.constant dense<0.000000e+00> : vector<16x8xf32>
    %135 = tpu.matmul %33, %134, %cst_82 {dimension_numbers = #tpu.dot_dimension_numbers<[1], [0], [0], [1], [0, 0, 1, 1], [], []>} : vector<16x32xbf16>, vector<32x8xbf16>, vector<16x8xf32> -> vector<16x8xf32>
    %c2_83 = arith.constant 2 : index
    %c0_84 = arith.constant 0 : index
    %c0_85 = arith.constant 0 : index
    %136 = vector.load %arg11[%c2_83, %c0_84, %c0_85] : memref<8x1x8xf32, #tpu.memory_space<vmem>>, vector<1x1x8xf32>
    %137 = vector.shape_cast %136 : vector<1x1x8xf32> to vector<1x8xf32>
    %138 = vector.broadcast %137 : vector<1x8xf32> to vector<16x8xf32>
    %139 = arith.addf %135, %138 : vector<16x8xf32>
    %cst_86 = arith.constant 0.353553385 : f32
    %140 = vector.broadcast %cst_86 : f32 to vector<16x8xf32>
    %141 = arith.mulf %139, %140 : vector<16x8xf32>
    %c2_87 = arith.constant 2 : index
    %c0_88 = arith.constant 0 : index
    %c0_89 = arith.constant 0 : index
    %142 = vector.load %arg9[%c2_87, %c0_88, %c0_89] : memref<8x32x8xbf16, #tpu.memory_space<vmem>>, vector<1x32x8xbf16>
    %143 = vector.shape_cast %142 : vector<1x32x8xbf16> to vector<32x8xbf16>
    %cst_90 = arith.constant dense<0.000000e+00> : vector<16x8xf32>
    %144 = tpu.matmul %33, %143, %cst_90 {dimension_numbers = #tpu.dot_dimension_numbers<[1], [0], [0], [1], [0, 0, 1, 1], [], []>} : vector<16x32xbf16>, vector<32x8xbf16>, vector<16x8xf32> -> vector<16x8xf32>
    %c2_91 = arith.constant 2 : index
    %c0_92 = arith.constant 0 : index
    %c0_93 = arith.constant 0 : index
    %145 = vector.load %arg12[%c2_91, %c0_92, %c0_93] : memref<8x1x8xf32, #tpu.memory_space<vmem>>, vector<1x1x8xf32>
    %146 = vector.shape_cast %145 : vector<1x1x8xf32> to vector<1x8xf32>
    %147 = vector.broadcast %146 : vector<1x8xf32> to vector<16x8xf32>
    %148 = arith.addf %144, %147 : vector<16x8xf32>
    %c2_94 = arith.constant 2 : index
    %c0_95 = arith.constant 0 : index
    %c0_96 = arith.constant 0 : index
    %149 = vector.load %arg10[%c2_94, %c0_95, %c0_96] : memref<8x32x8xbf16, #tpu.memory_space<vmem>>, vector<1x32x8xbf16>
    %150 = vector.shape_cast %149 : vector<1x32x8xbf16> to vector<32x8xbf16>
    %cst_97 = arith.constant dense<0.000000e+00> : vector<16x8xf32>
    %151 = tpu.matmul %33, %150, %cst_97 {dimension_numbers = #tpu.dot_dimension_numbers<[1], [0], [0], [1], [0, 0, 1, 1], [], []>} : vector<16x32xbf16>, vector<32x8xbf16>, vector<16x8xf32> -> vector<16x8xf32>
    %c2_98 = arith.constant 2 : index
    %c0_99 = arith.constant 0 : index
    %c0_100 = arith.constant 0 : index
    %152 = vector.load %arg13[%c2_98, %c0_99, %c0_100] : memref<8x1x8xf32, #tpu.memory_space<vmem>>, vector<1x1x8xf32>
    %153 = vector.shape_cast %152 : vector<1x1x8xf32> to vector<1x8xf32>
    %154 = vector.broadcast %153 : vector<1x8xf32> to vector<16x8xf32>
    %155 = arith.addf %151, %154 : vector<16x8xf32>
    %156 = vector.shape_cast %141 : vector<16x8xf32> to vector<2x8x8xf32>
    %157 = arith.truncf %156 : vector<2x8x8xf32> to vector<2x8x8xbf16>
    %158 = vector.shape_cast %148 : vector<16x8xf32> to vector<2x8x8xf32>
    %159 = arith.truncf %158 : vector<2x8x8xf32> to vector<2x8x8xbf16>
    %160 = vector.shape_cast %155 : vector<16x8xf32> to vector<2x8x8xf32>
    %161 = arith.truncf %160 : vector<2x8x8xf32> to vector<2x8x8xbf16>
    %cst_101 = arith.constant dense<0.000000e+00> : vector<2x8x8xf32>
    %162 = tpu.matmul %157, %159, %cst_101 {dimension_numbers = #tpu.dot_dimension_numbers<[2], [2], [1], [1], [0, 0, 0, 1, 1, 1], [0], [0]>} : vector<2x8x8xbf16>, vector<2x8x8xbf16>, vector<2x8x8xf32> -> vector<2x8x8xf32>
    %163 = arith.addf %162, %32 : vector<2x8x8xf32>
    %cst_102 = arith.constant dense<0xFF800000> : vector<2x8xf32>
    %164 = vector.multi_reduction <maximumf>, %163, %cst_102 [2] : vector<2x8x8xf32> to vector<2x8xf32>
    %165 = vector.shape_cast %164 : vector<2x8xf32> to vector<2x8x1xf32>
    %166 = vector.broadcast %165 : vector<2x8x1xf32> to vector<2x8x8xf32>
    %167 = arith.subf %163, %166 : vector<2x8x8xf32>
    %168 = math.exp %167 : vector<2x8x8xf32>
    %cst_103 = arith.constant dense<0.000000e+00> : vector<2x8xf32>
    %169 = vector.multi_reduction <add>, %168, %cst_103 [2] : vector<2x8x8xf32> to vector<2x8xf32>
    %170 = vector.shape_cast %169 : vector<2x8xf32> to vector<2x8x1xf32>
    %171 = tpu.reciprocal %170 {approx = true} : vector<2x8x1xf32> -> vector<2x8x1xf32>
    %172 = vector.broadcast %171 : vector<2x8x1xf32> to vector<2x8x8xf32>
    %173 = arith.mulf %168, %172 : vector<2x8x8xf32>
    %174 = arith.truncf %173 : vector<2x8x8xf32> to vector<2x8x8xbf16>
    %cst_104 = arith.constant dense<0.000000e+00> : vector<2x8x8xf32>
    %175 = tpu.matmul %174, %161, %cst_104 {dimension_numbers = #tpu.dot_dimension_numbers<[2], [1], [1], [2], [0, 0, 0, 1, 1, 2], [0], [0]>} : vector<2x8x8xbf16>, vector<2x8x8xbf16>, vector<2x8x8xf32> -> vector<2x8x8xf32>
    %176 = vector.shape_cast %175 : vector<2x8x8xf32> to vector<16x8xf32>
    %177 = arith.truncf %176 : vector<16x8xf32> to vector<16x8xbf16>
    %c2_105 = arith.constant 2 : index
    %c0_106 = arith.constant 0 : index
    %c0_107 = arith.constant 0 : index
    %178 = vector.load %arg14[%c2_105, %c0_106, %c0_107] : memref<8x8x32xbf16, #tpu.memory_space<vmem>>, vector<1x8x32xbf16>
    %179 = vector.shape_cast %178 : vector<1x8x32xbf16> to vector<8x32xbf16>
    %cst_108 = arith.constant dense<0.000000e+00> : vector<16x32xf32>
    %180 = tpu.matmul %177, %179, %cst_108 {dimension_numbers = #tpu.dot_dimension_numbers<[1], [0], [0], [1], [0, 0, 1, 1], [], []>} : vector<16x8xbf16>, vector<8x32xbf16>, vector<16x32xf32> -> vector<16x32xf32>
    %181 = arith.addf %132, %180 : vector<16x32xf32>
    %c3 = arith.constant 3 : index
    %c0_109 = arith.constant 0 : index
    %c0_110 = arith.constant 0 : index
    %182 = vector.load %arg8[%c3, %c0_109, %c0_110] : memref<8x32x8xbf16, #tpu.memory_space<vmem>>, vector<1x32x8xbf16>
    %183 = vector.shape_cast %182 : vector<1x32x8xbf16> to vector<32x8xbf16>
    %cst_111 = arith.constant dense<0.000000e+00> : vector<16x8xf32>
    %184 = tpu.matmul %33, %183, %cst_111 {dimension_numbers = #tpu.dot_dimension_numbers<[1], [0], [0], [1], [0, 0, 1, 1], [], []>} : vector<16x32xbf16>, vector<32x8xbf16>, vector<16x8xf32> -> vector<16x8xf32>
    %c3_112 = arith.constant 3 : index
    %c0_113 = arith.constant 0 : index
    %c0_114 = arith.constant 0 : index
    %185 = vector.load %arg11[%c3_112, %c0_113, %c0_114] : memref<8x1x8xf32, #tpu.memory_space<vmem>>, vector<1x1x8xf32>
    %186 = vector.shape_cast %185 : vector<1x1x8xf32> to vector<1x8xf32>
    %187 = vector.broadcast %186 : vector<1x8xf32> to vector<16x8xf32>
    %188 = arith.addf %184, %187 : vector<16x8xf32>
    %cst_115 = arith.constant 0.353553385 : f32
    %189 = vector.broadcast %cst_115 : f32 to vector<16x8xf32>
    %190 = arith.mulf %188, %189 : vector<16x8xf32>
    %c3_116 = arith.constant 3 : index
    %c0_117 = arith.constant 0 : index
    %c0_118 = arith.constant 0 : index
    %191 = vector.load %arg9[%c3_116, %c0_117, %c0_118] : memref<8x32x8xbf16, #tpu.memory_space<vmem>>, vector<1x32x8xbf16>
    %192 = vector.shape_cast %191 : vector<1x32x8xbf16> to vector<32x8xbf16>
    %cst_119 = arith.constant dense<0.000000e+00> : vector<16x8xf32>
    %193 = tpu.matmul %33, %192, %cst_119 {dimension_numbers = #tpu.dot_dimension_numbers<[1], [0], [0], [1], [0, 0, 1, 1], [], []>} : vector<16x32xbf16>, vector<32x8xbf16>, vector<16x8xf32> -> vector<16x8xf32>
    %c3_120 = arith.constant 3 : index
    %c0_121 = arith.constant 0 : index
    %c0_122 = arith.constant 0 : index
    %194 = vector.load %arg12[%c3_120, %c0_121, %c0_122] : memref<8x1x8xf32, #tpu.memory_space<vmem>>, vector<1x1x8xf32>
    %195 = vector.shape_cast %194 : vector<1x1x8xf32> to vector<1x8xf32>
    %196 = vector.broadcast %195 : vector<1x8xf32> to vector<16x8xf32>
    %197 = arith.addf %193, %196 : vector<16x8xf32>
    %c3_123 = arith.constant 3 : index
    %c0_124 = arith.constant 0 : index
    %c0_125 = arith.constant 0 : index
    %198 = vector.load %arg10[%c3_123, %c0_124, %c0_125] : memref<8x32x8xbf16, #tpu.memory_space<vmem>>, vector<1x32x8xbf16>
    %199 = vector.shape_cast %198 : vector<1x32x8xbf16> to vector<32x8xbf16>
    %cst_126 = arith.constant dense<0.000000e+00> : vector<16x8xf32>
    %200 = tpu.matmul %33, %199, %cst_126 {dimension_numbers = #tpu.dot_dimension_numbers<[1], [0], [0], [1], [0, 0, 1, 1], [], []>} : vector<16x32xbf16>, vector<32x8xbf16>, vector<16x8xf32> -> vector<16x8xf32>
    %c3_127 = arith.constant 3 : index
    %c0_128 = arith.constant 0 : index
    %c0_129 = arith.constant 0 : index
    %201 = vector.load %arg13[%c3_127, %c0_128, %c0_129] : memref<8x1x8xf32, #tpu.memory_space<vmem>>, vector<1x1x8xf32>
    %202 = vector.shape_cast %201 : vector<1x1x8xf32> to vector<1x8xf32>
    %203 = vector.broadcast %202 : vector<1x8xf32> to vector<16x8xf32>
    %204 = arith.addf %200, %203 : vector<16x8xf32>
    %205 = vector.shape_cast %190 : vector<16x8xf32> to vector<2x8x8xf32>
    %206 = arith.truncf %205 : vector<2x8x8xf32> to vector<2x8x8xbf16>
    %207 = vector.shape_cast %197 : vector<16x8xf32> to vector<2x8x8xf32>
    %208 = arith.truncf %207 : vector<2x8x8xf32> to vector<2x8x8xbf16>
    %209 = vector.shape_cast %204 : vector<16x8xf32> to vector<2x8x8xf32>
    %210 = arith.truncf %209 : vector<2x8x8xf32> to vector<2x8x8xbf16>
    %cst_130 = arith.constant dense<0.000000e+00> : vector<2x8x8xf32>
    %211 = tpu.matmul %206, %208, %cst_130 {dimension_numbers = #tpu.dot_dimension_numbers<[2], [2], [1], [1], [0, 0, 0, 1, 1, 1], [0], [0]>} : vector<2x8x8xbf16>, vector<2x8x8xbf16>, vector<2x8x8xf32> -> vector<2x8x8xf32>
    %212 = arith.addf %211, %32 : vector<2x8x8xf32>
    %cst_131 = arith.constant dense<0xFF800000> : vector<2x8xf32>
    %213 = vector.multi_reduction <maximumf>, %212, %cst_131 [2] : vector<2x8x8xf32> to vector<2x8xf32>
    %214 = vector.shape_cast %213 : vector<2x8xf32> to vector<2x8x1xf32>
    %215 = vector.broadcast %214 : vector<2x8x1xf32> to vector<2x8x8xf32>
    %216 = arith.subf %212, %215 : vector<2x8x8xf32>
    %217 = math.exp %216 : vector<2x8x8xf32>
    %cst_132 = arith.constant dense<0.000000e+00> : vector<2x8xf32>
    %218 = vector.multi_reduction <add>, %217, %cst_132 [2] : vector<2x8x8xf32> to vector<2x8xf32>
    %219 = vector.shape_cast %218 : vector<2x8xf32> to vector<2x8x1xf32>
    %220 = tpu.reciprocal %219 {approx = true} : vector<2x8x1xf32> -> vector<2x8x1xf32>
    %221 = vector.broadcast %220 : vector<2x8x1xf32> to vector<2x8x8xf32>
    %222 = arith.mulf %217, %221 : vector<2x8x8xf32>
    %223 = arith.truncf %222 : vector<2x8x8xf32> to vector<2x8x8xbf16>
    %cst_133 = arith.constant dense<0.000000e+00> : vector<2x8x8xf32>
    %224 = tpu.matmul %223, %210, %cst_133 {dimension_numbers = #tpu.dot_dimension_numbers<[2], [1], [1], [2], [0, 0, 0, 1, 1, 2], [0], [0]>} : vector<2x8x8xbf16>, vector<2x8x8xbf16>, vector<2x8x8xf32> -> vector<2x8x8xf32>
    %225 = vector.shape_cast %224 : vector<2x8x8xf32> to vector<16x8xf32>
    %226 = arith.truncf %225 : vector<16x8xf32> to vector<16x8xbf16>
    %c3_134 = arith.constant 3 : index
    %c0_135 = arith.constant 0 : index
    %c0_136 = arith.constant 0 : index
    %227 = vector.load %arg14[%c3_134, %c0_135, %c0_136] : memref<8x8x32xbf16, #tpu.memory_space<vmem>>, vector<1x8x32xbf16>
    %228 = vector.shape_cast %227 : vector<1x8x32xbf16> to vector<8x32xbf16>
    %cst_137 = arith.constant dense<0.000000e+00> : vector<16x32xf32>
    %229 = tpu.matmul %226, %228, %cst_137 {dimension_numbers = #tpu.dot_dimension_numbers<[1], [0], [0], [1], [0, 0, 1, 1], [], []>} : vector<16x8xbf16>, vector<8x32xbf16>, vector<16x32xf32> -> vector<16x32xf32>
    %230 = arith.addf %181, %229 : vector<16x32xf32>
    %231 = arith.addf %21, %230 : vector<16x32xf32>
    %c0_138 = arith.constant 0 : index
    %c0_139 = arith.constant 0 : index
    %c0_140 = arith.constant 0 : index
    %232 = vector.load %arg15[%c0_138, %c0_139, %c0_140] : memref<2x1x32xf32, #tpu.memory_space<vmem>>, vector<1x1x32xf32>
    %233 = vector.shape_cast %232 : vector<1x1x32xf32> to vector<1x32xf32>
    %234 = vector.broadcast %233 : vector<1x32xf32> to vector<16x32xf32>
    %235 = arith.addf %231, %234 : vector<16x32xf32>
    %c0_141 = arith.constant 0 : index
    %c0_142 = arith.constant 0 : index
    %c0_143 = arith.constant 0 : index
    %236 = vector.load %arg16[%c0_141, %c0_142, %c0_143] : memref<2x1x32xf32, #tpu.memory_space<vmem>>, vector<1x1x32xf32>
    %237 = vector.shape_cast %236 : vector<1x1x32xf32> to vector<1x32xf32>
    %c0_144 = arith.constant 0 : index
    %c0_145 = arith.constant 0 : index
    %c0_146 = arith.constant 0 : index
    %238 = vector.load %arg17[%c0_144, %c0_145, %c0_146] : memref<2x1x32xf32, #tpu.memory_space<vmem>>, vector<1x1x32xf32>
    %239 = vector.shape_cast %238 : vector<1x1x32xf32> to vector<1x32xf32>
    %cst_147 = arith.constant dense<0.000000e+00> : vector<16xf32>
    %240 = vector.multi_reduction <add>, %235, %cst_147 [1] : vector<16x32xf32> to vector<16xf32>
    %241 = vector.shape_cast %240 : vector<16xf32> to vector<16x1xf32>
    %cst_148 = arith.constant 3.200000e+01 : f32
    %242 = vector.broadcast %cst_148 : f32 to vector<16x1xf32>
    %243 = arith.divf %241, %242 : vector<16x1xf32>
    %244 = vector.broadcast %243 : vector<16x1xf32> to vector<16x32xf32>
    %245 = arith.subf %235, %244 : vector<16x32xf32>
    %246 = arith.mulf %245, %245 : vector<16x32xf32>
    %cst_149 = arith.constant dense<0.000000e+00> : vector<16xf32>
    %247 = vector.multi_reduction <add>, %246, %cst_149 [1] : vector<16x32xf32> to vector<16xf32>
    %248 = vector.shape_cast %247 : vector<16xf32> to vector<16x1xf32>
    %cst_150 = arith.constant 3.200000e+01 : f32
    %249 = vector.broadcast %cst_150 : f32 to vector<16x1xf32>
    %250 = arith.divf %248, %249 : vector<16x1xf32>
    %cst_151 = arith.constant 9.99999974E-6 : f32
    %251 = vector.broadcast %cst_151 : f32 to vector<16x1xf32>
    %252 = arith.addf %250, %251 : vector<16x1xf32>
    %253 = math.rsqrt %252 : vector<16x1xf32>
    %254 = vector.broadcast %253 : vector<16x1xf32> to vector<16x32xf32>
    %255 = arith.mulf %245, %254 : vector<16x32xf32>
    %256 = vector.broadcast %237 : vector<1x32xf32> to vector<16x32xf32>
    %257 = arith.mulf %255, %256 : vector<16x32xf32>
    %258 = vector.broadcast %239 : vector<1x32xf32> to vector<16x32xf32>
    %259 = arith.addf %257, %258 : vector<16x32xf32>
    %260 = arith.truncf %259 : vector<16x32xf32> to vector<16x32xbf16>
    %c0_152 = arith.constant 0 : index
    %c0_153 = arith.constant 0 : index
    %c0_154 = arith.constant 0 : index
    %261 = vector.load %arg18[%c0_152, %c0_153, %c0_154] : memref<2x32x64xbf16, #tpu.memory_space<vmem>>, vector<1x32x64xbf16>
    %262 = vector.shape_cast %261 : vector<1x32x64xbf16> to vector<32x64xbf16>
    %cst_155 = arith.constant dense<0.000000e+00> : vector<16x64xf32>
    %263 = tpu.matmul %260, %262, %cst_155 {dimension_numbers = #tpu.dot_dimension_numbers<[1], [0], [0], [1], [0, 0, 1, 1], [], []>} : vector<16x32xbf16>, vector<32x64xbf16>, vector<16x64xf32> -> vector<16x64xf32>
    %c0_156 = arith.constant 0 : index
    %c0_157 = arith.constant 0 : index
    %c0_158 = arith.constant 0 : index
    %264 = vector.load %arg19[%c0_156, %c0_157, %c0_158] : memref<2x1x64xf32, #tpu.memory_space<vmem>>, vector<1x1x64xf32>
    %265 = vector.shape_cast %264 : vector<1x1x64xf32> to vector<1x64xf32>
    %266 = vector.broadcast %265 : vector<1x64xf32> to vector<16x64xf32>
    %267 = arith.addf %263, %266 : vector<16x64xf32>
    %cst_159 = arith.constant 0.000000e+00 : f32
    %268 = vector.broadcast %cst_159 : f32 to vector<16x64xf32>
    %269 = arith.maximumf %267, %268 : vector<16x64xf32>
    %270 = arith.truncf %269 : vector<16x64xf32> to vector<16x64xbf16>
    %c0_160 = arith.constant 0 : index
    %c0_161 = arith.constant 0 : index
    %c0_162 = arith.constant 0 : index
    %271 = vector.load %arg20[%c0_160, %c0_161, %c0_162] : memref<2x64x32xbf16, #tpu.memory_space<vmem>>, vector<1x64x32xbf16>
    %272 = vector.shape_cast %271 : vector<1x64x32xbf16> to vector<64x32xbf16>
    %cst_163 = arith.constant dense<0.000000e+00> : vector<16x32xf32>
    %273 = tpu.matmul %270, %272, %cst_163 {dimension_numbers = #tpu.dot_dimension_numbers<[1], [0], [0], [1], [0, 0, 1, 1], [], []>} : vector<16x64xbf16>, vector<64x32xbf16>, vector<16x32xf32> -> vector<16x32xf32>
    %c0_164 = arith.constant 0 : index
    %c0_165 = arith.constant 0 : index
    %c0_166 = arith.constant 0 : index
    %274 = vector.load %arg21[%c0_164, %c0_165, %c0_166] : memref<2x1x32xf32, #tpu.memory_space<vmem>>, vector<1x1x32xf32>
    %275 = vector.shape_cast %274 : vector<1x1x32xf32> to vector<1x32xf32>
    %276 = vector.broadcast %275 : vector<1x32xf32> to vector<16x32xf32>
    %277 = arith.addf %273, %276 : vector<16x32xf32>
    %278 = arith.addf %259, %277 : vector<16x32xf32>
    %c0_167 = arith.constant 0 : index
    %c0_168 = arith.constant 0 : index
    %c0_169 = arith.constant 0 : index
    %279 = vector.load %arg22[%c0_167, %c0_168, %c0_169] : memref<2x1x32xf32, #tpu.memory_space<vmem>>, vector<1x1x32xf32>
    %280 = vector.shape_cast %279 : vector<1x1x32xf32> to vector<1x32xf32>
    %c0_170 = arith.constant 0 : index
    %c0_171 = arith.constant 0 : index
    %c0_172 = arith.constant 0 : index
    %281 = vector.load %arg23[%c0_170, %c0_171, %c0_172] : memref<2x1x32xf32, #tpu.memory_space<vmem>>, vector<1x1x32xf32>
    %282 = vector.shape_cast %281 : vector<1x1x32xf32> to vector<1x32xf32>
    %cst_173 = arith.constant dense<0.000000e+00> : vector<16xf32>
    %283 = vector.multi_reduction <add>, %278, %cst_173 [1] : vector<16x32xf32> to vector<16xf32>
    %284 = vector.shape_cast %283 : vector<16xf32> to vector<16x1xf32>
    %cst_174 = arith.constant 3.200000e+01 : f32
    %285 = vector.broadcast %cst_174 : f32 to vector<16x1xf32>
    %286 = arith.divf %284, %285 : vector<16x1xf32>
    %287 = vector.broadcast %286 : vector<16x1xf32> to vector<16x32xf32>
    %288 = arith.subf %278, %287 : vector<16x32xf32>
    %289 = arith.mulf %288, %288 : vector<16x32xf32>
    %cst_175 = arith.constant dense<0.000000e+00> : vector<16xf32>
    %290 = vector.multi_reduction <add>, %289, %cst_175 [1] : vector<16x32xf32> to vector<16xf32>
    %291 = vector.shape_cast %290 : vector<16xf32> to vector<16x1xf32>
    %cst_176 = arith.constant 3.200000e+01 : f32
    %292 = vector.broadcast %cst_176 : f32 to vector<16x1xf32>
    %293 = arith.divf %291, %292 : vector<16x1xf32>
    %cst_177 = arith.constant 9.99999974E-6 : f32
    %294 = vector.broadcast %cst_177 : f32 to vector<16x1xf32>
    %295 = arith.addf %293, %294 : vector<16x1xf32>
    %296 = math.rsqrt %295 : vector<16x1xf32>
    %297 = vector.broadcast %296 : vector<16x1xf32> to vector<16x32xf32>
    %298 = arith.mulf %288, %297 : vector<16x32xf32>
    %299 = vector.broadcast %280 : vector<1x32xf32> to vector<16x32xf32>
    %300 = arith.mulf %298, %299 : vector<16x32xf32>
    %301 = vector.broadcast %282 : vector<1x32xf32> to vector<16x32xf32>
    %302 = arith.addf %300, %301 : vector<16x32xf32>
    %303 = arith.truncf %302 : vector<16x32xf32> to vector<16x32xbf16>
    %cst_178 = arith.constant 0.000000e+00 : f32
    %304 = vector.broadcast %cst_178 : f32 to vector<16x32xf32>
    %c4 = arith.constant 4 : index
    %c0_179 = arith.constant 0 : index
    %c0_180 = arith.constant 0 : index
    %305 = vector.load %arg8[%c4, %c0_179, %c0_180] : memref<8x32x8xbf16, #tpu.memory_space<vmem>>, vector<1x32x8xbf16>
    %306 = vector.shape_cast %305 : vector<1x32x8xbf16> to vector<32x8xbf16>
    %cst_181 = arith.constant dense<0.000000e+00> : vector<16x8xf32>
    %307 = tpu.matmul %303, %306, %cst_181 {dimension_numbers = #tpu.dot_dimension_numbers<[1], [0], [0], [1], [0, 0, 1, 1], [], []>} : vector<16x32xbf16>, vector<32x8xbf16>, vector<16x8xf32> -> vector<16x8xf32>
    %c4_182 = arith.constant 4 : index
    %c0_183 = arith.constant 0 : index
    %c0_184 = arith.constant 0 : index
    %308 = vector.load %arg11[%c4_182, %c0_183, %c0_184] : memref<8x1x8xf32, #tpu.memory_space<vmem>>, vector<1x1x8xf32>
    %309 = vector.shape_cast %308 : vector<1x1x8xf32> to vector<1x8xf32>
    %310 = vector.broadcast %309 : vector<1x8xf32> to vector<16x8xf32>
    %311 = arith.addf %307, %310 : vector<16x8xf32>
    %cst_185 = arith.constant 0.353553385 : f32
    %312 = vector.broadcast %cst_185 : f32 to vector<16x8xf32>
    %313 = arith.mulf %311, %312 : vector<16x8xf32>
    %c4_186 = arith.constant 4 : index
    %c0_187 = arith.constant 0 : index
    %c0_188 = arith.constant 0 : index
    %314 = vector.load %arg9[%c4_186, %c0_187, %c0_188] : memref<8x32x8xbf16, #tpu.memory_space<vmem>>, vector<1x32x8xbf16>
    %315 = vector.shape_cast %314 : vector<1x32x8xbf16> to vector<32x8xbf16>
    %cst_189 = arith.constant dense<0.000000e+00> : vector<16x8xf32>
    %316 = tpu.matmul %303, %315, %cst_189 {dimension_numbers = #tpu.dot_dimension_numbers<[1], [0], [0], [1], [0, 0, 1, 1], [], []>} : vector<16x32xbf16>, vector<32x8xbf16>, vector<16x8xf32> -> vector<16x8xf32>
    %c4_190 = arith.constant 4 : index
    %c0_191 = arith.constant 0 : index
    %c0_192 = arith.constant 0 : index
    %317 = vector.load %arg12[%c4_190, %c0_191, %c0_192] : memref<8x1x8xf32, #tpu.memory_space<vmem>>, vector<1x1x8xf32>
    %318 = vector.shape_cast %317 : vector<1x1x8xf32> to vector<1x8xf32>
    %319 = vector.broadcast %318 : vector<1x8xf32> to vector<16x8xf32>
    %320 = arith.addf %316, %319 : vector<16x8xf32>
    %c4_193 = arith.constant 4 : index
    %c0_194 = arith.constant 0 : index
    %c0_195 = arith.constant 0 : index
    %321 = vector.load %arg10[%c4_193, %c0_194, %c0_195] : memref<8x32x8xbf16, #tpu.memory_space<vmem>>, vector<1x32x8xbf16>
    %322 = vector.shape_cast %321 : vector<1x32x8xbf16> to vector<32x8xbf16>
    %cst_196 = arith.constant dense<0.000000e+00> : vector<16x8xf32>
    %323 = tpu.matmul %303, %322, %cst_196 {dimension_numbers = #tpu.dot_dimension_numbers<[1], [0], [0], [1], [0, 0, 1, 1], [], []>} : vector<16x32xbf16>, vector<32x8xbf16>, vector<16x8xf32> -> vector<16x8xf32>
    %c4_197 = arith.constant 4 : index
    %c0_198 = arith.constant 0 : index
    %c0_199 = arith.constant 0 : index
    %324 = vector.load %arg13[%c4_197, %c0_198, %c0_199] : memref<8x1x8xf32, #tpu.memory_space<vmem>>, vector<1x1x8xf32>
    %325 = vector.shape_cast %324 : vector<1x1x8xf32> to vector<1x8xf32>
    %326 = vector.broadcast %325 : vector<1x8xf32> to vector<16x8xf32>
    %327 = arith.addf %323, %326 : vector<16x8xf32>
    %328 = vector.shape_cast %313 : vector<16x8xf32> to vector<2x8x8xf32>
    %329 = arith.truncf %328 : vector<2x8x8xf32> to vector<2x8x8xbf16>
    %330 = vector.shape_cast %320 : vector<16x8xf32> to vector<2x8x8xf32>
    %331 = arith.truncf %330 : vector<2x8x8xf32> to vector<2x8x8xbf16>
    %332 = vector.shape_cast %327 : vector<16x8xf32> to vector<2x8x8xf32>
    %333 = arith.truncf %332 : vector<2x8x8xf32> to vector<2x8x8xbf16>
    %cst_200 = arith.constant dense<0.000000e+00> : vector<2x8x8xf32>
    %334 = tpu.matmul %329, %331, %cst_200 {dimension_numbers = #tpu.dot_dimension_numbers<[2], [2], [1], [1], [0, 0, 0, 1, 1, 1], [0], [0]>} : vector<2x8x8xbf16>, vector<2x8x8xbf16>, vector<2x8x8xf32> -> vector<2x8x8xf32>
    %335 = arith.addf %334, %32 : vector<2x8x8xf32>
    %cst_201 = arith.constant dense<0xFF800000> : vector<2x8xf32>
    %336 = vector.multi_reduction <maximumf>, %335, %cst_201 [2] : vector<2x8x8xf32> to vector<2x8xf32>
    %337 = vector.shape_cast %336 : vector<2x8xf32> to vector<2x8x1xf32>
    %338 = vector.broadcast %337 : vector<2x8x1xf32> to vector<2x8x8xf32>
    %339 = arith.subf %335, %338 : vector<2x8x8xf32>
    %340 = math.exp %339 : vector<2x8x8xf32>
    %cst_202 = arith.constant dense<0.000000e+00> : vector<2x8xf32>
    %341 = vector.multi_reduction <add>, %340, %cst_202 [2] : vector<2x8x8xf32> to vector<2x8xf32>
    %342 = vector.shape_cast %341 : vector<2x8xf32> to vector<2x8x1xf32>
    %343 = tpu.reciprocal %342 {approx = true} : vector<2x8x1xf32> -> vector<2x8x1xf32>
    %344 = vector.broadcast %343 : vector<2x8x1xf32> to vector<2x8x8xf32>
    %345 = arith.mulf %340, %344 : vector<2x8x8xf32>
    %346 = arith.truncf %345 : vector<2x8x8xf32> to vector<2x8x8xbf16>
    %cst_203 = arith.constant dense<0.000000e+00> : vector<2x8x8xf32>
    %347 = tpu.matmul %346, %333, %cst_203 {dimension_numbers = #tpu.dot_dimension_numbers<[2], [1], [1], [2], [0, 0, 0, 1, 1, 2], [0], [0]>} : vector<2x8x8xbf16>, vector<2x8x8xbf16>, vector<2x8x8xf32> -> vector<2x8x8xf32>
    %348 = vector.shape_cast %347 : vector<2x8x8xf32> to vector<16x8xf32>
    %349 = arith.truncf %348 : vector<16x8xf32> to vector<16x8xbf16>
    %c4_204 = arith.constant 4 : index
    %c0_205 = arith.constant 0 : index
    %c0_206 = arith.constant 0 : index
    %350 = vector.load %arg14[%c4_204, %c0_205, %c0_206] : memref<8x8x32xbf16, #tpu.memory_space<vmem>>, vector<1x8x32xbf16>
    %351 = vector.shape_cast %350 : vector<1x8x32xbf16> to vector<8x32xbf16>
    %cst_207 = arith.constant dense<0.000000e+00> : vector<16x32xf32>
    %352 = tpu.matmul %349, %351, %cst_207 {dimension_numbers = #tpu.dot_dimension_numbers<[1], [0], [0], [1], [0, 0, 1, 1], [], []>} : vector<16x8xbf16>, vector<8x32xbf16>, vector<16x32xf32> -> vector<16x32xf32>
    %353 = arith.addf %304, %352 : vector<16x32xf32>
    %c5 = arith.constant 5 : index
    %c0_208 = arith.constant 0 : index
    %c0_209 = arith.constant 0 : index
    %354 = vector.load %arg8[%c5, %c0_208, %c0_209] : memref<8x32x8xbf16, #tpu.memory_space<vmem>>, vector<1x32x8xbf16>
    %355 = vector.shape_cast %354 : vector<1x32x8xbf16> to vector<32x8xbf16>
    %cst_210 = arith.constant dense<0.000000e+00> : vector<16x8xf32>
    %356 = tpu.matmul %303, %355, %cst_210 {dimension_numbers = #tpu.dot_dimension_numbers<[1], [0], [0], [1], [0, 0, 1, 1], [], []>} : vector<16x32xbf16>, vector<32x8xbf16>, vector<16x8xf32> -> vector<16x8xf32>
    %c5_211 = arith.constant 5 : index
    %c0_212 = arith.constant 0 : index
    %c0_213 = arith.constant 0 : index
    %357 = vector.load %arg11[%c5_211, %c0_212, %c0_213] : memref<8x1x8xf32, #tpu.memory_space<vmem>>, vector<1x1x8xf32>
    %358 = vector.shape_cast %357 : vector<1x1x8xf32> to vector<1x8xf32>
    %359 = vector.broadcast %358 : vector<1x8xf32> to vector<16x8xf32>
    %360 = arith.addf %356, %359 : vector<16x8xf32>
    %cst_214 = arith.constant 0.353553385 : f32
    %361 = vector.broadcast %cst_214 : f32 to vector<16x8xf32>
    %362 = arith.mulf %360, %361 : vector<16x8xf32>
    %c5_215 = arith.constant 5 : index
    %c0_216 = arith.constant 0 : index
    %c0_217 = arith.constant 0 : index
    %363 = vector.load %arg9[%c5_215, %c0_216, %c0_217] : memref<8x32x8xbf16, #tpu.memory_space<vmem>>, vector<1x32x8xbf16>
    %364 = vector.shape_cast %363 : vector<1x32x8xbf16> to vector<32x8xbf16>
    %cst_218 = arith.constant dense<0.000000e+00> : vector<16x8xf32>
    %365 = tpu.matmul %303, %364, %cst_218 {dimension_numbers = #tpu.dot_dimension_numbers<[1], [0], [0], [1], [0, 0, 1, 1], [], []>} : vector<16x32xbf16>, vector<32x8xbf16>, vector<16x8xf32> -> vector<16x8xf32>
    %c5_219 = arith.constant 5 : index
    %c0_220 = arith.constant 0 : index
    %c0_221 = arith.constant 0 : index
    %366 = vector.load %arg12[%c5_219, %c0_220, %c0_221] : memref<8x1x8xf32, #tpu.memory_space<vmem>>, vector<1x1x8xf32>
    %367 = vector.shape_cast %366 : vector<1x1x8xf32> to vector<1x8xf32>
    %368 = vector.broadcast %367 : vector<1x8xf32> to vector<16x8xf32>
    %369 = arith.addf %365, %368 : vector<16x8xf32>
    %c5_222 = arith.constant 5 : index
    %c0_223 = arith.constant 0 : index
    %c0_224 = arith.constant 0 : index
    %370 = vector.load %arg10[%c5_222, %c0_223, %c0_224] : memref<8x32x8xbf16, #tpu.memory_space<vmem>>, vector<1x32x8xbf16>
    %371 = vector.shape_cast %370 : vector<1x32x8xbf16> to vector<32x8xbf16>
    %cst_225 = arith.constant dense<0.000000e+00> : vector<16x8xf32>
    %372 = tpu.matmul %303, %371, %cst_225 {dimension_numbers = #tpu.dot_dimension_numbers<[1], [0], [0], [1], [0, 0, 1, 1], [], []>} : vector<16x32xbf16>, vector<32x8xbf16>, vector<16x8xf32> -> vector<16x8xf32>
    %c5_226 = arith.constant 5 : index
    %c0_227 = arith.constant 0 : index
    %c0_228 = arith.constant 0 : index
    %373 = vector.load %arg13[%c5_226, %c0_227, %c0_228] : memref<8x1x8xf32, #tpu.memory_space<vmem>>, vector<1x1x8xf32>
    %374 = vector.shape_cast %373 : vector<1x1x8xf32> to vector<1x8xf32>
    %375 = vector.broadcast %374 : vector<1x8xf32> to vector<16x8xf32>
    %376 = arith.addf %372, %375 : vector<16x8xf32>
    %377 = vector.shape_cast %362 : vector<16x8xf32> to vector<2x8x8xf32>
    %378 = arith.truncf %377 : vector<2x8x8xf32> to vector<2x8x8xbf16>
    %379 = vector.shape_cast %369 : vector<16x8xf32> to vector<2x8x8xf32>
    %380 = arith.truncf %379 : vector<2x8x8xf32> to vector<2x8x8xbf16>
    %381 = vector.shape_cast %376 : vector<16x8xf32> to vector<2x8x8xf32>
    %382 = arith.truncf %381 : vector<2x8x8xf32> to vector<2x8x8xbf16>
    %cst_229 = arith.constant dense<0.000000e+00> : vector<2x8x8xf32>
    %383 = tpu.matmul %378, %380, %cst_229 {dimension_numbers = #tpu.dot_dimension_numbers<[2], [2], [1], [1], [0, 0, 0, 1, 1, 1], [0], [0]>} : vector<2x8x8xbf16>, vector<2x8x8xbf16>, vector<2x8x8xf32> -> vector<2x8x8xf32>
    %384 = arith.addf %383, %32 : vector<2x8x8xf32>
    %cst_230 = arith.constant dense<0xFF800000> : vector<2x8xf32>
    %385 = vector.multi_reduction <maximumf>, %384, %cst_230 [2] : vector<2x8x8xf32> to vector<2x8xf32>
    %386 = vector.shape_cast %385 : vector<2x8xf32> to vector<2x8x1xf32>
    %387 = vector.broadcast %386 : vector<2x8x1xf32> to vector<2x8x8xf32>
    %388 = arith.subf %384, %387 : vector<2x8x8xf32>
    %389 = math.exp %388 : vector<2x8x8xf32>
    %cst_231 = arith.constant dense<0.000000e+00> : vector<2x8xf32>
    %390 = vector.multi_reduction <add>, %389, %cst_231 [2] : vector<2x8x8xf32> to vector<2x8xf32>
    %391 = vector.shape_cast %390 : vector<2x8xf32> to vector<2x8x1xf32>
    %392 = tpu.reciprocal %391 {approx = true} : vector<2x8x1xf32> -> vector<2x8x1xf32>
    %393 = vector.broadcast %392 : vector<2x8x1xf32> to vector<2x8x8xf32>
    %394 = arith.mulf %389, %393 : vector<2x8x8xf32>
    %395 = arith.truncf %394 : vector<2x8x8xf32> to vector<2x8x8xbf16>
    %cst_232 = arith.constant dense<0.000000e+00> : vector<2x8x8xf32>
    %396 = tpu.matmul %395, %382, %cst_232 {dimension_numbers = #tpu.dot_dimension_numbers<[2], [1], [1], [2], [0, 0, 0, 1, 1, 2], [0], [0]>} : vector<2x8x8xbf16>, vector<2x8x8xbf16>, vector<2x8x8xf32> -> vector<2x8x8xf32>
    %397 = vector.shape_cast %396 : vector<2x8x8xf32> to vector<16x8xf32>
    %398 = arith.truncf %397 : vector<16x8xf32> to vector<16x8xbf16>
    %c5_233 = arith.constant 5 : index
    %c0_234 = arith.constant 0 : index
    %c0_235 = arith.constant 0 : index
    %399 = vector.load %arg14[%c5_233, %c0_234, %c0_235] : memref<8x8x32xbf16, #tpu.memory_space<vmem>>, vector<1x8x32xbf16>
    %400 = vector.shape_cast %399 : vector<1x8x32xbf16> to vector<8x32xbf16>
    %cst_236 = arith.constant dense<0.000000e+00> : vector<16x32xf32>
    %401 = tpu.matmul %398, %400, %cst_236 {dimension_numbers = #tpu.dot_dimension_numbers<[1], [0], [0], [1], [0, 0, 1, 1], [], []>} : vector<16x8xbf16>, vector<8x32xbf16>, vector<16x32xf32> -> vector<16x32xf32>
    %402 = arith.addf %353, %401 : vector<16x32xf32>
    %c6 = arith.constant 6 : index
    %c0_237 = arith.constant 0 : index
    %c0_238 = arith.constant 0 : index
    %403 = vector.load %arg8[%c6, %c0_237, %c0_238] : memref<8x32x8xbf16, #tpu.memory_space<vmem>>, vector<1x32x8xbf16>
    %404 = vector.shape_cast %403 : vector<1x32x8xbf16> to vector<32x8xbf16>
    %cst_239 = arith.constant dense<0.000000e+00> : vector<16x8xf32>
    %405 = tpu.matmul %303, %404, %cst_239 {dimension_numbers = #tpu.dot_dimension_numbers<[1], [0], [0], [1], [0, 0, 1, 1], [], []>} : vector<16x32xbf16>, vector<32x8xbf16>, vector<16x8xf32> -> vector<16x8xf32>
    %c6_240 = arith.constant 6 : index
    %c0_241 = arith.constant 0 : index
    %c0_242 = arith.constant 0 : index
    %406 = vector.load %arg11[%c6_240, %c0_241, %c0_242] : memref<8x1x8xf32, #tpu.memory_space<vmem>>, vector<1x1x8xf32>
    %407 = vector.shape_cast %406 : vector<1x1x8xf32> to vector<1x8xf32>
    %408 = vector.broadcast %407 : vector<1x8xf32> to vector<16x8xf32>
    %409 = arith.addf %405, %408 : vector<16x8xf32>
    %cst_243 = arith.constant 0.353553385 : f32
    %410 = vector.broadcast %cst_243 : f32 to vector<16x8xf32>
    %411 = arith.mulf %409, %410 : vector<16x8xf32>
    %c6_244 = arith.constant 6 : index
    %c0_245 = arith.constant 0 : index
    %c0_246 = arith.constant 0 : index
    %412 = vector.load %arg9[%c6_244, %c0_245, %c0_246] : memref<8x32x8xbf16, #tpu.memory_space<vmem>>, vector<1x32x8xbf16>
    %413 = vector.shape_cast %412 : vector<1x32x8xbf16> to vector<32x8xbf16>
    %cst_247 = arith.constant dense<0.000000e+00> : vector<16x8xf32>
    %414 = tpu.matmul %303, %413, %cst_247 {dimension_numbers = #tpu.dot_dimension_numbers<[1], [0], [0], [1], [0, 0, 1, 1], [], []>} : vector<16x32xbf16>, vector<32x8xbf16>, vector<16x8xf32> -> vector<16x8xf32>
    %c6_248 = arith.constant 6 : index
    %c0_249 = arith.constant 0 : index
    %c0_250 = arith.constant 0 : index
    %415 = vector.load %arg12[%c6_248, %c0_249, %c0_250] : memref<8x1x8xf32, #tpu.memory_space<vmem>>, vector<1x1x8xf32>
    %416 = vector.shape_cast %415 : vector<1x1x8xf32> to vector<1x8xf32>
    %417 = vector.broadcast %416 : vector<1x8xf32> to vector<16x8xf32>
    %418 = arith.addf %414, %417 : vector<16x8xf32>
    %c6_251 = arith.constant 6 : index
    %c0_252 = arith.constant 0 : index
    %c0_253 = arith.constant 0 : index
    %419 = vector.load %arg10[%c6_251, %c0_252, %c0_253] : memref<8x32x8xbf16, #tpu.memory_space<vmem>>, vector<1x32x8xbf16>
    %420 = vector.shape_cast %419 : vector<1x32x8xbf16> to vector<32x8xbf16>
    %cst_254 = arith.constant dense<0.000000e+00> : vector<16x8xf32>
    %421 = tpu.matmul %303, %420, %cst_254 {dimension_numbers = #tpu.dot_dimension_numbers<[1], [0], [0], [1], [0, 0, 1, 1], [], []>} : vector<16x32xbf16>, vector<32x8xbf16>, vector<16x8xf32> -> vector<16x8xf32>
    %c6_255 = arith.constant 6 : index
    %c0_256 = arith.constant 0 : index
    %c0_257 = arith.constant 0 : index
    %422 = vector.load %arg13[%c6_255, %c0_256, %c0_257] : memref<8x1x8xf32, #tpu.memory_space<vmem>>, vector<1x1x8xf32>
    %423 = vector.shape_cast %422 : vector<1x1x8xf32> to vector<1x8xf32>
    %424 = vector.broadcast %423 : vector<1x8xf32> to vector<16x8xf32>
    %425 = arith.addf %421, %424 : vector<16x8xf32>
    %426 = vector.shape_cast %411 : vector<16x8xf32> to vector<2x8x8xf32>
    %427 = arith.truncf %426 : vector<2x8x8xf32> to vector<2x8x8xbf16>
    %428 = vector.shape_cast %418 : vector<16x8xf32> to vector<2x8x8xf32>
    %429 = arith.truncf %428 : vector<2x8x8xf32> to vector<2x8x8xbf16>
    %430 = vector.shape_cast %425 : vector<16x8xf32> to vector<2x8x8xf32>
    %431 = arith.truncf %430 : vector<2x8x8xf32> to vector<2x8x8xbf16>
    %cst_258 = arith.constant dense<0.000000e+00> : vector<2x8x8xf32>
    %432 = tpu.matmul %427, %429, %cst_258 {dimension_numbers = #tpu.dot_dimension_numbers<[2], [2], [1], [1], [0, 0, 0, 1, 1, 1], [0], [0]>} : vector<2x8x8xbf16>, vector<2x8x8xbf16>, vector<2x8x8xf32> -> vector<2x8x8xf32>
    %433 = arith.addf %432, %32 : vector<2x8x8xf32>
    %cst_259 = arith.constant dense<0xFF800000> : vector<2x8xf32>
    %434 = vector.multi_reduction <maximumf>, %433, %cst_259 [2] : vector<2x8x8xf32> to vector<2x8xf32>
    %435 = vector.shape_cast %434 : vector<2x8xf32> to vector<2x8x1xf32>
    %436 = vector.broadcast %435 : vector<2x8x1xf32> to vector<2x8x8xf32>
    %437 = arith.subf %433, %436 : vector<2x8x8xf32>
    %438 = math.exp %437 : vector<2x8x8xf32>
    %cst_260 = arith.constant dense<0.000000e+00> : vector<2x8xf32>
    %439 = vector.multi_reduction <add>, %438, %cst_260 [2] : vector<2x8x8xf32> to vector<2x8xf32>
    %440 = vector.shape_cast %439 : vector<2x8xf32> to vector<2x8x1xf32>
    %441 = tpu.reciprocal %440 {approx = true} : vector<2x8x1xf32> -> vector<2x8x1xf32>
    %442 = vector.broadcast %441 : vector<2x8x1xf32> to vector<2x8x8xf32>
    %443 = arith.mulf %438, %442 : vector<2x8x8xf32>
    %444 = arith.truncf %443 : vector<2x8x8xf32> to vector<2x8x8xbf16>
    %cst_261 = arith.constant dense<0.000000e+00> : vector<2x8x8xf32>
    %445 = tpu.matmul %444, %431, %cst_261 {dimension_numbers = #tpu.dot_dimension_numbers<[2], [1], [1], [2], [0, 0, 0, 1, 1, 2], [0], [0]>} : vector<2x8x8xbf16>, vector<2x8x8xbf16>, vector<2x8x8xf32> -> vector<2x8x8xf32>
    %446 = vector.shape_cast %445 : vector<2x8x8xf32> to vector<16x8xf32>
    %447 = arith.truncf %446 : vector<16x8xf32> to vector<16x8xbf16>
    %c6_262 = arith.constant 6 : index
    %c0_263 = arith.constant 0 : index
    %c0_264 = arith.constant 0 : index
    %448 = vector.load %arg14[%c6_262, %c0_263, %c0_264] : memref<8x8x32xbf16, #tpu.memory_space<vmem>>, vector<1x8x32xbf16>
    %449 = vector.shape_cast %448 : vector<1x8x32xbf16> to vector<8x32xbf16>
    %cst_265 = arith.constant dense<0.000000e+00> : vector<16x32xf32>
    %450 = tpu.matmul %447, %449, %cst_265 {dimension_numbers = #tpu.dot_dimension_numbers<[1], [0], [0], [1], [0, 0, 1, 1], [], []>} : vector<16x8xbf16>, vector<8x32xbf16>, vector<16x32xf32> -> vector<16x32xf32>
    %451 = arith.addf %402, %450 : vector<16x32xf32>
    %c7 = arith.constant 7 : index
    %c0_266 = arith.constant 0 : index
    %c0_267 = arith.constant 0 : index
    %452 = vector.load %arg8[%c7, %c0_266, %c0_267] : memref<8x32x8xbf16, #tpu.memory_space<vmem>>, vector<1x32x8xbf16>
    %453 = vector.shape_cast %452 : vector<1x32x8xbf16> to vector<32x8xbf16>
    %cst_268 = arith.constant dense<0.000000e+00> : vector<16x8xf32>
    %454 = tpu.matmul %303, %453, %cst_268 {dimension_numbers = #tpu.dot_dimension_numbers<[1], [0], [0], [1], [0, 0, 1, 1], [], []>} : vector<16x32xbf16>, vector<32x8xbf16>, vector<16x8xf32> -> vector<16x8xf32>
    %c7_269 = arith.constant 7 : index
    %c0_270 = arith.constant 0 : index
    %c0_271 = arith.constant 0 : index
    %455 = vector.load %arg11[%c7_269, %c0_270, %c0_271] : memref<8x1x8xf32, #tpu.memory_space<vmem>>, vector<1x1x8xf32>
    %456 = vector.shape_cast %455 : vector<1x1x8xf32> to vector<1x8xf32>
    %457 = vector.broadcast %456 : vector<1x8xf32> to vector<16x8xf32>
    %458 = arith.addf %454, %457 : vector<16x8xf32>
    %cst_272 = arith.constant 0.353553385 : f32
    %459 = vector.broadcast %cst_272 : f32 to vector<16x8xf32>
    %460 = arith.mulf %458, %459 : vector<16x8xf32>
    %c7_273 = arith.constant 7 : index
    %c0_274 = arith.constant 0 : index
    %c0_275 = arith.constant 0 : index
    %461 = vector.load %arg9[%c7_273, %c0_274, %c0_275] : memref<8x32x8xbf16, #tpu.memory_space<vmem>>, vector<1x32x8xbf16>
    %462 = vector.shape_cast %461 : vector<1x32x8xbf16> to vector<32x8xbf16>
    %cst_276 = arith.constant dense<0.000000e+00> : vector<16x8xf32>
    %463 = tpu.matmul %303, %462, %cst_276 {dimension_numbers = #tpu.dot_dimension_numbers<[1], [0], [0], [1], [0, 0, 1, 1], [], []>} : vector<16x32xbf16>, vector<32x8xbf16>, vector<16x8xf32> -> vector<16x8xf32>
    %c7_277 = arith.constant 7 : index
    %c0_278 = arith.constant 0 : index
    %c0_279 = arith.constant 0 : index
    %464 = vector.load %arg12[%c7_277, %c0_278, %c0_279] : memref<8x1x8xf32, #tpu.memory_space<vmem>>, vector<1x1x8xf32>
    %465 = vector.shape_cast %464 : vector<1x1x8xf32> to vector<1x8xf32>
    %466 = vector.broadcast %465 : vector<1x8xf32> to vector<16x8xf32>
    %467 = arith.addf %463, %466 : vector<16x8xf32>
    %c7_280 = arith.constant 7 : index
    %c0_281 = arith.constant 0 : index
    %c0_282 = arith.constant 0 : index
    %468 = vector.load %arg10[%c7_280, %c0_281, %c0_282] : memref<8x32x8xbf16, #tpu.memory_space<vmem>>, vector<1x32x8xbf16>
    %469 = vector.shape_cast %468 : vector<1x32x8xbf16> to vector<32x8xbf16>
    %cst_283 = arith.constant dense<0.000000e+00> : vector<16x8xf32>
    %470 = tpu.matmul %303, %469, %cst_283 {dimension_numbers = #tpu.dot_dimension_numbers<[1], [0], [0], [1], [0, 0, 1, 1], [], []>} : vector<16x32xbf16>, vector<32x8xbf16>, vector<16x8xf32> -> vector<16x8xf32>
    %c7_284 = arith.constant 7 : index
    %c0_285 = arith.constant 0 : index
    %c0_286 = arith.constant 0 : index
    %471 = vector.load %arg13[%c7_284, %c0_285, %c0_286] : memref<8x1x8xf32, #tpu.memory_space<vmem>>, vector<1x1x8xf32>
    %472 = vector.shape_cast %471 : vector<1x1x8xf32> to vector<1x8xf32>
    %473 = vector.broadcast %472 : vector<1x8xf32> to vector<16x8xf32>
    %474 = arith.addf %470, %473 : vector<16x8xf32>
    %475 = vector.shape_cast %460 : vector<16x8xf32> to vector<2x8x8xf32>
    %476 = arith.truncf %475 : vector<2x8x8xf32> to vector<2x8x8xbf16>
    %477 = vector.shape_cast %467 : vector<16x8xf32> to vector<2x8x8xf32>
    %478 = arith.truncf %477 : vector<2x8x8xf32> to vector<2x8x8xbf16>
    %479 = vector.shape_cast %474 : vector<16x8xf32> to vector<2x8x8xf32>
    %480 = arith.truncf %479 : vector<2x8x8xf32> to vector<2x8x8xbf16>
    %cst_287 = arith.constant dense<0.000000e+00> : vector<2x8x8xf32>
    %481 = tpu.matmul %476, %478, %cst_287 {dimension_numbers = #tpu.dot_dimension_numbers<[2], [2], [1], [1], [0, 0, 0, 1, 1, 1], [0], [0]>} : vector<2x8x8xbf16>, vector<2x8x8xbf16>, vector<2x8x8xf32> -> vector<2x8x8xf32>
    %482 = arith.addf %481, %32 : vector<2x8x8xf32>
    %cst_288 = arith.constant dense<0xFF800000> : vector<2x8xf32>
    %483 = vector.multi_reduction <maximumf>, %482, %cst_288 [2] : vector<2x8x8xf32> to vector<2x8xf32>
    %484 = vector.shape_cast %483 : vector<2x8xf32> to vector<2x8x1xf32>
    %485 = vector.broadcast %484 : vector<2x8x1xf32> to vector<2x8x8xf32>
    %486 = arith.subf %482, %485 : vector<2x8x8xf32>
    %487 = math.exp %486 : vector<2x8x8xf32>
    %cst_289 = arith.constant dense<0.000000e+00> : vector<2x8xf32>
    %488 = vector.multi_reduction <add>, %487, %cst_289 [2] : vector<2x8x8xf32> to vector<2x8xf32>
    %489 = vector.shape_cast %488 : vector<2x8xf32> to vector<2x8x1xf32>
    %490 = tpu.reciprocal %489 {approx = true} : vector<2x8x1xf32> -> vector<2x8x1xf32>
    %491 = vector.broadcast %490 : vector<2x8x1xf32> to vector<2x8x8xf32>
    %492 = arith.mulf %487, %491 : vector<2x8x8xf32>
    %493 = arith.truncf %492 : vector<2x8x8xf32> to vector<2x8x8xbf16>
    %cst_290 = arith.constant dense<0.000000e+00> : vector<2x8x8xf32>
    %494 = tpu.matmul %493, %480, %cst_290 {dimension_numbers = #tpu.dot_dimension_numbers<[2], [1], [1], [2], [0, 0, 0, 1, 1, 2], [0], [0]>} : vector<2x8x8xbf16>, vector<2x8x8xbf16>, vector<2x8x8xf32> -> vector<2x8x8xf32>
    %495 = vector.shape_cast %494 : vector<2x8x8xf32> to vector<16x8xf32>
    %496 = arith.truncf %495 : vector<16x8xf32> to vector<16x8xbf16>
    %c7_291 = arith.constant 7 : index
    %c0_292 = arith.constant 0 : index
    %c0_293 = arith.constant 0 : index
    %497 = vector.load %arg14[%c7_291, %c0_292, %c0_293] : memref<8x8x32xbf16, #tpu.memory_space<vmem>>, vector<1x8x32xbf16>
    %498 = vector.shape_cast %497 : vector<1x8x32xbf16> to vector<8x32xbf16>
    %cst_294 = arith.constant dense<0.000000e+00> : vector<16x32xf32>
    %499 = tpu.matmul %496, %498, %cst_294 {dimension_numbers = #tpu.dot_dimension_numbers<[1], [0], [0], [1], [0, 0, 1, 1], [], []>} : vector<16x8xbf16>, vector<8x32xbf16>, vector<16x32xf32> -> vector<16x32xf32>
    %500 = arith.addf %451, %499 : vector<16x32xf32>
    %501 = arith.addf %302, %500 : vector<16x32xf32>
    %c1_295 = arith.constant 1 : index
    %c0_296 = arith.constant 0 : index
    %c0_297 = arith.constant 0 : index
    %502 = vector.load %arg15[%c1_295, %c0_296, %c0_297] : memref<2x1x32xf32, #tpu.memory_space<vmem>>, vector<1x1x32xf32>
    %503 = vector.shape_cast %502 : vector<1x1x32xf32> to vector<1x32xf32>
    %504 = vector.broadcast %503 : vector<1x32xf32> to vector<16x32xf32>
    %505 = arith.addf %501, %504 : vector<16x32xf32>
    %c1_298 = arith.constant 1 : index
    %c0_299 = arith.constant 0 : index
    %c0_300 = arith.constant 0 : index
    %506 = vector.load %arg16[%c1_298, %c0_299, %c0_300] : memref<2x1x32xf32, #tpu.memory_space<vmem>>, vector<1x1x32xf32>
    %507 = vector.shape_cast %506 : vector<1x1x32xf32> to vector<1x32xf32>
    %c1_301 = arith.constant 1 : index
    %c0_302 = arith.constant 0 : index
    %c0_303 = arith.constant 0 : index
    %508 = vector.load %arg17[%c1_301, %c0_302, %c0_303] : memref<2x1x32xf32, #tpu.memory_space<vmem>>, vector<1x1x32xf32>
    %509 = vector.shape_cast %508 : vector<1x1x32xf32> to vector<1x32xf32>
    %cst_304 = arith.constant dense<0.000000e+00> : vector<16xf32>
    %510 = vector.multi_reduction <add>, %505, %cst_304 [1] : vector<16x32xf32> to vector<16xf32>
    %511 = vector.shape_cast %510 : vector<16xf32> to vector<16x1xf32>
    %cst_305 = arith.constant 3.200000e+01 : f32
    %512 = vector.broadcast %cst_305 : f32 to vector<16x1xf32>
    %513 = arith.divf %511, %512 : vector<16x1xf32>
    %514 = vector.broadcast %513 : vector<16x1xf32> to vector<16x32xf32>
    %515 = arith.subf %505, %514 : vector<16x32xf32>
    %516 = arith.mulf %515, %515 : vector<16x32xf32>
    %cst_306 = arith.constant dense<0.000000e+00> : vector<16xf32>
    %517 = vector.multi_reduction <add>, %516, %cst_306 [1] : vector<16x32xf32> to vector<16xf32>
    %518 = vector.shape_cast %517 : vector<16xf32> to vector<16x1xf32>
    %cst_307 = arith.constant 3.200000e+01 : f32
    %519 = vector.broadcast %cst_307 : f32 to vector<16x1xf32>
    %520 = arith.divf %518, %519 : vector<16x1xf32>
    %cst_308 = arith.constant 9.99999974E-6 : f32
    %521 = vector.broadcast %cst_308 : f32 to vector<16x1xf32>
    %522 = arith.addf %520, %521 : vector<16x1xf32>
    %523 = math.rsqrt %522 : vector<16x1xf32>
    %524 = vector.broadcast %523 : vector<16x1xf32> to vector<16x32xf32>
    %525 = arith.mulf %515, %524 : vector<16x32xf32>
    %526 = vector.broadcast %507 : vector<1x32xf32> to vector<16x32xf32>
    %527 = arith.mulf %525, %526 : vector<16x32xf32>
    %528 = vector.broadcast %509 : vector<1x32xf32> to vector<16x32xf32>
    %529 = arith.addf %527, %528 : vector<16x32xf32>
    %530 = arith.truncf %529 : vector<16x32xf32> to vector<16x32xbf16>
    %c1_309 = arith.constant 1 : index
    %c0_310 = arith.constant 0 : index
    %c0_311 = arith.constant 0 : index
    %531 = vector.load %arg18[%c1_309, %c0_310, %c0_311] : memref<2x32x64xbf16, #tpu.memory_space<vmem>>, vector<1x32x64xbf16>
    %532 = vector.shape_cast %531 : vector<1x32x64xbf16> to vector<32x64xbf16>
    %cst_312 = arith.constant dense<0.000000e+00> : vector<16x64xf32>
    %533 = tpu.matmul %530, %532, %cst_312 {dimension_numbers = #tpu.dot_dimension_numbers<[1], [0], [0], [1], [0, 0, 1, 1], [], []>} : vector<16x32xbf16>, vector<32x64xbf16>, vector<16x64xf32> -> vector<16x64xf32>
    %c1_313 = arith.constant 1 : index
    %c0_314 = arith.constant 0 : index
    %c0_315 = arith.constant 0 : index
    %534 = vector.load %arg19[%c1_313, %c0_314, %c0_315] : memref<2x1x64xf32, #tpu.memory_space<vmem>>, vector<1x1x64xf32>
    %535 = vector.shape_cast %534 : vector<1x1x64xf32> to vector<1x64xf32>
    %536 = vector.broadcast %535 : vector<1x64xf32> to vector<16x64xf32>
    %537 = arith.addf %533, %536 : vector<16x64xf32>
    %cst_316 = arith.constant 0.000000e+00 : f32
    %538 = vector.broadcast %cst_316 : f32 to vector<16x64xf32>
    %539 = arith.maximumf %537, %538 : vector<16x64xf32>
    %540 = arith.truncf %539 : vector<16x64xf32> to vector<16x64xbf16>
    %c1_317 = arith.constant 1 : index
    %c0_318 = arith.constant 0 : index
    %c0_319 = arith.constant 0 : index
    %541 = vector.load %arg20[%c1_317, %c0_318, %c0_319] : memref<2x64x32xbf16, #tpu.memory_space<vmem>>, vector<1x64x32xbf16>
    %542 = vector.shape_cast %541 : vector<1x64x32xbf16> to vector<64x32xbf16>
    %cst_320 = arith.constant dense<0.000000e+00> : vector<16x32xf32>
    %543 = tpu.matmul %540, %542, %cst_320 {dimension_numbers = #tpu.dot_dimension_numbers<[1], [0], [0], [1], [0, 0, 1, 1], [], []>} : vector<16x64xbf16>, vector<64x32xbf16>, vector<16x32xf32> -> vector<16x32xf32>
    %c1_321 = arith.constant 1 : index
    %c0_322 = arith.constant 0 : index
    %c0_323 = arith.constant 0 : index
    %544 = vector.load %arg21[%c1_321, %c0_322, %c0_323] : memref<2x1x32xf32, #tpu.memory_space<vmem>>, vector<1x1x32xf32>
    %545 = vector.shape_cast %544 : vector<1x1x32xf32> to vector<1x32xf32>
    %546 = vector.broadcast %545 : vector<1x32xf32> to vector<16x32xf32>
    %547 = arith.addf %543, %546 : vector<16x32xf32>
    %548 = arith.addf %529, %547 : vector<16x32xf32>
    %c1_324 = arith.constant 1 : index
    %c0_325 = arith.constant 0 : index
    %c0_326 = arith.constant 0 : index
    %549 = vector.load %arg22[%c1_324, %c0_325, %c0_326] : memref<2x1x32xf32, #tpu.memory_space<vmem>>, vector<1x1x32xf32>
    %550 = vector.shape_cast %549 : vector<1x1x32xf32> to vector<1x32xf32>
    %c1_327 = arith.constant 1 : index
    %c0_328 = arith.constant 0 : index
    %c0_329 = arith.constant 0 : index
    %551 = vector.load %arg23[%c1_327, %c0_328, %c0_329] : memref<2x1x32xf32, #tpu.memory_space<vmem>>, vector<1x1x32xf32>
    %552 = vector.shape_cast %551 : vector<1x1x32xf32> to vector<1x32xf32>
    %cst_330 = arith.constant dense<0.000000e+00> : vector<16xf32>
    %553 = vector.multi_reduction <add>, %548, %cst_330 [1] : vector<16x32xf32> to vector<16xf32>
    %554 = vector.shape_cast %553 : vector<16xf32> to vector<16x1xf32>
    %cst_331 = arith.constant 3.200000e+01 : f32
    %555 = vector.broadcast %cst_331 : f32 to vector<16x1xf32>
    %556 = arith.divf %554, %555 : vector<16x1xf32>
    %557 = vector.broadcast %556 : vector<16x1xf32> to vector<16x32xf32>
    %558 = arith.subf %548, %557 : vector<16x32xf32>
    %559 = arith.mulf %558, %558 : vector<16x32xf32>
    %cst_332 = arith.constant dense<0.000000e+00> : vector<16xf32>
    %560 = vector.multi_reduction <add>, %559, %cst_332 [1] : vector<16x32xf32> to vector<16xf32>
    %561 = vector.shape_cast %560 : vector<16xf32> to vector<16x1xf32>
    %cst_333 = arith.constant 3.200000e+01 : f32
    %562 = vector.broadcast %cst_333 : f32 to vector<16x1xf32>
    %563 = arith.divf %561, %562 : vector<16x1xf32>
    %cst_334 = arith.constant 9.99999974E-6 : f32
    %564 = vector.broadcast %cst_334 : f32 to vector<16x1xf32>
    %565 = arith.addf %563, %564 : vector<16x1xf32>
    %566 = math.rsqrt %565 : vector<16x1xf32>
    %567 = vector.broadcast %566 : vector<16x1xf32> to vector<16x32xf32>
    %568 = arith.mulf %558, %567 : vector<16x32xf32>
    %569 = vector.broadcast %550 : vector<1x32xf32> to vector<16x32xf32>
    %570 = arith.mulf %568, %569 : vector<16x32xf32>
    %571 = vector.broadcast %552 : vector<1x32xf32> to vector<16x32xf32>
    %572 = arith.addf %570, %571 : vector<16x32xf32>
    %573 = arith.truncf %572 : vector<16x32xf32> to vector<16x32xbf16>
    %c0_335 = arith.constant 0 : index
    %c0_336 = arith.constant 0 : index
    %574 = vector.load %arg24[%c0_335, %c0_336] : memref<32x128xbf16, #tpu.memory_space<vmem>>, vector<32x128xbf16>
    %cst_337 = arith.constant dense<0.000000e+00> : vector<16x128xf32>
    %575 = tpu.matmul %573, %574, %cst_337 {dimension_numbers = #tpu.dot_dimension_numbers<[1], [0], [0], [1], [0, 0, 1, 1], [], []>} : vector<16x32xbf16>, vector<32x128xbf16>, vector<16x128xf32> -> vector<16x128xf32>
    %c0_338 = arith.constant 0 : index
    %c0_339 = arith.constant 0 : index
    %576 = vector.load %arg25[%c0_338, %c0_339] : memref<1x128xf32, #tpu.memory_space<vmem>>, vector<1x128xf32>
    %577 = vector.broadcast %576 : vector<1x128xf32> to vector<16x128xf32>
    %578 = arith.addf %575, %577 : vector<16x128xf32>
    %579 = vector.shape_cast %578 : vector<16x128xf32> to vector<2x8x128xf32>
    %580 = vector.extract_strided_slice %579 {offsets = [0, 0, 0], sizes = [2, 6, 128], strides = [1, 1, 1]} : vector<2x8x128xf32> to vector<2x6x128xf32>
    %c0_340 = arith.constant 0 : index
    %c0_341 = arith.constant 0 : index
    %c0_342 = arith.constant 0 : index
    %581 = vector.load %arg26[%c0_340, %c0_341, %c0_342] : memref<2x6x128xf32, #tpu.memory_space<vmem>>, vector<2x6x128xf32>
    tpu.vector_store %arg26[%c0_340, %c0_341, %c0_342], %580 {strides = array<i32>} : memref<2x6x128xf32, #tpu.memory_space<vmem>>, vector<2x6x128xf32>,
    return
  }
  func.func @transform_0(%arg0: i32) -> (i32, i32, i32) {
    %c0_i32 = arith.constant 0 : i32
    %c0_i32_0 = arith.constant 0 : i32
    %c0_i32_1 = arith.constant 0 : i32
    %c0_i32_2 = arith.constant 0 : i32
    return %c0_i32, %c0_i32_0, %c0_i32_1 : i32, i32, i32
  }
  func.func @transform_1(%arg0: i32) -> (i32, i32, i32) {
    %c0_i32 = arith.constant 0 : i32
    %c0_i32_0 = arith.constant 0 : i32
    %c0_i32_1 = arith.constant 0 : i32
    %c0_i32_2 = arith.constant 0 : i32
    return %c0_i32, %c0_i32_0, %c0_i32_1 : i32, i32, i32
  }
  func.func @transform_2(%arg0: i32) -> (i32, i32) {
    %c0_i32 = arith.constant 0 : i32
    %c0_i32_0 = arith.constant 0 : i32
    %c0_i32_1 = arith.constant 0 : i32
    return %c0_i32, %c0_i32_0 : i32, i32
  }
  func.func @transform_3(%arg0: i32) -> (i32, i32, i32) {
    %c0_i32 = arith.constant 0 : i32
    %c0_i32_0 = arith.constant 0 : i32
    %c0_i32_1 = arith.constant 0 : i32
    %c0_i32_2 = arith.constant 0 : i32
    return %c0_i32, %c0_i32_0, %c0_i32_1 : i32, i32, i32
  }
  func.func @transform_4(%arg0: i32) -> (i32, i32) {
    %c0_i32 = arith.constant 0 : i32
    %c0_i32_0 = arith.constant 0 : i32
    %c0_i32_1 = arith.constant 0 : i32
    return %c0_i32, %c0_i32_0 : i32, i32
  }
  func.func @transform_5(%arg0: i32) -> (i32, i32) {
    %c0_i32 = arith.constant 0 : i32
    %c0_i32_0 = arith.constant 0 : i32
    %c0_i32_1 = arith.constant 0 : i32
    return %c0_i32, %c0_i32_0 : i32, i32
  }
  func.func @transform_6(%arg0: i32) -> (i32, i32) {
    %c0_i32 = arith.constant 0 : i32
    %c0_i32_0 = arith.constant 0 : i32
    %c0_i32_1 = arith.constant 0 : i32
    return %c0_i32, %c0_i32_0 : i32, i32
  }
  func.func @transform_7(%arg0: i32) -> (i32, i32, i32) {
    %c0_i32 = arith.constant 0 : i32
    %c0_i32_0 = arith.constant 0 : i32
    %c0_i32_1 = arith.constant 0 : i32
    %c0_i32_2 = arith.constant 0 : i32
    return %c0_i32, %c0_i32_0, %c0_i32_1 : i32, i32, i32
  }
  func.func @transform_8(%arg0: i32) -> (i32, i32, i32) {
    %c0_i32 = arith.constant 0 : i32
    %c0_i32_0 = arith.constant 0 : i32
    %c0_i32_1 = arith.constant 0 : i32
    %c0_i32_2 = arith.constant 0 : i32
    return %c0_i32, %c0_i32_0, %c0_i32_1 : i32, i32, i32
  }
  func.func @transform_9(%arg0: i32) -> (i32, i32, i32) {
    %c0_i32 = arith.constant 0 : i32
    %c0_i32_0 = arith.constant 0 : i32
    %c0_i32_1 = arith.constant 0 : i32
    %c0_i32_2 = arith.constant 0 : i32
    return %c0_i32, %c0_i32_0, %c0_i32_1 : i32, i32, i32
  }
  func.func @transform_10(%arg0: i32) -> (i32, i32, i32) {
    %c0_i32 = arith.constant 0 : i32
    %c0_i32_0 = arith.constant 0 : i32
    %c0_i32_1 = arith.constant 0 : i32
    %c0_i32_2 = arith.constant 0 : i32
    return %c0_i32, %c0_i32_0, %c0_i32_1 : i32, i32, i32
  }
  func.func @transform_11(%arg0: i32) -> (i32, i32, i32) {
    %c0_i32 = arith.constant 0 : i32
    %c0_i32_0 = arith.constant 0 : i32
    %c0_i32_1 = arith.constant 0 : i32
    %c0_i32_2 = arith.constant 0 : i32
    return %c0_i32, %c0_i32_0, %c0_i32_1 : i32, i32, i32
  }
  func.func @transform_12(%arg0: i32) -> (i32, i32, i32) {
    %c0_i32 = arith.constant 0 : i32
    %c0_i32_0 = arith.constant 0 : i32
    %c0_i32_1 = arith.constant 0 : i32
    %c0_i32_2 = arith.constant 0 : i32
    return %c0_i32, %c0_i32_0, %c0_i32_1 : i32, i32, i32
  }
  func.func @transform_13(%arg0: i32) -> (i32, i32, i32) {
    %c0_i32 = arith.constant 0 : i32
    %c0_i32_0 = arith.constant 0 : i32
    %c0_i32_1 = arith.constant 0 : i32
    %c0_i32_2 = arith.constant 0 : i32
    return %c0_i32, %c0_i32_0, %c0_i32_1 : i32, i32, i32
  }
  func.func @transform_14(%arg0: i32) -> (i32, i32, i32) {
    %c0_i32 = arith.constant 0 : i32
    %c0_i32_0 = arith.constant 0 : i32
    %c0_i32_1 = arith.constant 0 : i32
    %c0_i32_2 = arith.constant 0 : i32
    return %c0_i32, %c0_i32_0, %c0_i32_1 : i32, i32, i32
  }
  func.func @transform_15(%arg0: i32) -> (i32, i32, i32) {
    %c0_i32 = arith.constant 0 : i32
    %c0_i32_0 = arith.constant 0 : i32
    %c0_i32_1 = arith.constant 0 : i32
    %c0_i32_2 = arith.constant 0 : i32
    return %c0_i32, %c0_i32_0, %c0_i32_1 : i32, i32, i32
  }
  func.func @transform_16(%arg0: i32) -> (i32, i32, i32) {
    %c0_i32 = arith.constant 0 : i32
    %c0_i32_0 = arith.constant 0 : i32
    %c0_i32_1 = arith.constant 0 : i32
    %c0_i32_2 = arith.constant 0 : i32
    return %c0_i32, %c0_i32_0, %c0_i32_1 : i32, i32, i32
  }
  func.func @transform_17(%arg0: i32) -> (i32, i32, i32) {
    %c0_i32 = arith.constant 0 : i32
    %c0_i32_0 = arith.constant 0 : i32
    %c0_i32_1 = arith.constant 0 : i32
    %c0_i32_2 = arith.constant 0 : i32
    return %c0_i32, %c0_i32_0, %c0_i32_1 : i32, i32, i32
  }
  func.func @transform_18(%arg0: i32) -> (i32, i32, i32) {
    %c0_i32 = arith.constant 0 : i32
    %c0_i32_0 = arith.constant 0 : i32
    %c0_i32_1 = arith.constant 0 : i32
    %c0_i32_2 = arith.constant 0 : i32
    return %c0_i32, %c0_i32_0, %c0_i32_1 : i32, i32, i32
  }
  func.func @transform_19(%arg0: i32) -> (i32, i32, i32) {
    %c0_i32 = arith.constant 0 : i32
    %c0_i32_0 = arith.constant 0 : i32
    %c0_i32_1 = arith.constant 0 : i32
    %c0_i32_2 = arith.constant 0 : i32
    return %c0_i32, %c0_i32_0, %c0_i32_1 : i32, i32, i32
  }
  func.func @transform_20(%arg0: i32) -> (i32, i32, i32) {
    %c0_i32 = arith.constant 0 : i32
    %c0_i32_0 = arith.constant 0 : i32
    %c0_i32_1 = arith.constant 0 : i32
    %c0_i32_2 = arith.constant 0 : i32
    return %c0_i32, %c0_i32_0, %c0_i32_1 : i32, i32, i32
  }
  func.func @transform_21(%arg0: i32) -> (i32, i32, i32) {
    %c0_i32 = arith.constant 0 : i32
    %c0_i32_0 = arith.constant 0 : i32
    %c0_i32_1 = arith.constant 0 : i32
    %c0_i32_2 = arith.constant 0 : i32
    return %c0_i32, %c0_i32_0, %c0_i32_1 : i32, i32, i32
  }
  func.func @transform_22(%arg0: i32) -> (i32, i32, i32) {
    %c0_i32 = arith.constant 0 : i32
    %c0_i32_0 = arith.constant 0 : i32
    %c0_i32_1 = arith.constant 0 : i32
    %c0_i32_2 = arith.constant 0 : i32
    return %c0_i32, %c0_i32_0, %c0_i32_1 : i32, i32, i32
  }
  func.func @transform_23(%arg0: i32) -> (i32, i32) {
    %c0_i32 = arith.constant 0 : i32
    %c0_i32_0 = arith.constant 0 : i32
    %c0_i32_1 = arith.constant 0 : i32
    return %c0_i32, %c0_i32_0 : i32, i32
  }
  func.func @transform_24(%arg0: i32) -> (i32, i32) {
    %c0_i32 = arith.constant 0 : i32
    %c0_i32_0 = arith.constant 0 : i32
    %c0_i32_1 = arith.constant 0 : i32
    return %c0_i32, %c0_i32_0 : i32, i32
  }
  func.func @transform_25(%arg0: i32) -> (i32, i32, i32) {
    %c0_i32 = arith.constant 0 : i32
    %c0_i32_0 = arith.constant 0 : i32
    %c0_i32_1 = arith.constant 0 : i32
    %c0_i32_2 = arith.constant 0 : i32
    return %c0_i32, %c0_i32_0, %c0_i32_1 : i32, i32, i32
  }
}

module attributes {stable_mosaic.version = 11 : i64} {
  func.func @_bilstm_emissions_kernel(%arg0: i32, %arg1: memref<6x8x32xf32, #tpu.memory_space<vmem>>, %arg2: memref<32x32xbf16, #tpu.memory_space<vmem>>, %arg3: memref<32x32xbf16, #tpu.memory_space<vmem>>, %arg4: memref<32x32xbf16, #tpu.memory_space<vmem>>, %arg5: memref<32x32xbf16, #tpu.memory_space<vmem>>, %arg6: memref<32x128xbf16, #tpu.memory_space<vmem>>, %arg7: memref<32x128xbf16, #tpu.memory_space<vmem>>, %arg8: memref<1x128xf32, #tpu.memory_space<vmem>>, %arg9: memref<6x2x128xf32, #tpu.memory_space<vmem>>) attributes {dimension_semantics = [#tpu.dimension_semantics<arbitrary>], iteration_bounds = array<i64: 1>, scalar_prefetch = 0 : i64, scratch_operands = 0 : i64, tpu.core_type = #tpu.core_type<tc>, window_params = [{pipeline_mode = #tpu.pipeline_mode<synchronous>, transform_indices = @transform_0, window_bounds = array<i64: 6, 8, 32>}, {pipeline_mode = #tpu.pipeline_mode<synchronous>, transform_indices = @transform_1, window_bounds = array<i64: 32, 32>}, {pipeline_mode = #tpu.pipeline_mode<synchronous>, transform_indices = @transform_2, window_bounds = array<i64: 32, 32>}, {pipeline_mode = #tpu.pipeline_mode<synchronous>, transform_indices = @transform_3, window_bounds = array<i64: 32, 32>}, {pipeline_mode = #tpu.pipeline_mode<synchronous>, transform_indices = @transform_4, window_bounds = array<i64: 32, 32>}, {pipeline_mode = #tpu.pipeline_mode<synchronous>, transform_indices = @transform_5, window_bounds = array<i64: 32, 128>}, {pipeline_mode = #tpu.pipeline_mode<synchronous>, transform_indices = @transform_6, window_bounds = array<i64: 32, 128>}, {pipeline_mode = #tpu.pipeline_mode<synchronous>, transform_indices = @transform_7, window_bounds = array<i64: 1, 128>}, {pipeline_mode = #tpu.pipeline_mode<synchronous>, transform_indices = @transform_8, window_bounds = array<i64: 6, 2, 128>}]} {
    %cst = arith.constant 0.000000e+00 : f32
    %0 = vector.broadcast %cst : f32 to vector<2x32xf32>
    %cst_0 = arith.constant 0.000000e+00 : f32
    %1 = vector.broadcast %cst_0 : f32 to vector<2x32xf32>
    %c0 = arith.constant 0 : index
    %c0_1 = arith.constant 0 : index
    %c0_2 = arith.constant 0 : index
    %2 = vector.load %arg1[%c0, %c0_1, %c0_2] : memref<6x8x32xf32, #tpu.memory_space<vmem>>, vector<1x8x32xf32>
    %3 = vector.shape_cast %2 : vector<1x8x32xf32> to vector<8x32xf32>
    %4 = arith.truncf %0 : vector<2x32xf32> to vector<2x32xbf16>
    %c0_3 = arith.constant 0 : index
    %c0_4 = arith.constant 0 : index
    %5 = vector.load %arg2[%c0_3, %c0_4] : memref<32x32xbf16, #tpu.memory_space<vmem>>, vector<32x32xbf16>
    %cst_5 = arith.constant dense<0.000000e+00> : vector<2x32xf32>
    %6 = tpu.matmul %4, %5, %cst_5 {dimension_numbers = #tpu.dot_dimension_numbers<[1], [0], [0], [1], [0, 0, 1, 1], [], []>} : vector<2x32xbf16>, vector<32x32xbf16>, vector<2x32xf32> -> vector<2x32xf32>
    %c0_6 = arith.constant 0 : index
    %c0_7 = arith.constant 0 : index
    %7 = vector.load %arg3[%c0_6, %c0_7] : memref<32x32xbf16, #tpu.memory_space<vmem>>, vector<32x32xbf16>
    %cst_8 = arith.constant dense<0.000000e+00> : vector<2x32xf32>
    %8 = tpu.matmul %4, %7, %cst_8 {dimension_numbers = #tpu.dot_dimension_numbers<[1], [0], [0], [1], [0, 0, 1, 1], [], []>} : vector<2x32xbf16>, vector<32x32xbf16>, vector<2x32xf32> -> vector<2x32xf32>
    %c0_9 = arith.constant 0 : index
    %c0_10 = arith.constant 0 : index
    %9 = vector.load %arg4[%c0_9, %c0_10] : memref<32x32xbf16, #tpu.memory_space<vmem>>, vector<32x32xbf16>
    %cst_11 = arith.constant dense<0.000000e+00> : vector<2x32xf32>
    %10 = tpu.matmul %4, %9, %cst_11 {dimension_numbers = #tpu.dot_dimension_numbers<[1], [0], [0], [1], [0, 0, 1, 1], [], []>} : vector<2x32xbf16>, vector<32x32xbf16>, vector<2x32xf32> -> vector<2x32xf32>
    %c0_12 = arith.constant 0 : index
    %c0_13 = arith.constant 0 : index
    %11 = vector.load %arg5[%c0_12, %c0_13] : memref<32x32xbf16, #tpu.memory_space<vmem>>, vector<32x32xbf16>
    %cst_14 = arith.constant dense<0.000000e+00> : vector<2x32xf32>
    %12 = tpu.matmul %4, %11, %cst_14 {dimension_numbers = #tpu.dot_dimension_numbers<[1], [0], [0], [1], [0, 0, 1, 1], [], []>} : vector<2x32xbf16>, vector<32x32xbf16>, vector<2x32xf32> -> vector<2x32xf32>
    %13 = vector.extract_strided_slice %3 {offsets = [0, 0], sizes = [2, 32], strides = [1, 1]} : vector<8x32xf32> to vector<2x32xf32>
    %14 = arith.addf %13, %6 : vector<2x32xf32>
    %15 = arith.negf %14 : vector<2x32xf32>
    %16 = math.exp %15 : vector<2x32xf32>
    %cst_15 = arith.constant 1.000000e+00 : f32
    %17 = vector.broadcast %cst_15 : f32 to vector<2x32xf32>
    %18 = arith.addf %17, %16 : vector<2x32xf32>
    %19 = arith.divf %17, %18 : vector<2x32xf32>
    %20 = vector.extract_strided_slice %3 {offsets = [2, 0], sizes = [2, 32], strides = [1, 1]} : vector<8x32xf32> to vector<2x32xf32>
    %21 = arith.addf %20, %8 : vector<2x32xf32>
    %22 = arith.negf %21 : vector<2x32xf32>
    %23 = math.exp %22 : vector<2x32xf32>
    %cst_16 = arith.constant 1.000000e+00 : f32
    %24 = vector.broadcast %cst_16 : f32 to vector<2x32xf32>
    %25 = arith.addf %24, %23 : vector<2x32xf32>
    %26 = arith.divf %24, %25 : vector<2x32xf32>
    %27 = vector.extract_strided_slice %3 {offsets = [4, 0], sizes = [2, 32], strides = [1, 1]} : vector<8x32xf32> to vector<2x32xf32>
    %28 = arith.addf %27, %10 : vector<2x32xf32>
    %29 = math.tanh %28 : vector<2x32xf32>
    %30 = vector.extract_strided_slice %3 {offsets = [6, 0], sizes = [2, 32], strides = [1, 1]} : vector<8x32xf32> to vector<2x32xf32>
    %31 = arith.addf %30, %12 : vector<2x32xf32>
    %32 = arith.negf %31 : vector<2x32xf32>
    %33 = math.exp %32 : vector<2x32xf32>
    %cst_17 = arith.constant 1.000000e+00 : f32
    %34 = vector.broadcast %cst_17 : f32 to vector<2x32xf32>
    %35 = arith.addf %34, %33 : vector<2x32xf32>
    %36 = arith.divf %34, %35 : vector<2x32xf32>
    %37 = arith.mulf %26, %1 : vector<2x32xf32>
    %38 = arith.mulf %19, %29 : vector<2x32xf32>
    %39 = arith.addf %37, %38 : vector<2x32xf32>
    %40 = math.tanh %39 : vector<2x32xf32>
    %41 = arith.mulf %36, %40 : vector<2x32xf32>
    %c1 = arith.constant 1 : index
    %c0_18 = arith.constant 0 : index
    %c0_19 = arith.constant 0 : index
    %42 = vector.load %arg1[%c1, %c0_18, %c0_19] : memref<6x8x32xf32, #tpu.memory_space<vmem>>, vector<1x8x32xf32>
    %43 = vector.shape_cast %42 : vector<1x8x32xf32> to vector<8x32xf32>
    %44 = arith.truncf %41 : vector<2x32xf32> to vector<2x32xbf16>
    %c0_20 = arith.constant 0 : index
    %c0_21 = arith.constant 0 : index
    %45 = vector.load %arg2[%c0_20, %c0_21] : memref<32x32xbf16, #tpu.memory_space<vmem>>, vector<32x32xbf16>
    %cst_22 = arith.constant dense<0.000000e+00> : vector<2x32xf32>
    %46 = tpu.matmul %44, %45, %cst_22 {dimension_numbers = #tpu.dot_dimension_numbers<[1], [0], [0], [1], [0, 0, 1, 1], [], []>} : vector<2x32xbf16>, vector<32x32xbf16>, vector<2x32xf32> -> vector<2x32xf32>
    %c0_23 = arith.constant 0 : index
    %c0_24 = arith.constant 0 : index
    %47 = vector.load %arg3[%c0_23, %c0_24] : memref<32x32xbf16, #tpu.memory_space<vmem>>, vector<32x32xbf16>
    %cst_25 = arith.constant dense<0.000000e+00> : vector<2x32xf32>
    %48 = tpu.matmul %44, %47, %cst_25 {dimension_numbers = #tpu.dot_dimension_numbers<[1], [0], [0], [1], [0, 0, 1, 1], [], []>} : vector<2x32xbf16>, vector<32x32xbf16>, vector<2x32xf32> -> vector<2x32xf32>
    %c0_26 = arith.constant 0 : index
    %c0_27 = arith.constant 0 : index
    %49 = vector.load %arg4[%c0_26, %c0_27] : memref<32x32xbf16, #tpu.memory_space<vmem>>, vector<32x32xbf16>
    %cst_28 = arith.constant dense<0.000000e+00> : vector<2x32xf32>
    %50 = tpu.matmul %44, %49, %cst_28 {dimension_numbers = #tpu.dot_dimension_numbers<[1], [0], [0], [1], [0, 0, 1, 1], [], []>} : vector<2x32xbf16>, vector<32x32xbf16>, vector<2x32xf32> -> vector<2x32xf32>
    %c0_29 = arith.constant 0 : index
    %c0_30 = arith.constant 0 : index
    %51 = vector.load %arg5[%c0_29, %c0_30] : memref<32x32xbf16, #tpu.memory_space<vmem>>, vector<32x32xbf16>
    %cst_31 = arith.constant dense<0.000000e+00> : vector<2x32xf32>
    %52 = tpu.matmul %44, %51, %cst_31 {dimension_numbers = #tpu.dot_dimension_numbers<[1], [0], [0], [1], [0, 0, 1, 1], [], []>} : vector<2x32xbf16>, vector<32x32xbf16>, vector<2x32xf32> -> vector<2x32xf32>
    %53 = vector.extract_strided_slice %43 {offsets = [0, 0], sizes = [2, 32], strides = [1, 1]} : vector<8x32xf32> to vector<2x32xf32>
    %54 = arith.addf %53, %46 : vector<2x32xf32>
    %55 = arith.negf %54 : vector<2x32xf32>
    %56 = math.exp %55 : vector<2x32xf32>
    %cst_32 = arith.constant 1.000000e+00 : f32
    %57 = vector.broadcast %cst_32 : f32 to vector<2x32xf32>
    %58 = arith.addf %57, %56 : vector<2x32xf32>
    %59 = arith.divf %57, %58 : vector<2x32xf32>
    %60 = vector.extract_strided_slice %43 {offsets = [2, 0], sizes = [2, 32], strides = [1, 1]} : vector<8x32xf32> to vector<2x32xf32>
    %61 = arith.addf %60, %48 : vector<2x32xf32>
    %62 = arith.negf %61 : vector<2x32xf32>
    %63 = math.exp %62 : vector<2x32xf32>
    %cst_33 = arith.constant 1.000000e+00 : f32
    %64 = vector.broadcast %cst_33 : f32 to vector<2x32xf32>
    %65 = arith.addf %64, %63 : vector<2x32xf32>
    %66 = arith.divf %64, %65 : vector<2x32xf32>
    %67 = vector.extract_strided_slice %43 {offsets = [4, 0], sizes = [2, 32], strides = [1, 1]} : vector<8x32xf32> to vector<2x32xf32>
    %68 = arith.addf %67, %50 : vector<2x32xf32>
    %69 = math.tanh %68 : vector<2x32xf32>
    %70 = vector.extract_strided_slice %43 {offsets = [6, 0], sizes = [2, 32], strides = [1, 1]} : vector<8x32xf32> to vector<2x32xf32>
    %71 = arith.addf %70, %52 : vector<2x32xf32>
    %72 = arith.negf %71 : vector<2x32xf32>
    %73 = math.exp %72 : vector<2x32xf32>
    %cst_34 = arith.constant 1.000000e+00 : f32
    %74 = vector.broadcast %cst_34 : f32 to vector<2x32xf32>
    %75 = arith.addf %74, %73 : vector<2x32xf32>
    %76 = arith.divf %74, %75 : vector<2x32xf32>
    %77 = arith.mulf %66, %39 : vector<2x32xf32>
    %78 = arith.mulf %59, %69 : vector<2x32xf32>
    %79 = arith.addf %77, %78 : vector<2x32xf32>
    %80 = math.tanh %79 : vector<2x32xf32>
    %81 = arith.mulf %76, %80 : vector<2x32xf32>
    %c2 = arith.constant 2 : index
    %c0_35 = arith.constant 0 : index
    %c0_36 = arith.constant 0 : index
    %82 = vector.load %arg1[%c2, %c0_35, %c0_36] : memref<6x8x32xf32, #tpu.memory_space<vmem>>, vector<1x8x32xf32>
    %83 = vector.shape_cast %82 : vector<1x8x32xf32> to vector<8x32xf32>
    %84 = arith.truncf %81 : vector<2x32xf32> to vector<2x32xbf16>
    %c0_37 = arith.constant 0 : index
    %c0_38 = arith.constant 0 : index
    %85 = vector.load %arg2[%c0_37, %c0_38] : memref<32x32xbf16, #tpu.memory_space<vmem>>, vector<32x32xbf16>
    %cst_39 = arith.constant dense<0.000000e+00> : vector<2x32xf32>
    %86 = tpu.matmul %84, %85, %cst_39 {dimension_numbers = #tpu.dot_dimension_numbers<[1], [0], [0], [1], [0, 0, 1, 1], [], []>} : vector<2x32xbf16>, vector<32x32xbf16>, vector<2x32xf32> -> vector<2x32xf32>
    %c0_40 = arith.constant 0 : index
    %c0_41 = arith.constant 0 : index
    %87 = vector.load %arg3[%c0_40, %c0_41] : memref<32x32xbf16, #tpu.memory_space<vmem>>, vector<32x32xbf16>
    %cst_42 = arith.constant dense<0.000000e+00> : vector<2x32xf32>
    %88 = tpu.matmul %84, %87, %cst_42 {dimension_numbers = #tpu.dot_dimension_numbers<[1], [0], [0], [1], [0, 0, 1, 1], [], []>} : vector<2x32xbf16>, vector<32x32xbf16>, vector<2x32xf32> -> vector<2x32xf32>
    %c0_43 = arith.constant 0 : index
    %c0_44 = arith.constant 0 : index
    %89 = vector.load %arg4[%c0_43, %c0_44] : memref<32x32xbf16, #tpu.memory_space<vmem>>, vector<32x32xbf16>
    %cst_45 = arith.constant dense<0.000000e+00> : vector<2x32xf32>
    %90 = tpu.matmul %84, %89, %cst_45 {dimension_numbers = #tpu.dot_dimension_numbers<[1], [0], [0], [1], [0, 0, 1, 1], [], []>} : vector<2x32xbf16>, vector<32x32xbf16>, vector<2x32xf32> -> vector<2x32xf32>
    %c0_46 = arith.constant 0 : index
    %c0_47 = arith.constant 0 : index
    %91 = vector.load %arg5[%c0_46, %c0_47] : memref<32x32xbf16, #tpu.memory_space<vmem>>, vector<32x32xbf16>
    %cst_48 = arith.constant dense<0.000000e+00> : vector<2x32xf32>
    %92 = tpu.matmul %84, %91, %cst_48 {dimension_numbers = #tpu.dot_dimension_numbers<[1], [0], [0], [1], [0, 0, 1, 1], [], []>} : vector<2x32xbf16>, vector<32x32xbf16>, vector<2x32xf32> -> vector<2x32xf32>
    %93 = vector.extract_strided_slice %83 {offsets = [0, 0], sizes = [2, 32], strides = [1, 1]} : vector<8x32xf32> to vector<2x32xf32>
    %94 = arith.addf %93, %86 : vector<2x32xf32>
    %95 = arith.negf %94 : vector<2x32xf32>
    %96 = math.exp %95 : vector<2x32xf32>
    %cst_49 = arith.constant 1.000000e+00 : f32
    %97 = vector.broadcast %cst_49 : f32 to vector<2x32xf32>
    %98 = arith.addf %97, %96 : vector<2x32xf32>
    %99 = arith.divf %97, %98 : vector<2x32xf32>
    %100 = vector.extract_strided_slice %83 {offsets = [2, 0], sizes = [2, 32], strides = [1, 1]} : vector<8x32xf32> to vector<2x32xf32>
    %101 = arith.addf %100, %88 : vector<2x32xf32>
    %102 = arith.negf %101 : vector<2x32xf32>
    %103 = math.exp %102 : vector<2x32xf32>
    %cst_50 = arith.constant 1.000000e+00 : f32
    %104 = vector.broadcast %cst_50 : f32 to vector<2x32xf32>
    %105 = arith.addf %104, %103 : vector<2x32xf32>
    %106 = arith.divf %104, %105 : vector<2x32xf32>
    %107 = vector.extract_strided_slice %83 {offsets = [4, 0], sizes = [2, 32], strides = [1, 1]} : vector<8x32xf32> to vector<2x32xf32>
    %108 = arith.addf %107, %90 : vector<2x32xf32>
    %109 = math.tanh %108 : vector<2x32xf32>
    %110 = vector.extract_strided_slice %83 {offsets = [6, 0], sizes = [2, 32], strides = [1, 1]} : vector<8x32xf32> to vector<2x32xf32>
    %111 = arith.addf %110, %92 : vector<2x32xf32>
    %112 = arith.negf %111 : vector<2x32xf32>
    %113 = math.exp %112 : vector<2x32xf32>
    %cst_51 = arith.constant 1.000000e+00 : f32
    %114 = vector.broadcast %cst_51 : f32 to vector<2x32xf32>
    %115 = arith.addf %114, %113 : vector<2x32xf32>
    %116 = arith.divf %114, %115 : vector<2x32xf32>
    %117 = arith.mulf %106, %79 : vector<2x32xf32>
    %118 = arith.mulf %99, %109 : vector<2x32xf32>
    %119 = arith.addf %117, %118 : vector<2x32xf32>
    %120 = math.tanh %119 : vector<2x32xf32>
    %121 = arith.mulf %116, %120 : vector<2x32xf32>
    %c3 = arith.constant 3 : index
    %c0_52 = arith.constant 0 : index
    %c0_53 = arith.constant 0 : index
    %122 = vector.load %arg1[%c3, %c0_52, %c0_53] : memref<6x8x32xf32, #tpu.memory_space<vmem>>, vector<1x8x32xf32>
    %123 = vector.shape_cast %122 : vector<1x8x32xf32> to vector<8x32xf32>
    %124 = arith.truncf %121 : vector<2x32xf32> to vector<2x32xbf16>
    %c0_54 = arith.constant 0 : index
    %c0_55 = arith.constant 0 : index
    %125 = vector.load %arg2[%c0_54, %c0_55] : memref<32x32xbf16, #tpu.memory_space<vmem>>, vector<32x32xbf16>
    %cst_56 = arith.constant dense<0.000000e+00> : vector<2x32xf32>
    %126 = tpu.matmul %124, %125, %cst_56 {dimension_numbers = #tpu.dot_dimension_numbers<[1], [0], [0], [1], [0, 0, 1, 1], [], []>} : vector<2x32xbf16>, vector<32x32xbf16>, vector<2x32xf32> -> vector<2x32xf32>
    %c0_57 = arith.constant 0 : index
    %c0_58 = arith.constant 0 : index
    %127 = vector.load %arg3[%c0_57, %c0_58] : memref<32x32xbf16, #tpu.memory_space<vmem>>, vector<32x32xbf16>
    %cst_59 = arith.constant dense<0.000000e+00> : vector<2x32xf32>
    %128 = tpu.matmul %124, %127, %cst_59 {dimension_numbers = #tpu.dot_dimension_numbers<[1], [0], [0], [1], [0, 0, 1, 1], [], []>} : vector<2x32xbf16>, vector<32x32xbf16>, vector<2x32xf32> -> vector<2x32xf32>
    %c0_60 = arith.constant 0 : index
    %c0_61 = arith.constant 0 : index
    %129 = vector.load %arg4[%c0_60, %c0_61] : memref<32x32xbf16, #tpu.memory_space<vmem>>, vector<32x32xbf16>
    %cst_62 = arith.constant dense<0.000000e+00> : vector<2x32xf32>
    %130 = tpu.matmul %124, %129, %cst_62 {dimension_numbers = #tpu.dot_dimension_numbers<[1], [0], [0], [1], [0, 0, 1, 1], [], []>} : vector<2x32xbf16>, vector<32x32xbf16>, vector<2x32xf32> -> vector<2x32xf32>
    %c0_63 = arith.constant 0 : index
    %c0_64 = arith.constant 0 : index
    %131 = vector.load %arg5[%c0_63, %c0_64] : memref<32x32xbf16, #tpu.memory_space<vmem>>, vector<32x32xbf16>
    %cst_65 = arith.constant dense<0.000000e+00> : vector<2x32xf32>
    %132 = tpu.matmul %124, %131, %cst_65 {dimension_numbers = #tpu.dot_dimension_numbers<[1], [0], [0], [1], [0, 0, 1, 1], [], []>} : vector<2x32xbf16>, vector<32x32xbf16>, vector<2x32xf32> -> vector<2x32xf32>
    %133 = vector.extract_strided_slice %123 {offsets = [0, 0], sizes = [2, 32], strides = [1, 1]} : vector<8x32xf32> to vector<2x32xf32>
    %134 = arith.addf %133, %126 : vector<2x32xf32>
    %135 = arith.negf %134 : vector<2x32xf32>
    %136 = math.exp %135 : vector<2x32xf32>
    %cst_66 = arith.constant 1.000000e+00 : f32
    %137 = vector.broadcast %cst_66 : f32 to vector<2x32xf32>
    %138 = arith.addf %137, %136 : vector<2x32xf32>
    %139 = arith.divf %137, %138 : vector<2x32xf32>
    %140 = vector.extract_strided_slice %123 {offsets = [2, 0], sizes = [2, 32], strides = [1, 1]} : vector<8x32xf32> to vector<2x32xf32>
    %141 = arith.addf %140, %128 : vector<2x32xf32>
    %142 = arith.negf %141 : vector<2x32xf32>
    %143 = math.exp %142 : vector<2x32xf32>
    %cst_67 = arith.constant 1.000000e+00 : f32
    %144 = vector.broadcast %cst_67 : f32 to vector<2x32xf32>
    %145 = arith.addf %144, %143 : vector<2x32xf32>
    %146 = arith.divf %144, %145 : vector<2x32xf32>
    %147 = vector.extract_strided_slice %123 {offsets = [4, 0], sizes = [2, 32], strides = [1, 1]} : vector<8x32xf32> to vector<2x32xf32>
    %148 = arith.addf %147, %130 : vector<2x32xf32>
    %149 = math.tanh %148 : vector<2x32xf32>
    %150 = vector.extract_strided_slice %123 {offsets = [6, 0], sizes = [2, 32], strides = [1, 1]} : vector<8x32xf32> to vector<2x32xf32>
    %151 = arith.addf %150, %132 : vector<2x32xf32>
    %152 = arith.negf %151 : vector<2x32xf32>
    %153 = math.exp %152 : vector<2x32xf32>
    %cst_68 = arith.constant 1.000000e+00 : f32
    %154 = vector.broadcast %cst_68 : f32 to vector<2x32xf32>
    %155 = arith.addf %154, %153 : vector<2x32xf32>
    %156 = arith.divf %154, %155 : vector<2x32xf32>
    %157 = arith.mulf %146, %119 : vector<2x32xf32>
    %158 = arith.mulf %139, %149 : vector<2x32xf32>
    %159 = arith.addf %157, %158 : vector<2x32xf32>
    %160 = math.tanh %159 : vector<2x32xf32>
    %161 = arith.mulf %156, %160 : vector<2x32xf32>
    %c4 = arith.constant 4 : index
    %c0_69 = arith.constant 0 : index
    %c0_70 = arith.constant 0 : index
    %162 = vector.load %arg1[%c4, %c0_69, %c0_70] : memref<6x8x32xf32, #tpu.memory_space<vmem>>, vector<1x8x32xf32>
    %163 = vector.shape_cast %162 : vector<1x8x32xf32> to vector<8x32xf32>
    %164 = arith.truncf %161 : vector<2x32xf32> to vector<2x32xbf16>
    %c0_71 = arith.constant 0 : index
    %c0_72 = arith.constant 0 : index
    %165 = vector.load %arg2[%c0_71, %c0_72] : memref<32x32xbf16, #tpu.memory_space<vmem>>, vector<32x32xbf16>
    %cst_73 = arith.constant dense<0.000000e+00> : vector<2x32xf32>
    %166 = tpu.matmul %164, %165, %cst_73 {dimension_numbers = #tpu.dot_dimension_numbers<[1], [0], [0], [1], [0, 0, 1, 1], [], []>} : vector<2x32xbf16>, vector<32x32xbf16>, vector<2x32xf32> -> vector<2x32xf32>
    %c0_74 = arith.constant 0 : index
    %c0_75 = arith.constant 0 : index
    %167 = vector.load %arg3[%c0_74, %c0_75] : memref<32x32xbf16, #tpu.memory_space<vmem>>, vector<32x32xbf16>
    %cst_76 = arith.constant dense<0.000000e+00> : vector<2x32xf32>
    %168 = tpu.matmul %164, %167, %cst_76 {dimension_numbers = #tpu.dot_dimension_numbers<[1], [0], [0], [1], [0, 0, 1, 1], [], []>} : vector<2x32xbf16>, vector<32x32xbf16>, vector<2x32xf32> -> vector<2x32xf32>
    %c0_77 = arith.constant 0 : index
    %c0_78 = arith.constant 0 : index
    %169 = vector.load %arg4[%c0_77, %c0_78] : memref<32x32xbf16, #tpu.memory_space<vmem>>, vector<32x32xbf16>
    %cst_79 = arith.constant dense<0.000000e+00> : vector<2x32xf32>
    %170 = tpu.matmul %164, %169, %cst_79 {dimension_numbers = #tpu.dot_dimension_numbers<[1], [0], [0], [1], [0, 0, 1, 1], [], []>} : vector<2x32xbf16>, vector<32x32xbf16>, vector<2x32xf32> -> vector<2x32xf32>
    %c0_80 = arith.constant 0 : index
    %c0_81 = arith.constant 0 : index
    %171 = vector.load %arg5[%c0_80, %c0_81] : memref<32x32xbf16, #tpu.memory_space<vmem>>, vector<32x32xbf16>
    %cst_82 = arith.constant dense<0.000000e+00> : vector<2x32xf32>
    %172 = tpu.matmul %164, %171, %cst_82 {dimension_numbers = #tpu.dot_dimension_numbers<[1], [0], [0], [1], [0, 0, 1, 1], [], []>} : vector<2x32xbf16>, vector<32x32xbf16>, vector<2x32xf32> -> vector<2x32xf32>
    %173 = vector.extract_strided_slice %163 {offsets = [0, 0], sizes = [2, 32], strides = [1, 1]} : vector<8x32xf32> to vector<2x32xf32>
    %174 = arith.addf %173, %166 : vector<2x32xf32>
    %175 = arith.negf %174 : vector<2x32xf32>
    %176 = math.exp %175 : vector<2x32xf32>
    %cst_83 = arith.constant 1.000000e+00 : f32
    %177 = vector.broadcast %cst_83 : f32 to vector<2x32xf32>
    %178 = arith.addf %177, %176 : vector<2x32xf32>
    %179 = arith.divf %177, %178 : vector<2x32xf32>
    %180 = vector.extract_strided_slice %163 {offsets = [2, 0], sizes = [2, 32], strides = [1, 1]} : vector<8x32xf32> to vector<2x32xf32>
    %181 = arith.addf %180, %168 : vector<2x32xf32>
    %182 = arith.negf %181 : vector<2x32xf32>
    %183 = math.exp %182 : vector<2x32xf32>
    %cst_84 = arith.constant 1.000000e+00 : f32
    %184 = vector.broadcast %cst_84 : f32 to vector<2x32xf32>
    %185 = arith.addf %184, %183 : vector<2x32xf32>
    %186 = arith.divf %184, %185 : vector<2x32xf32>
    %187 = vector.extract_strided_slice %163 {offsets = [4, 0], sizes = [2, 32], strides = [1, 1]} : vector<8x32xf32> to vector<2x32xf32>
    %188 = arith.addf %187, %170 : vector<2x32xf32>
    %189 = math.tanh %188 : vector<2x32xf32>
    %190 = vector.extract_strided_slice %163 {offsets = [6, 0], sizes = [2, 32], strides = [1, 1]} : vector<8x32xf32> to vector<2x32xf32>
    %191 = arith.addf %190, %172 : vector<2x32xf32>
    %192 = arith.negf %191 : vector<2x32xf32>
    %193 = math.exp %192 : vector<2x32xf32>
    %cst_85 = arith.constant 1.000000e+00 : f32
    %194 = vector.broadcast %cst_85 : f32 to vector<2x32xf32>
    %195 = arith.addf %194, %193 : vector<2x32xf32>
    %196 = arith.divf %194, %195 : vector<2x32xf32>
    %197 = arith.mulf %186, %159 : vector<2x32xf32>
    %198 = arith.mulf %179, %189 : vector<2x32xf32>
    %199 = arith.addf %197, %198 : vector<2x32xf32>
    %200 = math.tanh %199 : vector<2x32xf32>
    %201 = arith.mulf %196, %200 : vector<2x32xf32>
    %c5 = arith.constant 5 : index
    %c0_86 = arith.constant 0 : index
    %c0_87 = arith.constant 0 : index
    %202 = vector.load %arg1[%c5, %c0_86, %c0_87] : memref<6x8x32xf32, #tpu.memory_space<vmem>>, vector<1x8x32xf32>
    %203 = vector.shape_cast %202 : vector<1x8x32xf32> to vector<8x32xf32>
    %204 = arith.truncf %201 : vector<2x32xf32> to vector<2x32xbf16>
    %c0_88 = arith.constant 0 : index
    %c0_89 = arith.constant 0 : index
    %205 = vector.load %arg2[%c0_88, %c0_89] : memref<32x32xbf16, #tpu.memory_space<vmem>>, vector<32x32xbf16>
    %cst_90 = arith.constant dense<0.000000e+00> : vector<2x32xf32>
    %206 = tpu.matmul %204, %205, %cst_90 {dimension_numbers = #tpu.dot_dimension_numbers<[1], [0], [0], [1], [0, 0, 1, 1], [], []>} : vector<2x32xbf16>, vector<32x32xbf16>, vector<2x32xf32> -> vector<2x32xf32>
    %c0_91 = arith.constant 0 : index
    %c0_92 = arith.constant 0 : index
    %207 = vector.load %arg3[%c0_91, %c0_92] : memref<32x32xbf16, #tpu.memory_space<vmem>>, vector<32x32xbf16>
    %cst_93 = arith.constant dense<0.000000e+00> : vector<2x32xf32>
    %208 = tpu.matmul %204, %207, %cst_93 {dimension_numbers = #tpu.dot_dimension_numbers<[1], [0], [0], [1], [0, 0, 1, 1], [], []>} : vector<2x32xbf16>, vector<32x32xbf16>, vector<2x32xf32> -> vector<2x32xf32>
    %c0_94 = arith.constant 0 : index
    %c0_95 = arith.constant 0 : index
    %209 = vector.load %arg4[%c0_94, %c0_95] : memref<32x32xbf16, #tpu.memory_space<vmem>>, vector<32x32xbf16>
    %cst_96 = arith.constant dense<0.000000e+00> : vector<2x32xf32>
    %210 = tpu.matmul %204, %209, %cst_96 {dimension_numbers = #tpu.dot_dimension_numbers<[1], [0], [0], [1], [0, 0, 1, 1], [], []>} : vector<2x32xbf16>, vector<32x32xbf16>, vector<2x32xf32> -> vector<2x32xf32>
    %c0_97 = arith.constant 0 : index
    %c0_98 = arith.constant 0 : index
    %211 = vector.load %arg5[%c0_97, %c0_98] : memref<32x32xbf16, #tpu.memory_space<vmem>>, vector<32x32xbf16>
    %cst_99 = arith.constant dense<0.000000e+00> : vector<2x32xf32>
    %212 = tpu.matmul %204, %211, %cst_99 {dimension_numbers = #tpu.dot_dimension_numbers<[1], [0], [0], [1], [0, 0, 1, 1], [], []>} : vector<2x32xbf16>, vector<32x32xbf16>, vector<2x32xf32> -> vector<2x32xf32>
    %213 = vector.extract_strided_slice %203 {offsets = [0, 0], sizes = [2, 32], strides = [1, 1]} : vector<8x32xf32> to vector<2x32xf32>
    %214 = arith.addf %213, %206 : vector<2x32xf32>
    %215 = arith.negf %214 : vector<2x32xf32>
    %216 = math.exp %215 : vector<2x32xf32>
    %cst_100 = arith.constant 1.000000e+00 : f32
    %217 = vector.broadcast %cst_100 : f32 to vector<2x32xf32>
    %218 = arith.addf %217, %216 : vector<2x32xf32>
    %219 = arith.divf %217, %218 : vector<2x32xf32>
    %220 = vector.extract_strided_slice %203 {offsets = [2, 0], sizes = [2, 32], strides = [1, 1]} : vector<8x32xf32> to vector<2x32xf32>
    %221 = arith.addf %220, %208 : vector<2x32xf32>
    %222 = arith.negf %221 : vector<2x32xf32>
    %223 = math.exp %222 : vector<2x32xf32>
    %cst_101 = arith.constant 1.000000e+00 : f32
    %224 = vector.broadcast %cst_101 : f32 to vector<2x32xf32>
    %225 = arith.addf %224, %223 : vector<2x32xf32>
    %226 = arith.divf %224, %225 : vector<2x32xf32>
    %227 = vector.extract_strided_slice %203 {offsets = [4, 0], sizes = [2, 32], strides = [1, 1]} : vector<8x32xf32> to vector<2x32xf32>
    %228 = arith.addf %227, %210 : vector<2x32xf32>
    %229 = math.tanh %228 : vector<2x32xf32>
    %230 = vector.extract_strided_slice %203 {offsets = [6, 0], sizes = [2, 32], strides = [1, 1]} : vector<8x32xf32> to vector<2x32xf32>
    %231 = arith.addf %230, %212 : vector<2x32xf32>
    %232 = arith.negf %231 : vector<2x32xf32>
    %233 = math.exp %232 : vector<2x32xf32>
    %cst_102 = arith.constant 1.000000e+00 : f32
    %234 = vector.broadcast %cst_102 : f32 to vector<2x32xf32>
    %235 = arith.addf %234, %233 : vector<2x32xf32>
    %236 = arith.divf %234, %235 : vector<2x32xf32>
    %237 = arith.mulf %226, %199 : vector<2x32xf32>
    %238 = arith.mulf %219, %229 : vector<2x32xf32>
    %239 = arith.addf %237, %238 : vector<2x32xf32>
    %240 = math.tanh %239 : vector<2x32xf32>
    %241 = arith.mulf %236, %240 : vector<2x32xf32>
    %c0_103 = arith.constant 0 : index
    %c0_104 = arith.constant 0 : index
    %242 = vector.load %arg8[%c0_103, %c0_104] : memref<1x128xf32, #tpu.memory_space<vmem>>, vector<1x128xf32>
    %243 = arith.truncf %41 : vector<2x32xf32> to vector<2x32xbf16>
    %c0_105 = arith.constant 0 : index
    %c0_106 = arith.constant 0 : index
    %244 = vector.load %arg6[%c0_105, %c0_106] : memref<32x128xbf16, #tpu.memory_space<vmem>>, vector<32x128xbf16>
    %cst_107 = arith.constant dense<0.000000e+00> : vector<2x128xf32>
    %245 = tpu.matmul %243, %244, %cst_107 {dimension_numbers = #tpu.dot_dimension_numbers<[1], [0], [0], [1], [0, 0, 1, 1], [], []>} : vector<2x32xbf16>, vector<32x128xbf16>, vector<2x128xf32> -> vector<2x128xf32>
    %246 = arith.truncf %241 : vector<2x32xf32> to vector<2x32xbf16>
    %c0_108 = arith.constant 0 : index
    %c0_109 = arith.constant 0 : index
    %247 = vector.load %arg7[%c0_108, %c0_109] : memref<32x128xbf16, #tpu.memory_space<vmem>>, vector<32x128xbf16>
    %cst_110 = arith.constant dense<0.000000e+00> : vector<2x128xf32>
    %248 = tpu.matmul %246, %247, %cst_110 {dimension_numbers = #tpu.dot_dimension_numbers<[1], [0], [0], [1], [0, 0, 1, 1], [], []>} : vector<2x32xbf16>, vector<32x128xbf16>, vector<2x128xf32> -> vector<2x128xf32>
    %249 = arith.addf %245, %248 : vector<2x128xf32>
    %250 = vector.broadcast %242 : vector<1x128xf32> to vector<2x128xf32>
    %251 = arith.addf %249, %250 : vector<2x128xf32>
    %c0_111 = arith.constant 0 : index
    %c0_112 = arith.constant 0 : index
    %c0_113 = arith.constant 0 : index
    %252 = vector.load %arg9[%c0_111, %c0_112, %c0_113] : memref<6x2x128xf32, #tpu.memory_space<vmem>>, vector<1x2x128xf32>
    %253 = vector.shape_cast %252 : vector<1x2x128xf32> to vector<2x128xf32>
    %254 = vector.shape_cast %251 : vector<2x128xf32> to vector<1x2x128xf32>
    tpu.vector_store %arg9[%c0_111, %c0_112, %c0_113], %254 {strides = array<i32>} : memref<6x2x128xf32, #tpu.memory_space<vmem>>, vector<1x2x128xf32>,
    %255 = arith.truncf %81 : vector<2x32xf32> to vector<2x32xbf16>
    %c0_114 = arith.constant 0 : index
    %c0_115 = arith.constant 0 : index
    %256 = vector.load %arg6[%c0_114, %c0_115] : memref<32x128xbf16, #tpu.memory_space<vmem>>, vector<32x128xbf16>
    %cst_116 = arith.constant dense<0.000000e+00> : vector<2x128xf32>
    %257 = tpu.matmul %255, %256, %cst_116 {dimension_numbers = #tpu.dot_dimension_numbers<[1], [0], [0], [1], [0, 0, 1, 1], [], []>} : vector<2x32xbf16>, vector<32x128xbf16>, vector<2x128xf32> -> vector<2x128xf32>
    %258 = arith.truncf %201 : vector<2x32xf32> to vector<2x32xbf16>
    %c0_117 = arith.constant 0 : index
    %c0_118 = arith.constant 0 : index
    %259 = vector.load %arg7[%c0_117, %c0_118] : memref<32x128xbf16, #tpu.memory_space<vmem>>, vector<32x128xbf16>
    %cst_119 = arith.constant dense<0.000000e+00> : vector<2x128xf32>
    %260 = tpu.matmul %258, %259, %cst_119 {dimension_numbers = #tpu.dot_dimension_numbers<[1], [0], [0], [1], [0, 0, 1, 1], [], []>} : vector<2x32xbf16>, vector<32x128xbf16>, vector<2x128xf32> -> vector<2x128xf32>
    %261 = arith.addf %257, %260 : vector<2x128xf32>
    %262 = vector.broadcast %242 : vector<1x128xf32> to vector<2x128xf32>
    %263 = arith.addf %261, %262 : vector<2x128xf32>
    %c1_120 = arith.constant 1 : index
    %c0_121 = arith.constant 0 : index
    %c0_122 = arith.constant 0 : index
    %264 = vector.load %arg9[%c1_120, %c0_121, %c0_122] : memref<6x2x128xf32, #tpu.memory_space<vmem>>, vector<1x2x128xf32>
    %265 = vector.shape_cast %264 : vector<1x2x128xf32> to vector<2x128xf32>
    %266 = vector.shape_cast %263 : vector<2x128xf32> to vector<1x2x128xf32>
    tpu.vector_store %arg9[%c1_120, %c0_121, %c0_122], %266 {strides = array<i32>} : memref<6x2x128xf32, #tpu.memory_space<vmem>>, vector<1x2x128xf32>,
    %267 = arith.truncf %121 : vector<2x32xf32> to vector<2x32xbf16>
    %c0_123 = arith.constant 0 : index
    %c0_124 = arith.constant 0 : index
    %268 = vector.load %arg6[%c0_123, %c0_124] : memref<32x128xbf16, #tpu.memory_space<vmem>>, vector<32x128xbf16>
    %cst_125 = arith.constant dense<0.000000e+00> : vector<2x128xf32>
    %269 = tpu.matmul %267, %268, %cst_125 {dimension_numbers = #tpu.dot_dimension_numbers<[1], [0], [0], [1], [0, 0, 1, 1], [], []>} : vector<2x32xbf16>, vector<32x128xbf16>, vector<2x128xf32> -> vector<2x128xf32>
    %270 = arith.truncf %161 : vector<2x32xf32> to vector<2x32xbf16>
    %c0_126 = arith.constant 0 : index
    %c0_127 = arith.constant 0 : index
    %271 = vector.load %arg7[%c0_126, %c0_127] : memref<32x128xbf16, #tpu.memory_space<vmem>>, vector<32x128xbf16>
    %cst_128 = arith.constant dense<0.000000e+00> : vector<2x128xf32>
    %272 = tpu.matmul %270, %271, %cst_128 {dimension_numbers = #tpu.dot_dimension_numbers<[1], [0], [0], [1], [0, 0, 1, 1], [], []>} : vector<2x32xbf16>, vector<32x128xbf16>, vector<2x128xf32> -> vector<2x128xf32>
    %273 = arith.addf %269, %272 : vector<2x128xf32>
    %274 = vector.broadcast %242 : vector<1x128xf32> to vector<2x128xf32>
    %275 = arith.addf %273, %274 : vector<2x128xf32>
    %c2_129 = arith.constant 2 : index
    %c0_130 = arith.constant 0 : index
    %c0_131 = arith.constant 0 : index
    %276 = vector.load %arg9[%c2_129, %c0_130, %c0_131] : memref<6x2x128xf32, #tpu.memory_space<vmem>>, vector<1x2x128xf32>
    %277 = vector.shape_cast %276 : vector<1x2x128xf32> to vector<2x128xf32>
    %278 = vector.shape_cast %275 : vector<2x128xf32> to vector<1x2x128xf32>
    tpu.vector_store %arg9[%c2_129, %c0_130, %c0_131], %278 {strides = array<i32>} : memref<6x2x128xf32, #tpu.memory_space<vmem>>, vector<1x2x128xf32>,
    %279 = arith.truncf %161 : vector<2x32xf32> to vector<2x32xbf16>
    %c0_132 = arith.constant 0 : index
    %c0_133 = arith.constant 0 : index
    %280 = vector.load %arg6[%c0_132, %c0_133] : memref<32x128xbf16, #tpu.memory_space<vmem>>, vector<32x128xbf16>
    %cst_134 = arith.constant dense<0.000000e+00> : vector<2x128xf32>
    %281 = tpu.matmul %279, %280, %cst_134 {dimension_numbers = #tpu.dot_dimension_numbers<[1], [0], [0], [1], [0, 0, 1, 1], [], []>} : vector<2x32xbf16>, vector<32x128xbf16>, vector<2x128xf32> -> vector<2x128xf32>
    %282 = arith.truncf %121 : vector<2x32xf32> to vector<2x32xbf16>
    %c0_135 = arith.constant 0 : index
    %c0_136 = arith.constant 0 : index
    %283 = vector.load %arg7[%c0_135, %c0_136] : memref<32x128xbf16, #tpu.memory_space<vmem>>, vector<32x128xbf16>
    %cst_137 = arith.constant dense<0.000000e+00> : vector<2x128xf32>
    %284 = tpu.matmul %282, %283, %cst_137 {dimension_numbers = #tpu.dot_dimension_numbers<[1], [0], [0], [1], [0, 0, 1, 1], [], []>} : vector<2x32xbf16>, vector<32x128xbf16>, vector<2x128xf32> -> vector<2x128xf32>
    %285 = arith.addf %281, %284 : vector<2x128xf32>
    %286 = vector.broadcast %242 : vector<1x128xf32> to vector<2x128xf32>
    %287 = arith.addf %285, %286 : vector<2x128xf32>
    %c3_138 = arith.constant 3 : index
    %c0_139 = arith.constant 0 : index
    %c0_140 = arith.constant 0 : index
    %288 = vector.load %arg9[%c3_138, %c0_139, %c0_140] : memref<6x2x128xf32, #tpu.memory_space<vmem>>, vector<1x2x128xf32>
    %289 = vector.shape_cast %288 : vector<1x2x128xf32> to vector<2x128xf32>
    %290 = vector.shape_cast %287 : vector<2x128xf32> to vector<1x2x128xf32>
    tpu.vector_store %arg9[%c3_138, %c0_139, %c0_140], %290 {strides = array<i32>} : memref<6x2x128xf32, #tpu.memory_space<vmem>>, vector<1x2x128xf32>,
    %291 = arith.truncf %201 : vector<2x32xf32> to vector<2x32xbf16>
    %c0_141 = arith.constant 0 : index
    %c0_142 = arith.constant 0 : index
    %292 = vector.load %arg6[%c0_141, %c0_142] : memref<32x128xbf16, #tpu.memory_space<vmem>>, vector<32x128xbf16>
    %cst_143 = arith.constant dense<0.000000e+00> : vector<2x128xf32>
    %293 = tpu.matmul %291, %292, %cst_143 {dimension_numbers = #tpu.dot_dimension_numbers<[1], [0], [0], [1], [0, 0, 1, 1], [], []>} : vector<2x32xbf16>, vector<32x128xbf16>, vector<2x128xf32> -> vector<2x128xf32>
    %294 = arith.truncf %81 : vector<2x32xf32> to vector<2x32xbf16>
    %c0_144 = arith.constant 0 : index
    %c0_145 = arith.constant 0 : index
    %295 = vector.load %arg7[%c0_144, %c0_145] : memref<32x128xbf16, #tpu.memory_space<vmem>>, vector<32x128xbf16>
    %cst_146 = arith.constant dense<0.000000e+00> : vector<2x128xf32>
    %296 = tpu.matmul %294, %295, %cst_146 {dimension_numbers = #tpu.dot_dimension_numbers<[1], [0], [0], [1], [0, 0, 1, 1], [], []>} : vector<2x32xbf16>, vector<32x128xbf16>, vector<2x128xf32> -> vector<2x128xf32>
    %297 = arith.addf %293, %296 : vector<2x128xf32>
    %298 = vector.broadcast %242 : vector<1x128xf32> to vector<2x128xf32>
    %299 = arith.addf %297, %298 : vector<2x128xf32>
    %c4_147 = arith.constant 4 : index
    %c0_148 = arith.constant 0 : index
    %c0_149 = arith.constant 0 : index
    %300 = vector.load %arg9[%c4_147, %c0_148, %c0_149] : memref<6x2x128xf32, #tpu.memory_space<vmem>>, vector<1x2x128xf32>
    %301 = vector.shape_cast %300 : vector<1x2x128xf32> to vector<2x128xf32>
    %302 = vector.shape_cast %299 : vector<2x128xf32> to vector<1x2x128xf32>
    tpu.vector_store %arg9[%c4_147, %c0_148, %c0_149], %302 {strides = array<i32>} : memref<6x2x128xf32, #tpu.memory_space<vmem>>, vector<1x2x128xf32>,
    %303 = arith.truncf %241 : vector<2x32xf32> to vector<2x32xbf16>
    %c0_150 = arith.constant 0 : index
    %c0_151 = arith.constant 0 : index
    %304 = vector.load %arg6[%c0_150, %c0_151] : memref<32x128xbf16, #tpu.memory_space<vmem>>, vector<32x128xbf16>
    %cst_152 = arith.constant dense<0.000000e+00> : vector<2x128xf32>
    %305 = tpu.matmul %303, %304, %cst_152 {dimension_numbers = #tpu.dot_dimension_numbers<[1], [0], [0], [1], [0, 0, 1, 1], [], []>} : vector<2x32xbf16>, vector<32x128xbf16>, vector<2x128xf32> -> vector<2x128xf32>
    %306 = arith.truncf %41 : vector<2x32xf32> to vector<2x32xbf16>
    %c0_153 = arith.constant 0 : index
    %c0_154 = arith.constant 0 : index
    %307 = vector.load %arg7[%c0_153, %c0_154] : memref<32x128xbf16, #tpu.memory_space<vmem>>, vector<32x128xbf16>
    %cst_155 = arith.constant dense<0.000000e+00> : vector<2x128xf32>
    %308 = tpu.matmul %306, %307, %cst_155 {dimension_numbers = #tpu.dot_dimension_numbers<[1], [0], [0], [1], [0, 0, 1, 1], [], []>} : vector<2x32xbf16>, vector<32x128xbf16>, vector<2x128xf32> -> vector<2x128xf32>
    %309 = arith.addf %305, %308 : vector<2x128xf32>
    %310 = vector.broadcast %242 : vector<1x128xf32> to vector<2x128xf32>
    %311 = arith.addf %309, %310 : vector<2x128xf32>
    %c5_156 = arith.constant 5 : index
    %c0_157 = arith.constant 0 : index
    %c0_158 = arith.constant 0 : index
    %312 = vector.load %arg9[%c5_156, %c0_157, %c0_158] : memref<6x2x128xf32, #tpu.memory_space<vmem>>, vector<1x2x128xf32>
    %313 = vector.shape_cast %312 : vector<1x2x128xf32> to vector<2x128xf32>
    %314 = vector.shape_cast %311 : vector<2x128xf32> to vector<1x2x128xf32>
    tpu.vector_store %arg9[%c5_156, %c0_157, %c0_158], %314 {strides = array<i32>} : memref<6x2x128xf32, #tpu.memory_space<vmem>>, vector<1x2x128xf32>,
    return
  }
  func.func @transform_0(%arg0: i32) -> (i32, i32, i32) {
    %c0_i32 = arith.constant 0 : i32
    %c0_i32_0 = arith.constant 0 : i32
    %c0_i32_1 = arith.constant 0 : i32
    %c0_i32_2 = arith.constant 0 : i32
    return %c0_i32, %c0_i32_0, %c0_i32_1 : i32, i32, i32
  }
  func.func @transform_1(%arg0: i32) -> (i32, i32) {
    %c0_i32 = arith.constant 0 : i32
    %c0_i32_0 = arith.constant 0 : i32
    %c0_i32_1 = arith.constant 0 : i32
    return %c0_i32, %c0_i32_0 : i32, i32
  }
  func.func @transform_2(%arg0: i32) -> (i32, i32) {
    %c0_i32 = arith.constant 0 : i32
    %c0_i32_0 = arith.constant 0 : i32
    %c0_i32_1 = arith.constant 0 : i32
    return %c0_i32, %c0_i32_0 : i32, i32
  }
  func.func @transform_3(%arg0: i32) -> (i32, i32) {
    %c0_i32 = arith.constant 0 : i32
    %c0_i32_0 = arith.constant 0 : i32
    %c0_i32_1 = arith.constant 0 : i32
    return %c0_i32, %c0_i32_0 : i32, i32
  }
  func.func @transform_4(%arg0: i32) -> (i32, i32) {
    %c0_i32 = arith.constant 0 : i32
    %c0_i32_0 = arith.constant 0 : i32
    %c0_i32_1 = arith.constant 0 : i32
    return %c0_i32, %c0_i32_0 : i32, i32
  }
  func.func @transform_5(%arg0: i32) -> (i32, i32) {
    %c0_i32 = arith.constant 0 : i32
    %c0_i32_0 = arith.constant 0 : i32
    %c0_i32_1 = arith.constant 0 : i32
    return %c0_i32, %c0_i32_0 : i32, i32
  }
  func.func @transform_6(%arg0: i32) -> (i32, i32) {
    %c0_i32 = arith.constant 0 : i32
    %c0_i32_0 = arith.constant 0 : i32
    %c0_i32_1 = arith.constant 0 : i32
    return %c0_i32, %c0_i32_0 : i32, i32
  }
  func.func @transform_7(%arg0: i32) -> (i32, i32) {
    %c0_i32 = arith.constant 0 : i32
    %c0_i32_0 = arith.constant 0 : i32
    %c0_i32_1 = arith.constant 0 : i32
    return %c0_i32, %c0_i32_0 : i32, i32
  }
  func.func @transform_8(%arg0: i32) -> (i32, i32, i32) {
    %c0_i32 = arith.constant 0 : i32
    %c0_i32_0 = arith.constant 0 : i32
    %c0_i32_1 = arith.constant 0 : i32
    %c0_i32_2 = arith.constant 0 : i32
    return %c0_i32, %c0_i32_0, %c0_i32_1 : i32, i32, i32
  }
}

</mosaic_0001>

<bundles_post_ra>
// kernel: custom-call.8
= control target key start
LH: loop header
LB: loop body
LE: loop exit
PB: predicated region body
PF: predicated region fallthrough
CT: control target
= control target key end

     0   :  { %s6_s0 = inlined_call_operand.vmem [shape: s32[5,2,6], index: 0, kind: output, shape index: {}]  }

// kernel: custom-call.9
= control target key start
LH: loop header
LB: loop body
LE: loop exit
PB: predicated region body
PF: predicated region fallthrough
CT: control target
= control target key end

     0   :  { %s6_s0 = inlined_call_operand.vmem [shape: s32[6,2], index: 0, kind: output, shape index: {}]  }

// kernel: flat_forward.3
= control target key start
LH: loop header
LB: loop body
LE: loop exit
PB: predicated region body
PF: predicated region fallthrough
CT: control target
= control target key end

     0   :  { %v2701_v0 = vmov 0.0   ;;  %vm2702_vm0 = vmmov 0   ;;  %v2703_v7 = vmov 0   ;;  %vm47_vm1 = vcmask 261120   ;;  %s3199_s1 = inlined_call_operand.vmem [shape: bf16[32,32], index: 1, kind: input, shape index: {}]   ;;  %s3200_s2 = inlined_call_operand.vmem [shape: bf16[32,32], index: 2, kind: input, shape index: {}]   ;;  %s3201_s3 = inlined_call_operand.vmem [shape: bf16[32,32], index: 3, kind: input, shape index: {}]   ;;  %s3202_s4 = inlined_call_operand.vmem [shape: bf16[32,32], index: 4, kind: input, shape index: {}]   ;;  %s3203_s0 = inlined_call_operand.vmem [shape: f32[6,8,32], index: 0, kind: input, shape index: {}]   ;;  %s3204_s5 = inlined_call_operand.vmem [shape: bf16[32,128], index: 5, kind: input, shape index: {}]   ;;  %s3205_s6 = inlined_call_operand.vmem [shape: bf16[32,128], index: 6, kind: input, shape index: {}]   ;;  %s3206_s7 = inlined_call_operand.vmem [shape: f32[1,128], index: 7, kind: input, shape index: {}]   ;;  %s3207_s8 = inlined_call_operand.vmem [shape: f32[6,2,128], index: 8, kind: output, shape index: {}]  }
   0x1   :  { %2282 = vmatprep.subr.bf16.mxu0 %v2701_v0  ;;  %2290 = vmatprep.subr.bf16.mxu1 %v2701_v0  ;;  %v2754_v1 = vld [vmem:[%s3199_s1 + $0x8] sm:$0xff]   ;;  %v2769_v3 = vld [vmem:[%s3199_s1] sm:$0xff]  }
   0x2   :  { %v2759_v2 = vld [vmem:[%s3200_s2 + $0x8] sm:$0xff]   ;;  %2286 = vmatprep.mubr.msk.bf16.mxu0 %vm2702_vm0, %v2701_v0  ;;  %2294 = vmatprep.mubr.msk.bf16.mxu1 %vm2702_vm0, %v2701_v0  ;;  %v2776_v4 = vld [vmem:[%s3200_s2] sm:$0xff]  }
   0x3   :  { %2283 = vmatpush3.bf16.msra.mxu0 %v2754_v1  ;;  %2291 = vmatpush3.bf16.msra.mxu1 %v2759_v2  ;;  %v2783_v5 = vld [vmem:[%s3201_s3 + $0x8] sm:$0xff]   ;;  %v2797_v8 = vld [vmem:[%s3201_s3] sm:$0xff]  }
   0x4   :  { %2284 = vmatprep.subr.bf16.mxu0 %v2701_v0  ;;  %2292 = vmatprep.subr.bf16.mxu1 %v2701_v0  ;;  %v2791_v6 = vld [vmem:[%s3202_s4 + $0x8] sm:$0xff]   ;;  %v2806_v9 = vld [vmem:[%s3202_s4] sm:$0xff]  }
   0x5   :  { %v30_v10 = vld [vmem:[%s3203_s0] sm:$0xff]  ;;  %v2092_v57 = vld [vmem:[%s3203_s0 + $0x8] sm:$0xff] }
   0x7   :  { %2285 = vmatpush3.bf16.msra.mxu0 %v2769_v3  ;;  %2293 = vmatpush3.bf16.msra.mxu1 %v2776_v4 }
   0x8   :  { %2298 = vmatprep.subr.bf16.mxu0 %v2701_v0  ;;  %2306 = vmatprep.subr.bf16.mxu1 %v2701_v0 }
   0xa   :  { %2287 = vmatmul.mubr.bf16.vlgmr.msra.gmra.mxu0 %v2703_v7  ;;  %2295 = vmatmul.mubr.bf16.vlgmr.msra.gmra.mxu1 %v2703_v7 }
   0xb   :  { %2299 = vmatpush3.bf16.msra.mxu0 %v2783_v5  ;;  %2302 = vmatprep.mubr.msk.bf16.mxu0 %vm2702_vm0, %v2701_v0 }
   0xc   :  { %2300 = vmatprep.subr.bf16.mxu0 %v2701_v0  ;;  %2307 = vmatpush3.bf16.msra.mxu1 %v2791_v6 }
   0xd   :  { %2310 = vmatprep.mubr.msk.bf16.mxu1 %vm2702_vm0, %v2701_v0  ;;  %2308 = vmatprep.subr.bf16.mxu1 %v2701_v0 }
   0xf   :  { %2301 = vmatpush3.bf16.msra.mxu0 %v2797_v8 }
  0x10   :  { %2314 = vmatprep.subr.bf16.mxu0 %v2701_v0  ;;  %2309 = vmatpush3.bf16.msra.mxu1 %v2806_v9 }
  0x11   :  { %2322 = vmatprep.subr.bf16.mxu1 %v2701_v0 }
  0x12   :  { %2303 = vmatmul.mubr.bf16.vlgmr.msra.gmra.mxu0 %v2703_v7 }
  0x13   :  { %2315 = vmatpush3.bf16.msra.mxu0 %v2754_v1  ;;  %2318 = vmatprep.mubr.msk.bf16.mxu0 %vm2702_vm0, %v2701_v0 }
  0x14   :  { %2311 = vmatmul.mubr.bf16.vlgmr.msra.gmra.mxu1 %v2703_v7  ;;  %2316 = vmatprep.subr.bf16.mxu0 %v2701_v0 }
  0x15   :  { %2323 = vmatpush3.bf16.msra.mxu1 %v2759_v2  ;;  %2326 = vmatprep.mubr.msk.bf16.mxu1 %vm2702_vm0, %v2701_v0 }
  0x16   :  { %2324 = vmatprep.subr.bf16.mxu1 %v2701_v0 }
  0x17   :  { %2317 = vmatpush3.bf16.msra.mxu0 %v2769_v3 }
  0x18   :  { %2330 = vmatprep.subr.bf16.mxu0 %v2701_v0 }
  0x19   :  { %2325 = vmatpush3.bf16.msra.mxu1 %v2776_v4 }
  0x1a   :  { %2338 = vmatprep.subr.bf16.mxu1 %v2701_v0 }
  0xca   :  { %v85_v11 = vpop.f32.mrf.mxu0  ;;  %v141_v13 = vpop.f32.mrf.mxu1 }
  0xcb   :  { %v259_v12 = vadd.f32 %v85_v11, %v30_v10  ;;  %v267_v14 = vrot.slane %v141_v13, 6 }
  0xcc   :  { %v2288_v15 = vpop.f32.mrf.mxu0  ;;  %v2296_v17 = vpop.f32.mrf.mxu1 }
  0xcd   :  { %v2089_v16 = vmul.f32 -1.442695, %v259_v12  ;;  %v269_v18 = vadd.f32 %v267_v14, %v30_v10 }
  0xce   :  { %v88_v19 = vpop.f32.mrf.mxu0  ;;  %v144_v20 = vpop.f32.mrf.mxu1 }
  0xcf   :  { %2605 = vpow2.f32 %v2089_v16  ;;  %v2090_v21 = vmul.f32 -1.442695, %v269_v18 }
  0xd0   :  { %v2289_v22 = vpop.f32.mrf.mxu0  ;;  %v2297_v23 = vpop.f32.mrf.mxu1 }
  0xd1   :  { %2607 = vpow2.f32 %v2090_v21 }
  0xd2   :  { %v197_v24 = vpop.f32.mrf.mxu0 }
  0xd3   :  { %v277_v25 = vrot.slane %v197_v24, 4 }
  0xd4   :  { %v2304_v26 = vpop.f32.mrf.mxu0  ;;  %v253_v27 = vpop.f32.mrf.mxu1 }
  0xd5   :  { %v279_v28 = vadd.f32 %v277_v25, %v30_v10  ;;  %v282_v29 = vrot.slane %v253_v27, 2 }
  0xd6   :  { %v200_v30 = vpop.f32.mrf.mxu0  ;;  %v2312_v31 = vpop.f32.mrf.mxu1 }
  0xd7   :  { %v284_v32 = vadd.f32 %v282_v29, %v30_v10  ;;  %2609 = vtanh.f32 %v279_v28 }
  0xd8   :  { %v2305_v33 = vpop.f32.mrf.mxu0  ;;  %v256_v34 = vpop.f32.mrf.mxu1 }
  0xd9   :  { %v2091_v35 = vmul.f32 -1.442695, %v284_v32 }
  0xda   :  { %v2313_v36 = vpop.f32.mrf.mxu1 }
  0xdb   :  { %2611 = vpow2.f32 %v2091_v35 }
  0xdc   :  { %v2606_v37 = vpop.eup %2605 }
  0xdd   :  { %v263_v38 = vadd.f32 1.0, %v2606_v37 }
  0xde   :  { %v2608_v39 = vpop.eup %2607 }
  0xdf   :  { %2613 = vrcp.f32 %v263_v38  ;;  %v273_v40 = vadd.f32 1.0, %v2608_v39 }
  0xe1   :  { %2615 = vrcp.f32 %v273_v40 }
  0xe4   :  { %v2610_v41 = vpop.eup %2609 }
  0xe5   :  { %v293_v42 = vrot.slane %v2610_v41, 4 }
  0xe8   :  { %v2612_v43 = vpop.eup %2611 }
  0xe9   :  { %v288_v48 = vadd.f32 1.0, %v2612_v43 }
  0xeb   :  { %2617 = vrcp.f32 %v288_v48 }
  0xec   :  { %v2614_v44 = vpop.eup %2613 }
  0xed   :  { %v295_v45 = vmul.f32 %v2614_v44, %v293_v42 }
  0xee   :  { %v2616_v46 = vpop.eup %2615 }
  0xef   :  { %v297_v47 = vrot.slane %v295_v45, 6  ;;  %v291_v49 = vmul.f32 0.0, %v2616_v46 }
  0xf1   :  { %v2830_v50 = vadd.f32 %v297_v47, %v291_v49  ;;  %v2100_v49 = vld [vmem:[%s3203_s0 + $0x10] sm:$0xff] }
  0xf3   :  { %2619 = vtanh.f32 %v2830_v50 }
  0xf8   :  { %v2618_v51 = vpop.eup %2617 }
 0x100   :  { %v2620_v52 = vpop.eup %2619 }
 0x101   :  { %v302_v53 = vrot.slane %v2620_v52, 4 }
 0x103   :  { %v304_v54 = vmul.f32 %v2618_v51, %v302_v53 }
 0x105   :  { %v307_v55 = vpack.c.bf16 %v304_v54, %v304_v54 }
 0x107   :  { %v2833_v56 = vrot.slane %v307_v55, 3 }
 0x109   :  { %2319 = vmatmul.mubr.msk.bf16.vlgmr.msra.gmra.mxu0 %vm47_vm1, %v2833_v56  ;;  %2327 = vmatmul.mubr.msk.bf16.vlgmr.msra.gmra.mxu1 %vm47_vm1, %v2833_v56 }
 0x10a   :  { %2331 = vmatpush3.bf16.msra.mxu0 %v2783_v5  ;;  %2339 = vmatpush3.bf16.msra.mxu1 %v2791_v6 }
 0x10b   :  { %2332 = vmatprep.subr.bf16.mxu0 %v2701_v0  ;;  %2340 = vmatprep.subr.bf16.mxu1 %v2701_v0 }
 0x10c   :  { %2334 = vmatprep.mubr.msk.bf16.mxu0 %vm2702_vm0, %v2701_v0  ;;  %2342 = vmatprep.mubr.msk.bf16.mxu1 %vm2702_vm0, %v2701_v0 }
 0x10e   :  { %2333 = vmatpush3.bf16.msra.mxu0 %v2797_v8  ;;  %2341 = vmatpush3.bf16.msra.mxu1 %v2806_v9 }
 0x10f   :  { %2346 = vmatprep.subr.bf16.mxu0 %v2701_v0  ;;  %2354 = vmatprep.subr.bf16.mxu1 %v2701_v0 }
 0x111   :  { %2335 = vmatmul.mubr.msk.bf16.vlgmr.msra.gmra.mxu0 %vm47_vm1, %v2833_v56  ;;  %2343 = vmatmul.mubr.msk.bf16.vlgmr.msra.gmra.mxu1 %vm47_vm1, %v2833_v56 }
 0x112   :  { %2347 = vmatpush3.bf16.msra.mxu0 %v2754_v1  ;;  %2355 = vmatpush3.bf16.msra.mxu1 %v2759_v2 }
 0x113   :  { %2348 = vmatprep.subr.bf16.mxu0 %v2701_v0  ;;  %2356 = vmatprep.subr.bf16.mxu1 %v2701_v0 }
 0x114   :  { %2350 = vmatprep.mubr.msk.bf16.mxu0 %vm2702_vm0, %v2701_v0  ;;  %2358 = vmatprep.mubr.msk.bf16.mxu1 %vm2702_vm0, %v2701_v0 }
 0x116   :  { %2349 = vmatpush3.bf16.msra.mxu0 %v2769_v3  ;;  %2357 = vmatpush3.bf16.msra.mxu1 %v2776_v4 }
 0x117   :  { %2362 = vmatprep.subr.bf16.mxu0 %v2701_v0  ;;  %2370 = vmatprep.subr.bf16.mxu1 %v2701_v0 }
 0x1c9   :  { %v347_v58 = vpop.f32.mrf.mxu0  ;;  %v387_v59 = vpop.f32.mrf.mxu1 }
 0x1ca   :  { %v473_v60 = vadd.f32 %v2092_v57, %v347_v58  ;;  %v481_v61 = vrot.slane %v387_v59, 6 }
 0x1cb   :  { %v2320_v62 = vpop.f32.mrf.mxu0  ;;  %v2328_v63 = vpop.f32.mrf.mxu1 }
 0x1cc   :  { %v2097_v7 = vmul.f32 -1.442695, %v473_v60  ;;  %v483_v10 = vadd.f32 %v2092_v57, %v481_v61 }
 0x1cd   :  { %v350_v11 = vpop.f32.mrf.mxu0  ;;  %v390_v12 = vpop.f32.mrf.mxu1 }
 0x1ce   :  { %2621 = vpow2.f32 %v2097_v7  ;;  %v2098_v13 = vmul.f32 -1.442695, %v483_v10 }
 0x1cf   :  { %v2321_v14 = vpop.f32.mrf.mxu0  ;;  %v2329_v15 = vpop.f32.mrf.mxu1 }
 0x1d0   :  { %2623 = vpow2.f32 %v2098_v13 }
 0x1d1   :  { %v427_v16 = vpop.f32.mrf.mxu0  ;;  %v467_v17 = vpop.f32.mrf.mxu1 }
 0x1d2   :  { %v491_v18 = vrot.slane %v427_v16, 4  ;;  %v496_v19 = vrot.slane %v467_v17, 2 }
 0x1d3   :  { %v2336_v20 = vpop.f32.mrf.mxu0  ;;  %v2344_v21 = vpop.f32.mrf.mxu1 }
 0x1d4   :  { %v493_v24 = vadd.f32 %v2092_v57, %v491_v18  ;;  %v498_v25 = vadd.f32 %v2092_v57, %v496_v19 }
 0x1d5   :  { %v430_v22 = vpop.f32.mrf.mxu0  ;;  %v470_v23 = vpop.f32.mrf.mxu1 }
 0x1d6   :  { %2625 = vtanh.f32 %v493_v24  ;;  %v2099_v29 = vmul.f32 -1.442695, %v498_v25 }
 0x1d7   :  { %v2337_v26 = vpop.f32.mrf.mxu0  ;;  %v2345_v27 = vpop.f32.mrf.mxu1 }
 0x1db   :  { %v2622_v28 = vpop.eup %2621 }
 0x1dc   :  { %v477_v30 = vadd.f32 1.0, %v2622_v28 }
 0x1dd   :  { %v2624_v31 = vpop.eup %2623 }
 0x1de   :  { %2627 = vrcp.f32 %v477_v30  ;;  %v487_v32 = vadd.f32 1.0, %v2624_v31 }
 0x1df   :  { %2629 = vpow2.f32 %v2099_v29 }
 0x1e0   :  { %2631 = vrcp.f32 %v487_v32 }
 0x1e3   :  { %v2626_v33 = vpop.eup %2625 }
 0x1e4   :  { %v507_v34 = vrot.slane %v2626_v33, 4 }
 0x1eb   :  { %v2628_v35 = vpop.eup %2627 }
 0x1ec   :  { %v2630_v36 = vpop.eup %2629  ;;  %v509_v37 = vmul.f32 %v2628_v35, %v507_v34 }
 0x1ed   :  { %v2632_v38 = vpop.eup %2631  ;;  %v502_v42 = vadd.f32 1.0, %v2630_v36 }
 0x1ee   :  { %v505_v39 = vmul.f32 %v2632_v38, %v2830_v50  ;;  %v511_v40 = vrot.slane %v509_v37, 6 }
 0x1f0   :  { %v2871_v41 = vadd.f32 %v511_v40, %v505_v39 }
 0x1f2   :  { %2633 = vtanh.f32 %v2871_v41 }
 0x1f3   :  { %2635 = vrcp.f32 %v502_v42 }
 0x1ff   :  { %v2634_v43 = vpop.eup %2633 }
 0x200   :  { %v516_v44 = vrot.slane %v2634_v43, 4  ;;  %v2636_v45 = vpop.eup %2635 }
 0x202   :  { %v518_v46 = vmul.f32 %v2636_v45, %v516_v44 }
 0x204   :  { %v521_v47 = vpack.c.bf16 %v518_v46, %v518_v46 }
 0x206   :  { %v2874_v48 = vrot.slane %v521_v47, 3 }
 0x208   :  { %2351 = vmatmul.mubr.msk.bf16.vlgmr.msra.gmra.mxu0 %vm47_vm1, %v2874_v48  ;;  %2359 = vmatmul.mubr.msk.bf16.vlgmr.msra.gmra.mxu1 %vm47_vm1, %v2874_v48 }
 0x209   :  { %2363 = vmatpush3.bf16.msra.mxu0 %v2783_v5  ;;  %2371 = vmatpush3.bf16.msra.mxu1 %v2791_v6 }
 0x20a   :  { %2364 = vmatprep.subr.bf16.mxu0 %v2701_v0  ;;  %2372 = vmatprep.subr.bf16.mxu1 %v2701_v0 }
 0x20b   :  { %2366 = vmatprep.mubr.msk.bf16.mxu0 %vm2702_vm0, %v2701_v0  ;;  %2374 = vmatprep.mubr.msk.bf16.mxu1 %vm2702_vm0, %v2701_v0 }
 0x20d   :  { %2365 = vmatpush3.bf16.msra.mxu0 %v2797_v8  ;;  %2373 = vmatpush3.bf16.msra.mxu1 %v2806_v9 }
 0x20e   :  { %2378 = vmatprep.subr.bf16.mxu0 %v2701_v0  ;;  %2386 = vmatprep.subr.bf16.mxu1 %v2701_v0 }
 0x210   :  { %2367 = vmatmul.mubr.msk.bf16.vlgmr.msra.gmra.mxu0 %vm47_vm1, %v2874_v48  ;;  %2375 = vmatmul.mubr.msk.bf16.vlgmr.msra.gmra.mxu1 %vm47_vm1, %v2874_v48 }
 0x211   :  { %2379 = vmatpush3.bf16.msra.mxu0 %v2754_v1  ;;  %2387 = vmatpush3.bf16.msra.mxu1 %v2759_v2 }
 0x212   :  { %2380 = vmatprep.subr.bf16.mxu0 %v2701_v0  ;;  %2388 = vmatprep.subr.bf16.mxu1 %v2701_v0 }
 0x213   :  { %2382 = vmatprep.mubr.msk.bf16.mxu0 %vm2702_vm0, %v2701_v0  ;;  %2390 = vmatprep.mubr.msk.bf16.mxu1 %vm2702_vm0, %v2701_v0 }
 0x215   :  { %2381 = vmatpush3.bf16.msra.mxu0 %v2769_v3  ;;  %2389 = vmatpush3.bf16.msra.mxu1 %v2776_v4 }
 0x216   :  { %2394 = vmatprep.subr.bf16.mxu0 %v2701_v0  ;;  %2402 = vmatprep.subr.bf16.mxu1 %v2701_v0 }
 0x2c8   :  { %v561_v50 = vpop.f32.mrf.mxu0  ;;  %v601_v51 = vpop.f32.mrf.mxu1 }
 0x2c9   :  { %v687_v52 = vadd.f32 %v2100_v49, %v561_v50  ;;  %v695_v53 = vrot.slane %v601_v51, 6 }
 0x2ca   :  { %v2352_v54 = vpop.f32.mrf.mxu0  ;;  %v2360_v55 = vpop.f32.mrf.mxu1 }
 0x2cb   :  { %v2105_v57 = vmul.f32 -1.442695, %v687_v52  ;;  %v697_v58 = vadd.f32 %v2100_v49, %v695_v53 }
 0x2cc   :  { %v564_v59 = vpop.f32.mrf.mxu0  ;;  %v604_v60 = vpop.f32.mrf.mxu1 }
 0x2cd   :  { %2637 = vpow2.f32 %v2105_v57  ;;  %v2106_v61 = vmul.f32 -1.442695, %v697_v58 }
 0x2ce   :  { %v2353_v62 = vpop.f32.mrf.mxu0  ;;  %v2361_v63 = vpop.f32.mrf.mxu1 }
 0x2cf   :  { %2639 = vpow2.f32 %v2106_v61 }
 0x2d0   :  { %v641_v7 = vpop.f32.mrf.mxu0  ;;  %v681_v10 = vpop.f32.mrf.mxu1 }
 0x2d1   :  { %v705_v11 = vrot.slane %v641_v7, 4  ;;  %v710_v12 = vrot.slane %v681_v10, 2 }
 0x2d2   :  { %v2368_v13 = vpop.f32.mrf.mxu0  ;;  %v2376_v14 = vpop.f32.mrf.mxu1 }
 0x2d3   :  { %v707_v17 = vadd.f32 %v2100_v49, %v705_v11  ;;  %v712_v18 = vadd.f32 %v2100_v49, %v710_v12 }
 0x2d4   :  { %v644_v15 = vpop.f32.mrf.mxu0  ;;  %v684_v16 = vpop.f32.mrf.mxu1 }
 0x2d5   :  { %2641 = vtanh.f32 %v707_v17  ;;  %v2107_v22 = vmul.f32 -1.442695, %v712_v18 }
 0x2d6   :  { %v2369_v19 = vpop.f32.mrf.mxu0  ;;  %v2377_v20 = vpop.f32.mrf.mxu1 }
 0x2da   :  { %v2638_v21 = vpop.eup %2637 }
 0x2db   :  { %v691_v23 = vadd.f32 1.0, %v2638_v21 }
 0x2dc   :  { %v2640_v24 = vpop.eup %2639 }
 0x2dd   :  { %2643 = vrcp.f32 %v691_v23  ;;  %v701_v25 = vadd.f32 1.0, %v2640_v24 }
 0x2de   :  { %2645 = vpow2.f32 %v2107_v22 }
 0x2df   :  { %2647 = vrcp.f32 %v701_v25 }
 0x2e2   :  { %v2642_v26 = vpop.eup %2641 }
 0x2e3   :  { %v721_v27 = vrot.slane %v2642_v26, 4 }
 0x2ea   :  { %v2644_v28 = vpop.eup %2643 }
 0x2eb   :  { %v2646_v29 = vpop.eup %2645  ;;  %v723_v30 = vmul.f32 %v2644_v28, %v721_v27 }
 0x2ec   :  { %v2648_v31 = vpop.eup %2647  ;;  %v716_v35 = vadd.f32 1.0, %v2646_v29 }
 0x2ed   :  { %v719_v32 = vmul.f32 %v2648_v31, %v2871_v41  ;;  %v725_v33 = vrot.slane %v723_v30, 6  ;;  %v2108_v41 = vld [vmem:[%s3203_s0 + $0x18] sm:$0xff] }
 0x2ef   :  { %v2912_v34 = vadd.f32 %v725_v33, %v719_v32 }
 0x2f1   :  { %2649 = vtanh.f32 %v2912_v34 }
 0x2f2   :  { %2651 = vrcp.f32 %v716_v35 }
 0x2fe   :  { %v2650_v36 = vpop.eup %2649 }
 0x2ff   :  { %v730_v37 = vrot.slane %v2650_v36, 4  ;;  %v2652_v38 = vpop.eup %2651 }
 0x301   :  { %v732_v39 = vmul.f32 %v2652_v38, %v730_v37 }
 0x303   :  { %v735_v40 = vpack.c.bf16 %v732_v39, %v732_v39 }
 0x305   :  { %v2915_v42 = vrot.slane %v735_v40, 3 }
 0x307   :  { %2383 = vmatmul.mubr.msk.bf16.vlgmr.msra.gmra.mxu0 %vm47_vm1, %v2915_v42  ;;  %2391 = vmatmul.mubr.msk.bf16.vlgmr.msra.gmra.mxu1 %vm47_vm1, %v2915_v42 }
 0x308   :  { %2395 = vmatpush3.bf16.msra.mxu0 %v2783_v5  ;;  %2403 = vmatpush3.bf16.msra.mxu1 %v2791_v6 }
 0x309   :  { %2396 = vmatprep.subr.bf16.mxu0 %v2701_v0  ;;  %2404 = vmatprep.subr.bf16.mxu1 %v2701_v0 }
 0x30a   :  { %2398 = vmatprep.mubr.msk.bf16.mxu0 %vm2702_vm0, %v2701_v0  ;;  %2406 = vmatprep.mubr.msk.bf16.mxu1 %vm2702_vm0, %v2701_v0 }
 0x30c   :  { %2397 = vmatpush3.bf16.msra.mxu0 %v2797_v8  ;;  %2405 = vmatpush3.bf16.msra.mxu1 %v2806_v9 }
 0x30d   :  { %2410 = vmatprep.subr.bf16.mxu0 %v2701_v0  ;;  %2418 = vmatprep.subr.bf16.mxu1 %v2701_v0 }
 0x30f   :  { %2399 = vmatmul.mubr.msk.bf16.vlgmr.msra.gmra.mxu0 %vm47_vm1, %v2915_v42  ;;  %2407 = vmatmul.mubr.msk.bf16.vlgmr.msra.gmra.mxu1 %vm47_vm1, %v2915_v42 }
 0x310   :  { %2411 = vmatpush3.bf16.msra.mxu0 %v2754_v1  ;;  %2419 = vmatpush3.bf16.msra.mxu1 %v2759_v2 }
 0x311   :  { %2412 = vmatprep.subr.bf16.mxu0 %v2701_v0  ;;  %2420 = vmatprep.subr.bf16.mxu1 %v2701_v0 }
 0x312   :  { %2414 = vmatprep.mubr.msk.bf16.mxu0 %vm2702_vm0, %v2701_v0  ;;  %2422 = vmatprep.mubr.msk.bf16.mxu1 %vm2702_vm0, %v2701_v0 }
 0x314   :  { %2413 = vmatpush3.bf16.msra.mxu0 %v2769_v3  ;;  %2421 = vmatpush3.bf16.msra.mxu1 %v2776_v4 }
 0x315   :  { %2426 = vmatprep.subr.bf16.mxu0 %v2701_v0  ;;  %2434 = vmatprep.subr.bf16.mxu1 %v2701_v0 }
 0x3c7   :  { %v775_v43 = vpop.f32.mrf.mxu0  ;;  %v815_v44 = vpop.f32.mrf.mxu1 }
 0x3c8   :  { %v901_v45 = vadd.f32 %v2108_v41, %v775_v43  ;;  %v909_v46 = vrot.slane %v815_v44, 6 }
 0x3c9   :  { %v2384_v47 = vpop.f32.mrf.mxu0  ;;  %v2392_v49 = vpop.f32.mrf.mxu1 }
 0x3ca   :  { %v2113_v50 = vmul.f32 -1.442695, %v901_v45  ;;  %v911_v51 = vadd.f32 %v2108_v41, %v909_v46 }
 0x3cb   :  { %v778_v52 = vpop.f32.mrf.mxu0  ;;  %v818_v53 = vpop.f32.mrf.mxu1 }
 0x3cc   :  { %2653 = vpow2.f32 %v2113_v50  ;;  %v2114_v54 = vmul.f32 -1.442695, %v911_v51 }
 0x3cd   :  { %v2385_v55 = vpop.f32.mrf.mxu0  ;;  %v2393_v57 = vpop.f32.mrf.mxu1 }
 0x3ce   :  { %2655 = vpow2.f32 %v2114_v54 }
 0x3cf   :  { %v855_v58 = vpop.f32.mrf.mxu0  ;;  %v895_v59 = vpop.f32.mrf.mxu1 }
 0x3d0   :  { %v919_v60 = vrot.slane %v855_v58, 4  ;;  %v924_v61 = vrot.slane %v895_v59, 2 }
 0x3d1   :  { %v2400_v62 = vpop.f32.mrf.mxu0  ;;  %v2408_v63 = vpop.f32.mrf.mxu1 }
 0x3d2   :  { %v921_v11 = vadd.f32 %v2108_v41, %v919_v60  ;;  %v926_v12 = vadd.f32 %v2108_v41, %v924_v61 }
 0x3d3   :  { %v858_v7 = vpop.f32.mrf.mxu0  ;;  %v898_v10 = vpop.f32.mrf.mxu1 }
 0x3d4   :  { %2657 = vtanh.f32 %v921_v11  ;;  %v2115_v16 = vmul.f32 -1.442695, %v926_v12 }
 0x3d5   :  { %v2401_v13 = vpop.f32.mrf.mxu0  ;;  %v2409_v14 = vpop.f32.mrf.mxu1 }
 0x3d9   :  { %v2654_v15 = vpop.eup %2653 }
 0x3da   :  { %v905_v17 = vadd.f32 1.0, %v2654_v15 }
 0x3db   :  { %v2656_v18 = vpop.eup %2655 }
 0x3dc   :  { %2659 = vrcp.f32 %v905_v17  ;;  %v915_v19 = vadd.f32 1.0, %v2656_v18 }
 0x3dd   :  { %2661 = vpow2.f32 %v2115_v16 }
 0x3de   :  { %2663 = vrcp.f32 %v915_v19 }
 0x3e1   :  { %v2658_v20 = vpop.eup %2657 }
 0x3e2   :  { %v935_v21 = vrot.slane %v2658_v20, 4 }
 0x3e9   :  { %v2660_v22 = vpop.eup %2659 }
 0x3ea   :  { %v2662_v23 = vpop.eup %2661  ;;  %v937_v24 = vmul.f32 %v2660_v22, %v935_v21 }
 0x3eb   :  { %v2664_v25 = vpop.eup %2663  ;;  %v930_v29 = vadd.f32 1.0, %v2662_v23 }
 0x3ec   :  { %v933_v26 = vmul.f32 %v2664_v25, %v2912_v34  ;;  %v939_v27 = vrot.slane %v937_v24, 6 }
 0x3ee   :  { %v2953_v28 = vadd.f32 %v939_v27, %v933_v26  ;;  %v2585_v27 = vld [vmem:[%s3204_s5 + $0x8] sm:$0xff]  }
 0x3f0   :  { %2665 = vtanh.f32 %v2953_v28 }
 0x3f1   :  { %2667 = vrcp.f32 %v930_v29  ;;  %v2587_v29 = vld [vmem:[%s3204_s5 + $0x8] sm:$0xff]  }
 0x3fd   :  { %v2666_v30 = vpop.eup %2665 }
 0x3fe   :  { %v944_v31 = vrot.slane %v2666_v30, 4  ;;  %v2668_v32 = vpop.eup %2667  ;;  %v2588_v30 = vld [vmem:[%s3204_s5] sm:$0xff]  }
 0x400   :  { %v946_v33 = vmul.f32 %v2668_v32, %v944_v31  ;;  %v2589_v31 = vld [vmem:[%s3204_s5 + $0x8] sm:$0xff]   ;;  %v2590_v32 = vld [vmem:[%s3204_s5] sm:$0xff]  }
 0x402   :  { %v949_v35 = vpack.c.bf16 %v946_v33, %v946_v33  ;;  %v2591_v33 = vld [vmem:[%s3205_s6 + $0x8] sm:$0xff]  }
 0x404   :  { %v2956_v36 = vrot.slane %v949_v35, 3  ;;  %v2592_v35 = vld [vmem:[%s3204_s5 + $0x8] sm:$0xff]  }
 0x406   :  { %2415 = vmatmul.mubr.msk.bf16.vlgmr.msra.gmra.mxu0 %vm47_vm1, %v2956_v36  ;;  %2423 = vmatmul.mubr.msk.bf16.vlgmr.msra.gmra.mxu1 %vm47_vm1, %v2956_v36 }
 0x407   :  { %2427 = vmatpush3.bf16.msra.mxu0 %v2783_v5  ;;  %2435 = vmatpush3.bf16.msra.mxu1 %v2791_v6 }
 0x408   :  { %2428 = vmatprep.subr.bf16.mxu0 %v2701_v0  ;;  %2436 = vmatprep.subr.bf16.mxu1 %v2701_v0 }
 0x409   :  { %2430 = vmatprep.mubr.msk.bf16.mxu0 %vm2702_vm0, %v2701_v0  ;;  %2438 = vmatprep.mubr.msk.bf16.mxu1 %vm2702_vm0, %v2701_v0 }
 0x40b   :  { %2429 = vmatpush3.bf16.msra.mxu0 %v2797_v8  ;;  %2437 = vmatpush3.bf16.msra.mxu1 %v2806_v9 }
 0x40c   :  { %2442 = vmatprep.subr.bf16.mxu0 %v2701_v0  ;;  %2450 = vmatprep.subr.bf16.mxu1 %v2701_v0 }
 0x40e   :  { %2431 = vmatmul.mubr.msk.bf16.vlgmr.msra.gmra.mxu0 %vm47_vm1, %v2956_v36  ;;  %2439 = vmatmul.mubr.msk.bf16.vlgmr.msra.gmra.mxu1 %vm47_vm1, %v2956_v36 }
 0x40f   :  { %2443 = vmatpush3.bf16.msra.mxu0 %v2754_v1  ;;  %2451 = vmatpush3.bf16.msra.mxu1 %v2759_v2  ;;  %v2116_v1 = vld [vmem:[%s3203_s0 + $0x20] sm:$0xff] }
 0x410   :  { %2444 = vmatprep.subr.bf16.mxu0 %v2701_v0  ;;  %2452 = vmatprep.subr.bf16.mxu1 %v2701_v0 }
 0x411   :  { %2446 = vmatprep.mubr.msk.bf16.mxu0 %vm2702_vm0, %v2701_v0  ;;  %2454 = vmatprep.mubr.msk.bf16.mxu1 %vm2702_vm0, %v2701_v0 }
 0x413   :  { %2445 = vmatpush3.bf16.msra.mxu0 %v2769_v3  ;;  %2453 = vmatpush3.bf16.msra.mxu1 %v2776_v4 }
 0x414   :  { %2458 = vmatprep.subr.bf16.mxu0 %v2701_v0  ;;  %2466 = vmatprep.subr.bf16.mxu1 %v2701_v0 }
 0x4c6   :  { %v989_v2 = vpop.f32.mrf.mxu0  ;;  %v1029_v34 = vpop.f32.mrf.mxu1 }
 0x4c7   :  { %v1115_v37 = vadd.f32 %v2116_v1, %v989_v2  ;;  %v1123_v38 = vrot.slane %v1029_v34, 6  ;;  %v2594_v2 = vld [vmem:[%s3204_s5] sm:$0xff]   ;;  %v2124_v34 = vld [vmem:[%s3203_s0 + $0x28] sm:$0xff] }
 0x4c8   :  { %v2416_v39 = vpop.f32.mrf.mxu0  ;;  %v2424_v40 = vpop.f32.mrf.mxu1 }
 0x4c9   :  { %v2121_v41 = vmul.f32 -1.442695, %v1115_v37  ;;  %v1125_v43 = vadd.f32 %v2116_v1, %v1123_v38 }
 0x4ca   :  { %v992_v44 = vpop.f32.mrf.mxu0  ;;  %v1032_v3 = vpop.f32.mrf.mxu1 }
 0x4cb   :  { %2669 = vpow2.f32 %v2121_v41  ;;  %v2122_v4 = vmul.f32 -1.442695, %v1125_v43 }
 0x4cc   :  { %v2417_v45 = vpop.f32.mrf.mxu0  ;;  %v2425_v46 = vpop.f32.mrf.mxu1 }
 0x4cd   :  { %2671 = vpow2.f32 %v2122_v4 }
 0x4ce   :  { %v1069_v47 = vpop.f32.mrf.mxu0  ;;  %v1109_v49 = vpop.f32.mrf.mxu1 }
 0x4cf   :  { %v1133_v50 = vrot.slane %v1069_v47, 4  ;;  %v1138_v51 = vrot.slane %v1109_v49, 2 }
 0x4d0   :  { %v2432_v52 = vpop.f32.mrf.mxu0  ;;  %v2440_v53 = vpop.f32.mrf.mxu1 }
 0x4d1   :  { %v1135_v57 = vadd.f32 %v2116_v1, %v1133_v50  ;;  %v1140_v58 = vadd.f32 %v2116_v1, %v1138_v51  ;;  %v2593_v1 = vld [vmem:[%s3205_s6] sm:$0xff]  }
 0x4d2   :  { %v1072_v54 = vpop.f32.mrf.mxu0  ;;  %v1112_v55 = vpop.f32.mrf.mxu1 }
 0x4d3   :  { %2673 = vtanh.f32 %v1135_v57  ;;  %v2123_v62 = vmul.f32 -1.442695, %v1140_v58 }
 0x4d4   :  { %v2433_v59 = vpop.f32.mrf.mxu0  ;;  %v2441_v60 = vpop.f32.mrf.mxu1 }
 0x4d8   :  { %v2670_v61 = vpop.eup %2669 }
 0x4d9   :  { %v1119_v63 = vadd.f32 1.0, %v2670_v61 }
 0x4da   :  { %v2672_v7 = vpop.eup %2671 }
 0x4db   :  { %2675 = vrcp.f32 %v1119_v63  ;;  %v1129_v10 = vadd.f32 1.0, %v2672_v7 }
 0x4dc   :  { %2677 = vpow2.f32 %v2123_v62 }
 0x4dd   :  { %2679 = vrcp.f32 %v1129_v10 }
 0x4e0   :  { %v2674_v11 = vpop.eup %2673 }
 0x4e1   :  { %v1149_v12 = vrot.slane %v2674_v11, 4 }
 0x4e8   :  { %v2676_v13 = vpop.eup %2675 }
 0x4e9   :  { %v2678_v14 = vpop.eup %2677  ;;  %v1151_v15 = vmul.f32 %v2676_v13, %v1149_v12 }
 0x4ea   :  { %v2680_v16 = vpop.eup %2679  ;;  %v1144_v20 = vadd.f32 1.0, %v2678_v14 }
 0x4eb   :  { %v1147_v17 = vmul.f32 %v2680_v16, %v2953_v28  ;;  %v1153_v18 = vrot.slane %v1151_v15, 6  ;;  %v2586_v28 = vld [vmem:[%s3204_s5] sm:$0xff]  }
 0x4ed   :  { %v2994_v19 = vadd.f32 %v1153_v18, %v1147_v17 }
 0x4ef   :  { %2681 = vtanh.f32 %v2994_v19 }
 0x4f0   :  { %2683 = vrcp.f32 %v1144_v20 }
 0x4fc   :  { %v2682_v21 = vpop.eup %2681 }
 0x4fd   :  { %v1158_v22 = vrot.slane %v2682_v21, 4  ;;  %v2684_v23 = vpop.eup %2683 }
 0x4ff   :  { %v1160_v24 = vmul.f32 %v2684_v23, %v1158_v22 }
 0x501   :  { %v1163_v25 = vpack.c.bf16 %v1160_v24, %v1160_v24 }
 0x503   :  { %v2997_v26 = vrot.slane %v1163_v25, 3 }
 0x505   :  { %2447 = vmatmul.mubr.msk.bf16.vlgmr.msra.gmra.mxu0 %vm47_vm1, %v2997_v26  ;;  %2455 = vmatmul.mubr.msk.bf16.vlgmr.msra.gmra.mxu1 %vm47_vm1, %v2997_v26 }
 0x506   :  { %2459 = vmatpush3.bf16.msra.mxu0 %v2783_v5  ;;  %2467 = vmatpush3.bf16.msra.mxu1 %v2791_v6  ;;  %v2581_v5 = vld [vmem:[%s3204_s5 + $0x8] sm:$0xff]   ;;  %v2582_v6 = vld [vmem:[%s3204_s5] sm:$0xff]  }
 0x507   :  { %2460 = vmatprep.subr.bf16.mxu0 %v2701_v0  ;;  %2468 = vmatprep.subr.bf16.mxu1 %v2701_v0 }
 0x508   :  { %2462 = vmatprep.mubr.msk.bf16.mxu0 %vm2702_vm0, %v2701_v0  ;;  %2470 = vmatprep.mubr.msk.bf16.mxu1 %vm2702_vm0, %v2701_v0 }
 0x50a   :  { %2461 = vmatpush3.bf16.msra.mxu0 %v2797_v8  ;;  %2469 = vmatpush3.bf16.msra.mxu1 %v2806_v9  ;;  %v2583_v8 = vld [vmem:[%s3204_s5 + $0x8] sm:$0xff]   ;;  %v2584_v9 = vld [vmem:[%s3204_s5] sm:$0xff]  }
 0x50b   :  { %2482 = vmatprep.subr.bf16.mxu1 %v2701_v0  ;;  %2474 = vmatprep.subr.bf16.mxu0 %v2701_v0 }
 0x50d   :  { %2463 = vmatmul.mubr.msk.bf16.vlgmr.msra.gmra.mxu0 %vm47_vm1, %v2997_v26  ;;  %2471 = vmatmul.mubr.msk.bf16.vlgmr.msra.gmra.mxu1 %vm47_vm1, %v2997_v26 }
 0x50e   :  { %2483 = vmatpush3.bf16.msra.mxu1 %v2581_v5  ;;  %2486 = vmatprep.mubr.msk.bf16.mxu1 %vm2702_vm0, %v2701_v0 }
 0x50f   :  { %2484 = vmatprep.subr.bf16.mxu1 %v2701_v0  ;;  %2478 = vmatprep.mubr.msk.bf16.mxu0 %vm2702_vm0, %v2701_v0 }
 0x510   :  { %2475 = vmatpush3.bf16.msra.mxu0 %v2591_v33 }
 0x511   :  { %2476 = vmatprep.subr.bf16.mxu0 %v2701_v0 }
 0x512   :  { %2485 = vmatpush3.bf16.msra.mxu1 %v2582_v6 }
 0x513   :  { %2498 = vmatprep.subr.bf16.mxu1 %v2701_v0 }
 0x514   :  { %2477 = vmatpush3.bf16.msra.mxu0 %v2593_v1 }
 0x515   :  { %2487 = vmatmul.mubr.msk.bf16.vlgmr.msra.gmra.mxu1 %vm47_vm1, %v2833_v56  ;;  %2490 = vmatprep.subr.bf16.mxu0 %v2701_v0 }
 0x516   :  { %2499 = vmatpush3.bf16.msra.mxu1 %v2583_v8  ;;  %2502 = vmatprep.mubr.msk.bf16.mxu1 %vm2702_vm0, %v2701_v0 }
 0x517   :  { %2500 = vmatprep.subr.bf16.mxu1 %v2701_v0 }
 0x51a   :  { %2501 = vmatpush3.bf16.msra.mxu1 %v2584_v9 }
 0x51b   :  { %2514 = vmatprep.subr.bf16.mxu1 %v2701_v0 }
 0x51d   :  { %2503 = vmatmul.mubr.msk.bf16.vlgmr.msra.gmra.mxu1 %vm47_vm1, %v2874_v48 }
 0x51e   :  { %2515 = vmatpush3.bf16.msra.mxu1 %v2585_v27  ;;  %2518 = vmatprep.mubr.msk.bf16.mxu1 %vm2702_vm0, %v2701_v0 }
 0x51f   :  { %2516 = vmatprep.subr.bf16.mxu1 %v2701_v0 }
 0x522   :  { %2517 = vmatpush3.bf16.msra.mxu1 %v2586_v28 }
 0x523   :  { %2530 = vmatprep.subr.bf16.mxu1 %v2701_v0 }
 0x525   :  { %2519 = vmatmul.mubr.msk.bf16.vlgmr.msra.gmra.mxu1 %vm47_vm1, %v2915_v42 }
 0x526   :  { %2531 = vmatpush3.bf16.msra.mxu1 %v2587_v29  ;;  %2534 = vmatprep.mubr.msk.bf16.mxu1 %vm2702_vm0, %v2701_v0 }
 0x527   :  { %2532 = vmatprep.subr.bf16.mxu1 %v2701_v0 }
 0x52a   :  { %2533 = vmatpush3.bf16.msra.mxu1 %v2588_v30 }
 0x52b   :  { %2546 = vmatprep.subr.bf16.mxu1 %v2701_v0 }
 0x52d   :  { %2535 = vmatmul.mubr.msk.bf16.vlgmr.msra.gmra.mxu1 %vm47_vm1, %v2956_v36 }
 0x52e   :  { %2547 = vmatpush3.bf16.msra.mxu1 %v2589_v31  ;;  %2550 = vmatprep.mubr.msk.bf16.mxu1 %vm2702_vm0, %v2701_v0 }
 0x52f   :  { %2548 = vmatprep.subr.bf16.mxu1 %v2701_v0 }
 0x532   :  { %2549 = vmatpush3.bf16.msra.mxu1 %v2590_v32 }
 0x533   :  { %2562 = vmatprep.subr.bf16.mxu1 %v2701_v0 }
 0x535   :  { %2551 = vmatmul.mubr.msk.bf16.vlgmr.msra.gmra.mxu1 %vm47_vm1, %v2997_v26 }
 0x536   :  { %2566 = vmatprep.mubr.msk.bf16.mxu1 %vm2702_vm0, %v2701_v0  ;;  %2563 = vmatpush3.bf16.msra.mxu1 %v2592_v35 }
 0x537   :  { %2564 = vmatprep.subr.bf16.mxu1 %v2701_v0 }
 0x53a   :  { %2565 = vmatpush3.bf16.msra.mxu1 %v2594_v2 }
 0x5c5   :  { %v1203_v37 = vpop.f32.mrf.mxu0  ;;  %v1243_v38 = vpop.f32.mrf.mxu1 }
 0x5c6   :  { %v1329_v39 = vadd.f32 %v2124_v34, %v1203_v37  ;;  %v1337_v40 = vrot.slane %v1243_v38, 6 }
 0x5c7   :  { %v2448_v41 = vpop.f32.mrf.mxu0  ;;  %v2456_v43 = vpop.f32.mrf.mxu1 }
 0x5c8   :  { %v2129_v44 = vmul.f32 -1.442695, %v1329_v39  ;;  %v1339_v3 = vadd.f32 %v2124_v34, %v1337_v40 }
 0x5c9   :  { %v1206_v4 = vpop.f32.mrf.mxu0  ;;  %v1246_v45 = vpop.f32.mrf.mxu1 }
 0x5ca   :  { %2685 = vpow2.f32 %v2129_v44  ;;  %v2130_v46 = vmul.f32 -1.442695, %v1339_v3  ;;  %v2595_v3 = vld [vmem:[%s3205_s6 + $0x8] sm:$0xff]   ;;  %v2596_v45 = vld [vmem:[%s3205_s6] sm:$0xff]  }
 0x5cb   :  { %v2449_v47 = vpop.f32.mrf.mxu0  ;;  %v2457_v49 = vpop.f32.mrf.mxu1 }
 0x5cc   :  { %2687 = vpow2.f32 %v2130_v46  ;;  %v2597_v46 = vld [vmem:[%s3205_s6 + $0x8] sm:$0xff]   ;;  %v2598_v47 = vld [vmem:[%s3205_s6] sm:$0xff]  }
 0x5cd   :  { %v1283_v50 = vpop.f32.mrf.mxu0  ;;  %v1323_v51 = vpop.f32.mrf.mxu1  ;;  %v2599_v49 = vld [vmem:[%s3205_s6 + $0x8] sm:$0xff]  }
 0x5ce   :  { %v1347_v52 = vrot.slane %v1283_v50, 4  ;;  %v1352_v53 = vrot.slane %v1323_v51, 2  ;;  %v2601_v50 = vld [vmem:[%s3205_s6 + $0x8] sm:$0xff]  }
 0x5cf   :  { %v2464_v54 = vpop.f32.mrf.mxu0  ;;  %v2472_v55 = vpop.f32.mrf.mxu1  ;;  %v2603_v51 = vld [vmem:[%s3205_s6 + $0x8] sm:$0xff]  }
 0x5d0   :  { %v1349_v59 = vadd.f32 %v2124_v34, %v1347_v52  ;;  %v1354_v60 = vadd.f32 %v2124_v34, %v1352_v53  ;;  %v2138_v52 = vld [vmem:[%s3206_s7] ss:$0 sm:$0xff] }
 0x5d1   :  { %v1286_v57 = vpop.f32.mrf.mxu0  ;;  %v1326_v58 = vpop.f32.mrf.mxu1 }
 0x5d2   :  { %2689 = vtanh.f32 %v1349_v59  ;;  %v2131_v10 = vmul.f32 -1.442695, %v1354_v60 }
 0x5d3   :  { %v2465_v61 = vpop.f32.mrf.mxu0  ;;  %v2473_v62 = vpop.f32.mrf.mxu1 }
 0x5d5   :  { %v3101_v63 = vpop.f32.mrf.mxu1 }
 0x5d7   :  { %v2686_v7 = vpop.eup %2685  ;;  %v2488_v11 = vpop.f32.mrf.mxu1 }
 0x5d8   :  { %v1333_v12 = vadd.f32 1.0, %v2686_v7 }
 0x5d9   :  { %v2688_v13 = vpop.eup %2687  ;;  %v1491_v14 = vpop.f32.mrf.mxu1 }
 0x5da   :  { %2691 = vrcp.f32 %v1333_v12  ;;  %v1343_v15 = vadd.f32 1.0, %v2688_v13 }
 0x5db   :  { %2693 = vpow2.f32 %v2131_v10  ;;  %v2489_v16 = vpop.f32.mrf.mxu1 }
 0x5dc   :  { %2695 = vrcp.f32 %v1343_v15 }
 0x5dd   :  { %v3103_v17 = vpop.f32.mrf.mxu1 }
 0x5df   :  { %v2504_v18 = vpop.f32.mrf.mxu1  ;;  %v2690_v21 = vpop.eup %2689 }
 0x5e0   :  { %v1363_v24 = vrot.slane %v2690_v21, 4 }
 0x5e1   :  { %v1611_v20 = vpop.f32.mrf.mxu1 }
 0x5e3   :  { %v2505_v22 = vpop.f32.mrf.mxu1 }
 0x5e5   :  { %v3105_v23 = vpop.f32.mrf.mxu1 }
 0x5e7   :  { %v2692_v25 = vpop.eup %2691  ;;  %v2520_v5 = vpop.f32.mrf.mxu1 }
 0x5e8   :  { %v2694_v6 = vpop.eup %2693  ;;  %v1365_v8 = vmul.f32 %v2692_v25, %v1363_v24 }
 0x5e9   :  { %v2696_v9 = vpop.eup %2695  ;;  %v1726_v27 = vpop.f32.mrf.mxu1  ;;  %v1358_v32 = vadd.f32 1.0, %v2694_v6 }
 0x5ea   :  { %v1361_v28 = vmul.f32 %v2696_v9, %v2994_v19  ;;  %v1367_v29 = vrot.slane %v1365_v8, 6 }
 0x5eb   :  { %v2521_v30 = vpop.f32.mrf.mxu1 }
 0x5ec   :  { %v1369_v31 = vadd.f32 %v1367_v29, %v1361_v28 }
 0x5ed   :  { %v3108_v33 = vpop.f32.mrf.mxu1 }
 0x5ee   :  { %2697 = vtanh.f32 %v1369_v31 }
 0x5ef   :  { %v2536_v35 = vpop.f32.mrf.mxu1  ;;  %2699 = vrcp.f32 %v1358_v32 }
 0x5f1   :  { %v1841_v1 = vpop.f32.mrf.mxu1 }
 0x5f3   :  { %v2537_v2 = vpop.f32.mrf.mxu1 }
 0x5f5   :  { %v3110_v34 = vpop.f32.mrf.mxu1 }
 0x5f7   :  { %v2552_v37 = vpop.f32.mrf.mxu1 }
 0x5f9   :  { %v1956_v38 = vpop.f32.mrf.mxu1 }
 0x5fb   :  { %v2698_v39 = vpop.eup %2697  ;;  %v2553_v40 = vpop.f32.mrf.mxu1 }
 0x5fc   :  { %v1372_v41 = vrot.slane %v2698_v39, 4  ;;  %v2700_v43 = vpop.eup %2699 }
 0x5fe   :  { %v1374_v19 = vmul.f32 %v2700_v43, %v1372_v41 }
 0x600   :  { %v1380_v44 = vpack.c.bf16 %v1374_v19, %v1374_v19 }
 0x602   :  { %v1386_v4 = vrot.slane %v1380_v44, 3 }
 0x604   :  { %2479 = vmatmul.mubr.msk.bf16.vlgmr.msra.gmra.mxu0 %vm47_vm1, %v1386_v4  ;;  %2567 = vmatmul.mubr.msk.bf16.vlgmr.msra.gmra.mxu1 %vm47_vm1, %v1386_v4 }
 0x605   :  { %2491 = vmatpush3.bf16.msra.mxu0 %v2595_v3  ;;  %2494 = vmatprep.mubr.msk.bf16.mxu0 %vm2702_vm0, %v2701_v0 }
 0x606   :  { %2492 = vmatprep.subr.bf16.mxu0 %v2701_v0 }
 0x609   :  { %2493 = vmatpush3.bf16.msra.mxu0 %v2596_v45 }
 0x60a   :  { %2506 = vmatprep.subr.bf16.mxu0 %v2701_v0 }
 0x60c   :  { %2495 = vmatmul.mubr.msk.bf16.vlgmr.msra.gmra.mxu0 %vm47_vm1, %v2997_v26  ;;  %v2600_v26 = vld [vmem:[%s3205_s6] sm:$0xff]  }
 0x60d   :  { %2507 = vmatpush3.bf16.msra.mxu0 %v2597_v46  ;;  %2510 = vmatprep.mubr.msk.bf16.mxu0 %vm2702_vm0, %v2701_v0 }
 0x60e   :  { %2508 = vmatprep.subr.bf16.mxu0 %v2701_v0 }
 0x611   :  { %2509 = vmatpush3.bf16.msra.mxu0 %v2598_v47 }
 0x612   :  { %2522 = vmatprep.subr.bf16.mxu0 %v2701_v0 }
 0x614   :  { %2511 = vmatmul.mubr.msk.bf16.vlgmr.msra.gmra.mxu0 %vm47_vm1, %v2956_v36  ;;  %v2602_v36 = vld [vmem:[%s3205_s6] sm:$0xff]  }
 0x615   :  { %2523 = vmatpush3.bf16.msra.mxu0 %v2599_v49  ;;  %2526 = vmatprep.mubr.msk.bf16.mxu0 %vm2702_vm0, %v2701_v0 }
 0x616   :  { %2524 = vmatprep.subr.bf16.mxu0 %v2701_v0 }
 0x619   :  { %2525 = vmatpush3.bf16.msra.mxu0 %v2600_v26 }
 0x61a   :  { %2538 = vmatprep.subr.bf16.mxu0 %v2701_v0 }
 0x61c   :  { %2527 = vmatmul.mubr.msk.bf16.vlgmr.msra.gmra.mxu0 %vm47_vm1, %v2915_v42  ;;  %v2604_v42 = vld [vmem:[%s3205_s6] sm:$0xff]  }
 0x61d   :  { %2539 = vmatpush3.bf16.msra.mxu0 %v2601_v50  ;;  %2542 = vmatprep.mubr.msk.bf16.mxu0 %vm2702_vm0, %v2701_v0 }
 0x61e   :  { %2540 = vmatprep.subr.bf16.mxu0 %v2701_v0 }
 0x621   :  { %2541 = vmatpush3.bf16.msra.mxu0 %v2602_v36 }
 0x622   :  { %2554 = vmatprep.subr.bf16.mxu0 %v2701_v0 }
 0x624   :  { %2543 = vmatmul.mubr.msk.bf16.vlgmr.msra.gmra.mxu0 %vm47_vm1, %v2874_v48 }
 0x625   :  { %2555 = vmatpush3.bf16.msra.mxu0 %v2603_v51  ;;  %2558 = vmatprep.mubr.msk.bf16.mxu0 %vm2702_vm0, %v2701_v0 }
 0x626   :  { %2556 = vmatprep.subr.bf16.mxu0 %v2701_v0 }
 0x629   :  { %2557 = vmatpush3.bf16.msra.mxu0 %v2604_v42 }
 0x62c   :  { %2559 = vmatmul.mubr.msk.bf16.vlgmr.msra.gmra.mxu0 %vm47_vm1, %v2833_v56 }
 0x6c4   :  { %v1436_v53 = vpop.f32.mrf.mxu0  ;;  %v2068_v48 = vpop.f32.mrf.mxu1 }
 0x6c5   :  { %v1489_v54 = vadd.f32 %v3101_v63, %v1436_v53 }
 0x6c6   :  { %v2480_v55 = vpop.f32.mrf.mxu0  ;;  %v2568_v57 = vpop.f32.mrf.mxu1 }
 0x6c7   :  { %v1500_v58 = vadd.f32 %v2138_v52, %v1489_v54 }
 0x6c8   :  { %v1439_v59 = vpop.f32.mrf.mxu0  ;;  %v2071_v60 = vpop.f32.mrf.mxu1 }
 0x6c9   :  { %1501 = vst [vmem:[%s3207_s8] sm:$0x3] %v1500_v58 }
 0x6ca   :  { %v2481_v0 = vpop.f32.mrf.mxu0  ;;  %v2569_v61 = vpop.f32.mrf.mxu1 }
 0x6cc   :  { %v1556_v56 = vpop.f32.mrf.mxu0 }
 0x6cd   :  { %v1609_v62 = vadd.f32 %v3103_v17, %v1556_v56 }
 0x6ce   :  { %v2496_v7 = vpop.f32.mrf.mxu0 }
 0x6cf   :  { %v1614_v10 = vadd.f32 %v2138_v52, %v1609_v62 }
 0x6d0   :  { %v1559_v11 = vpop.f32.mrf.mxu0 }
 0x6d1   :  { %2145 = vst [vmem:[%s3207_s8 + $0x2] sm:$0x3] %v1614_v10 }
 0x6d2   :  { %v2497_v63 = vpop.f32.mrf.mxu0 }
 0x6d4   :  { %v1671_v12 = vpop.f32.mrf.mxu0 }
 0x6d5   :  { %v1724_v13 = vadd.f32 %v3105_v23, %v1671_v12 }
 0x6d6   :  { %v2512_v14 = vpop.f32.mrf.mxu0 }
 0x6d7   :  { %v1729_v15 = vadd.f32 %v2138_v52, %v1724_v13 }
 0x6d8   :  { %v1674_v16 = vpop.f32.mrf.mxu0 }
 0x6d9   :  { %2152 = vst [vmem:[%s3207_s8 + $0x4] sm:$0x3] %v1729_v15 }
 0x6da   :  { %v2513_v18 = vpop.f32.mrf.mxu0 }
 0x6dc   :  { %v1786_v17 = vpop.f32.mrf.mxu0 }
 0x6dd   :  { %v1839_v20 = vadd.f32 %v3108_v33, %v1786_v17 }
 0x6de   :  { %v2528_v21 = vpop.f32.mrf.mxu0 }
 0x6df   :  { %v1844_v22 = vadd.f32 %v2138_v52, %v1839_v20 }
 0x6e0   :  { %v1789_v24 = vpop.f32.mrf.mxu0 }
 0x6e1   :  { %2159 = vst [vmem:[%s3207_s8 + $0x6] sm:$0x3] %v1844_v22 }
 0x6e2   :  { %v2529_v25 = vpop.f32.mrf.mxu0 }
 0x6e4   :  { %v1901_v23 = vpop.f32.mrf.mxu0 }
 0x6e5   :  { %v1954_v5 = vadd.f32 %v3110_v34, %v1901_v23 }
 0x6e6   :  { %v2544_v6 = vpop.f32.mrf.mxu0 }
 0x6e7   :  { %v1959_v8 = vadd.f32 %v2138_v52, %v1954_v5 }
 0x6e8   :  { %v1904_v9 = vpop.f32.mrf.mxu0 }
 0x6e9   :  { %2166 = vst [vmem:[%s3207_s8 + $0x8] sm:$0x3] %v1959_v8 }
 0x6ea   :  { %v2545_v27 = vpop.f32.mrf.mxu0 }
 0x6ec   :  { %v2016_v28 = vpop.f32.mrf.mxu0 }
 0x6ed   :  { %v2069_v29 = vadd.f32 %v2068_v48, %v2016_v28 }
 0x6ee   :  { %v2560_v30 = vpop.f32.mrf.mxu0 }
 0x6ef   :  { %v2074_v31 = vadd.f32 %v2138_v52, %v2069_v29 }
 0x6f0   :  { %v2019_v32 = vpop.f32.mrf.mxu0 }
 0x6f1   :  { %2173 = vst [vmem:[%s3207_s8 + $0xa] sm:$0x3] %v2074_v31 }
 0x6f2   :  { %v2561_v33 = vpop.f32.mrf.mxu0 }

// kernel: flat_forward.2
= control target key start
LH: loop header
LB: loop body
LE: loop exit
PB: predicated region body
PF: predicated region fallthrough
CT: control target
= control target key end

     0   :  { %v5669_v0 = vmov 0.0   ;;  %vm5670_vm0 = vmmov 0   ;;  %vm97_vm1 = vcmask 130048   ;;  %vm252_vm2 = vcmask 261120   ;;  %s6686_s5 = inlined_call_operand.vmem [shape: bf16[16,32], index: 5, kind: input, shape index: {}]   ;;  %s6687_s4 = inlined_call_operand.vmem [shape: bf16[16,32], index: 4, kind: input, shape index: {}]   ;;  %s6688_s1 = inlined_call_operand.vmem [shape: f32[2,8,16], index: 1, kind: input, shape index: {}]   ;;  %s6689_s0 = inlined_call_operand.vmem [shape: f32[2,8,16], index: 0, kind: input, shape index: {}]   ;;  %s6690_s7 = inlined_call_operand.vmem [shape: bf16[8,32,8], index: 7, kind: input, shape index: {}]   ;;  %s6691_s8 = inlined_call_operand.vmem [shape: bf16[8,32,8], index: 8, kind: input, shape index: {}]   ;;  %s6692_s9 = inlined_call_operand.vmem [shape: bf16[8,32,8], index: 9, kind: input, shape index: {}]   ;;  %s6693_s6 = inlined_call_operand.vmem [shape: f32[1,32], index: 6, kind: input, shape index: {}]   ;;  %s6694_s2 = inlined_call_operand.vmem [shape: f32[8,32], index: 2, kind: input, shape index: {}]   ;;  %s6695_s11 = inlined_call_operand.vmem [shape: f32[8,1,8], index: 11, kind: input, shape index: {}]   ;;  %s6696_s10 = inlined_call_operand.vmem [shape: f32[8,1,8], index: 10, kind: input, shape index: {}]   ;;  %s6697_s12 = inlined_call_operand.vmem [shape: f32[8,1,8], index: 12, kind: input, shape index: {}]   ;;  %s6698_s3 = inlined_call_operand.vmem [shape: f32[2,1,8], index: 3, kind: input, shape index: {}]   ;;  %s6699_s13 = inlined_call_operand.vmem [shape: bf16[8,8,32], index: 13, kind: input, shape index: {}]   ;;  %s6700_s14 = inlined_call_operand.vmem [shape: f32[2,1,32], index: 14, kind: input, shape index: {}]   ;;  %s6701_s17 = inlined_call_operand.vmem [shape: bf16[2,32,64], index: 17, kind: input, shape index: {}]   ;;  %s6702_s19 = inlined_call_operand.vmem [shape: bf16[2,64,32], index: 19, kind: input, shape index: {}]   ;;  %s6703_s15 = inlined_call_operand.vmem [shape: f32[2,1,32], index: 15, kind: input, shape index: {}]   ;;  %s6704_s16 = inlined_call_operand.vmem [shape: f32[2,1,32], index: 16, kind: input, shape index: {}]   ;;  %s6705_s18 = inlined_call_operand.vmem [shape: f32[2,1,64], index: 18, kind: input, shape index: {}]   ;;  %s6706_s20 = inlined_call_operand.vmem [shape: f32[2,1,32], index: 20, kind: input, shape index: {}]   ;;  %s6707_s21 = inlined_call_operand.vmem [shape: f32[2,1,32], index: 21, kind: input, shape index: {}]   ;;  %s6708_s22 = inlined_call_operand.vmem [shape: f32[2,1,32], index: 22, kind: input, shape index: {}]   ;;  %s6709_s23 = inlined_call_operand.vmem [shape: bf16[32,128], index: 23, kind: input, shape index: {}]   ;;  %s6710_s24 = inlined_call_operand.vmem [shape: f32[1,128], index: 24, kind: input, shape index: {}]   ;;  %s6711_s25 = inlined_call_operand.vmem [shape: f32[2,6,128], index: 25, kind: output, shape index: {}]  }
   0x1   :  { %6718 = sst [smem:[#allocation2_spill]] %s6686_s5  ;;  %5030 = vmatprep.subr.bf16.mxu0 %v5669_v0  ;;  %5036 = vmatprep.subr.bf16.mxu1 %v5669_v0  ;;  %v4554_v35 = vld [vmem:[%s6696_s10] ss:$0 sm:$0xff]  ;;  %vm433_vm3 = vcmask 64512   ;;  %vm553_vm4 = vcmask 1043456   ;;  %vm2254_vm6 = vcmask 523264  }
   0x2   :  { %6719 = sst [smem:[#allocation3_spill]] %s6687_s4  ;;  %5032 = vmatprep.mubr.msk.bf16.mxu0 %vm5670_vm0, %v5669_v0  ;;  %5038 = vmatprep.mubr.msk.bf16.mxu1 %vm5670_vm0, %v5669_v0  ;;  %v4562_v49 = vld [vmem:[%s6697_s12] ss:$0 sm:$0xff] }
   0x3   :  { %6720 = sst [smem:[#allocation4_spill]] %s6688_s1 }
   0x4   :  { %6721 = sst [smem:[#allocation5_spill]] %s6689_s0 }
   0x5   :  { %6722 = sst [smem:[#allocation6_spill]] %s6690_s7 }
   0x6   :  { %6723 = sst [smem:[#allocation7_spill]] %s6691_s8 }
   0x7   :  { %6724 = sst [smem:[#allocation8_spill]] %s6692_s9 }
   0x8   :  { %6725 = sst [smem:[#allocation9_spill]] %s6693_s6 }
   0x9   :  { %6726 = sst [smem:[#allocation10_spill]] %s6694_s2 }
   0xa   :  { %6727 = sst [smem:[#allocation11_spill]] %s6695_s11 }
   0xb   :  { %s6728_s9 = sld [smem:[#allocation2_spill]] }
   0xc   :  { %s6729_s0 = sld [smem:[#allocation3_spill]] }
   0xd   :  { %s6730_s4 = sld [smem:[#allocation4_spill]] }
   0xe   :  { %s6731_s8 = sld [smem:[#allocation5_spill]] }
   0xf   :  { %s6732_s30 = sld [smem:[#allocation6_spill]] }
  0x10   :  { %s6733_s2 = sld [smem:[#allocation7_spill]] }
  0x11   :  { %v5525_v1 = vld [vmem:[%s6728_s9] sm:$0xff]   ;;  %s6735_s5 = sld [smem:[#allocation10_spill]] }
  0x12   :  { %v5526_v2 = vld [vmem:[%s6729_s0] sm:$0xff]   ;;  %5031 = vmatpush3.bf16.msra.mxu0 %v5525_v1  ;;  %s6736_s0 = sld [smem:[#allocation8_spill]] }
  0x13   :  { %v84_v3 = vld [vmem:[%s6730_s4] sm:$0xff]  ;;  %v85_v4 = vld [vmem:[%s6730_s4 + $0x8] sm:$0xff]  ;;  %5037 = vmatpush3.bf16.msra.mxu1 %v5526_v2  ;;  %5042 = vmatprep.subr.bf16.mxu0 %v5669_v0  ;;  %s6737_s28 = sld [smem:[#allocation11_spill]] }
  0x14   :  { %v81_v5 = vld [vmem:[%s6731_s8] sm:$0xff]  ;;  %v86_v6 = vpack.c.bf16 %v85_v4, %v84_v3  ;;  %v82_v7 = vld [vmem:[%s6731_s8 + $0x8] sm:$0xff]  ;;  %5050 = vmatprep.subr.bf16.mxu1 %v5669_v0  ;;  %s6734_s8 = sld [smem:[#allocation9_spill]]  ;;  %v206_v4 = vlaneseq }
  0x15   :  { %v83_v8 = vpack.c.bf16 %v82_v7, %v81_v5  ;;  %v5527_v9 = vld [vmem:[%s6732_s30 + $0x8] sm:$0xff]   ;;  %v5529_v11 = vld [vmem:[%s6732_s30] sm:$0xff]  }
  0x16   :  { %5033 = vmatmul.mubr.msk.bf16.vlgmr.msra.gmra.mxu0 %vm97_vm1, %v86_v6  ;;  %v5528_v10 = vld [vmem:[%s6733_s2 + $0x8] sm:$0xff]   ;;  %v5530_v12 = vld [vmem:[%s6733_s2] sm:$0xff]   ;;  %v207_v5 = vshrl.u32 %v206_v4, 7  ;;  %v209_v6 = vand.u32 127, %v206_v4 }
  0x17   :  { %5039 = vmatmul.mubr.msk.bf16.vlgmr.msra.gmra.mxu1 %vm97_vm1, %v83_v8  ;;  %5046 = vmatprep.mubr.msk.bf16.mxu0 %vm5670_vm0, %v5669_v0  ;;  %v203_v27 = vld [vmem:[%s6735_s5] sm:$0xff]  ;;  %v5671_v8 = vmov -1e+30  }
  0x18   :  { %5054 = vmatprep.mubr.msk.bf16.mxu1 %vm5670_vm0, %v5669_v0  ;;  %5043 = vmatpush3.bf16.msra.mxu0 %v5527_v9  ;;  %v5531_v31 = vld [vmem:[%s6736_s0 + $0x8] sm:$0xff]   ;;  %v5532_v33 = vld [vmem:[%s6736_s0] sm:$0xff]   ;;  %vm210_vm5 = vcmp.le.s32.totalorder %v209_v6, %v207_v5 }
  0x19   :  { %5051 = vmatpush3.bf16.msra.mxu1 %v5528_v10  ;;  %5044 = vmatprep.subr.bf16.mxu0 %v5669_v0  ;;  %v4558_v34 = vld [vmem:[%s6737_s28] ss:$0 sm:$0xff]  ;;  %v4553_v7 = vld [vmem:[%s6698_s3 + $0x1] ss:$0 sm:$0xff]  ;;  %v211_v9 = vsel %vm210_vm5, 0.0, %v5671_v8 }
  0x1a   :  { %5052 = vmatprep.subr.bf16.mxu1 %v5669_v0  ;;  %v4551_v15 = vld [vmem:[%s6734_s8] ss:$0 sm:$0xff] }
  0x1b   :  { %v4552_v10 = vld [vmem:[%s6698_s3] ss:$0 sm:$0xff] }
  0x1c   :  { %5045 = vmatpush3.bf16.msra.mxu0 %v5529_v11 }
  0x1d   :  { %5053 = vmatpush3.bf16.msra.mxu1 %v5530_v12  ;;  %5058 = vmatprep.subr.bf16.mxu0 %v5669_v0  ;;  %v5911_v12 = vadd.f32 %v4553_v7, %v211_v9 }
  0x1e   :  { %5066 = vmatprep.subr.bf16.mxu1 %v5669_v0 }
  0xd6   :  { %v135_v13 = vpop.f32.mrf.mxu0 }
  0xd7   :  { %v185_v14 = vpop.f32.mrf.mxu1 }
  0xd8   :  { %v186_v16 = vadd.f32 %v185_v14, %v135_v13  ;;  %v5034_v17 = vpop.f32.mrf.mxu0  ;;  %v5913_v14 = vadd.f32 %v4552_v10, %v211_v9 }
  0xd9   :  { %v5040_v18 = vpop.f32.mrf.mxu1 }
  0xda   :  { %v199_v19 = vadd.f32 %v4551_v15, %v186_v16  ;;  %v138_v20 = vpop.f32.mrf.mxu0 }
  0xdb   :  { %v188_v21 = vpop.f32.mrf.mxu1 }
  0xdc   :  { %v189_v22 = vadd.f32 %v188_v21, %v138_v20  ;;  %v5035_v23 = vpop.f32.mrf.mxu0  ;;  %v201_v25 = vmul.f32 5.656854, %v199_v19 }
  0xdd   :  { %v5041_v24 = vpop.f32.mrf.mxu1 }
  0xde   :  { %v200_v26 = vadd.f32 %v4551_v15, %v189_v22  ;;  %v5854_v29 = vadd.f32 %v203_v27, %v201_v25 }
  0xe0   :  { %v202_v28 = vmul.f32 5.656854, %v200_v26 }
  0xe2   :  { %v5856_v30 = vadd.f32 %v203_v27, %v202_v28 }
  0xe4   :  { %v5863_v32 = vpack.c.bf16 %v5856_v30, %v5854_v29 }
  0xe6   :  { %5047 = vmatmul.mubr.msk.bf16.vlgmr.msra.gmra.mxu0 %vm252_vm2, %v5863_v32  ;;  %5055 = vmatmul.mubr.msk.bf16.vlgmr.msra.gmra.mxu1 %vm252_vm2, %v5863_v32 }
  0xe7   :  { %5059 = vmatpush3.bf16.msra.mxu0 %v5531_v31  ;;  %5062 = vmatprep.mubr.msk.bf16.mxu0 %vm5670_vm0, %v5669_v0 }
  0xe8   :  { %5060 = vmatprep.subr.bf16.mxu0 %v5669_v0  ;;  %5068 = vmatprep.mubr.msk.bf16.mxu1 %vm5670_vm0, %v5669_v0 }
  0xeb   :  { %5061 = vmatpush3.bf16.msra.mxu0 %v5532_v33 }
  0xec   :  { %5072 = vmatprep.subr.bf16.mxu0 %v5669_v0 }
  0xee   :  { %5063 = vmatmul.mubr.msk.bf16.vlgmr.msra.gmra.mxu0 %vm252_vm2, %v5863_v32 }
  0xef   :  { %5074 = vmatprep.mubr.msk.bf16.mxu0 %vm5670_vm0, %v5669_v0 }
 0x1a6   :  { %v290_v36 = vpop.f32.mrf.mxu0  ;;  %v356_v37 = vpop.f32.mrf.mxu1 }
 0x1a7   :  { %v357_v38 = vadd.f32 %v4558_v34, %v356_v37  ;;  %v291_v41 = vadd.f32 %v4554_v35, %v290_v36 }
 0x1a8   :  { %v5048_v39 = vpop.f32.mrf.mxu0  ;;  %v5056_v40 = vpop.f32.mrf.mxu1 }
 0x1a9   :  { %v429_v42 = vpack.c.bf16 %v357_v38, %v357_v38  ;;  %v297_v50 = vmul.f32 0.35355338, %v291_v41 }
 0x1aa   :  { %v293_v43 = vpop.f32.mrf.mxu0  ;;  %v359_v44 = vpop.f32.mrf.mxu1 }
 0x1ab   :  { %v438_v45 = vsel %vm433_vm3, %v429_v42, 0  ;;  %v360_v46 = vadd.f32 %v4558_v34, %v359_v44  ;;  %v294_v51 = vadd.f32 %v4554_v35, %v293_v43  ;;  %v427_v57 = vpack.c.bf16 %v297_v50, %v297_v50  ;;  %v5533_v42 = vld [vmem:[%s6733_s2 + $0x18] sm:$0xff]  }
 0x1ac   :  { %v5049_v47 = vpop.f32.mrf.mxu0  ;;  %v5057_v48 = vpop.f32.mrf.mxu1  ;;  %5067 = vmatpush3.bf16.xpose.msra.mxu1 %v438_v45  ;;  %v5537_v50 = vld [vmem:[%s6736_s0 + $0x18] sm:$0xff]  }
 0x1ad   :  { %v430_v52 = vpack.c.bf16 %v360_v46, %v360_v46  ;;  %5078 = vmatprep.subr.bf16.mxu1 %v5669_v0  ;;  %v298_v58 = vmul.f32 0.35355338, %v294_v51  ;;  %v5534_v46 = vld [vmem:[%s6732_s30 + $0x18] sm:$0xff]   ;;  %v5535_v47 = vld [vmem:[%s6733_s2 + $0x10] sm:$0xff]  }
 0x1ae   :  { %v420_v53 = vpop.f32.mrf.mxu0  ;;  %v5538_v51 = vld [vmem:[%s6736_s0 + $0x10] sm:$0xff]  }
 0x1af   :  { %v484_v54 = vsel %vm433_vm3, %v430_v52, 0  ;;  %v421_v55 = vadd.f32 %v4562_v49, %v420_v53  ;;  %v428_v1 = vpack.c.bf16 %v298_v58, %v298_v58 }
 0x1b0   :  { %v5064_v56 = vpop.f32.mrf.mxu0  ;;  %5073 = vmatpush3.bf16.xpose.msra.mxu0 %v484_v54 }
 0x1b1   :  { %v431_v59 = vpack.c.bf16 %v421_v55, %v421_v55  ;;  %5084 = vmatprep.subr.bf16.mxu0 %v5669_v0 }
 0x1b2   :  { %v423_v60 = vpop.f32.mrf.mxu0 }
 0x1b3   :  { %v555_v61 = vsel %vm553_vm4, %v431_v59, 0  ;;  %v424_v62 = vadd.f32 %v4562_v49, %v423_v60  ;;  %5069 = vmatmul.mubr.msk.bf16.vlgmr.msra.gmra.mxu1 %vm433_vm3, %v427_v57  ;;  %v5536_v49 = vld [vmem:[%s6732_s30 + $0x10] sm:$0xff]   ;;  %v4584_v59 = vld [vmem:[%s6737_s28 + $0x1] ss:$0 sm:$0xff] }
 0x1b4   :  { %v5065_v63 = vpop.f32.mrf.mxu0  ;;  %5079 = vmatpush3.bf16.msra.mxu1 %v555_v61  ;;  %5080 = vmatprep.mubr.msk.bf16.mxu1 %vm5670_vm0, %v5669_v0 }
 0x1b5   :  { %v432_v2 = vpack.c.bf16 %v424_v62, %v424_v62  ;;  %5090 = vmatprep.subr.bf16.mxu1 %v5669_v0 }
 0x1b7   :  { %v601_v3 = vsel %vm553_vm4, %v432_v2, 0  ;;  %5075 = vmatmul.mubr.msk.bf16.vlgmr.msra.gmra.mxu0 %vm433_vm3, %v428_v1  ;;  %v4575_v2 = vld [vmem:[%s6696_s10 + $0x1] ss:$0 sm:$0xff] }
 0x1b8   :  { %5085 = vmatpush3.bf16.msra.mxu0 %v601_v3  ;;  %5086 = vmatprep.mubr.msk.bf16.mxu0 %vm5670_vm0, %v5669_v0 }
 0x1b9   :  { %5098 = vmatprep.subr.bf16.mxu0 %v5669_v0 }
 0x273   :  { %v474_v11 = vpop.f32.mrf.mxu1 }
 0x274   :  { %v475_v20 = vadd.f32 %v474_v11, %v5913_v14 }
 0x275   :  { %v5070_v13 = vpop.f32.mrf.mxu1 }
 0x276   :  { %v526_v24 = vsel %vm433_vm3, %v475_v20, -inf }
 0x277   :  { %v477_v15 = vpop.f32.mrf.mxu1  ;;  %v520_v16 = vpop.f32.mrf.mxu0 }
 0x278   :  { %v521_v17 = vadd.f32 %v520_v16, %v5911_v12 }
 0x279   :  { %v5071_v18 = vpop.f32.mrf.mxu1  ;;  %v5076_v19 = vpop.f32.mrf.mxu0 }
 0x27a   :  { %v529_v21 = vsel %vm433_vm3, %v521_v17, -inf  ;;  %v4593_v19 = vld [vmem:[%s6697_s12 + $0x1] ss:$0 sm:$0xff] }
 0x27b   :  { %530 = vmax.xlane.f32.xlu0 %v529_v21  ;;  %v523_v22 = vpop.f32.mrf.mxu0 }
 0x27d   :  { %v5077_v23 = vpop.f32.mrf.mxu0 }
 0x27f   :  { %527 = vmax.xlane.f32.xlu0 %v526_v24 }
 0x304   :  { %v531_v25 = vpop.xlane.xlu0 %530 }
 0x305   :  { %v533_v26 = vsub.f32 %v521_v17, %v531_v25 }
 0x307   :  { %v536_v27 = vmul.f32 1.442695, %v533_v26 }
 0x308   :  { %v528_v28 = vpop.xlane.xlu0 %527 }
 0x309   :  { %5589 = vpow2.f32 %v536_v27  ;;  %v532_v31 = vsub.f32 %v475_v20, %v528_v28 }
 0x30b   :  { %v534_v33 = vmul.f32 1.442695, %v532_v31 }
 0x30d   :  { %5591 = vpow2.f32 %v534_v33 }
 0x316   :  { %v5590_v34 = vpop.eup %5589 }
 0x317   :  { %v541_v35 = vsel %vm433_vm3, %v5590_v34, 0.0 }
 0x318   :  { %542 = vadd.xlane.f32.xlu1 %v541_v35 }
 0x31a   :  { %v5592_v36 = vpop.eup %5591 }
 0x31b   :  { %v538_v37 = vsel %vm433_vm3, %v5592_v36, 0.0 }
 0x31c   :  { %539 = vadd.xlane.f32.xlu1 %v538_v37 }
 0x3a1   :  { %v543_v38 = vpop.xlane.xlu1 %542 }
 0x3a2   :  { %5593 = vrcp.f32 %v543_v38 }
 0x3a5   :  { %v540_v39 = vpop.xlane.xlu1 %539 }
 0x3a6   :  { %5595 = vrcp.f32 %v540_v39 }
 0x3af   :  { %v5594_v40 = vpop.eup %5593 }
 0x3b0   :  { %v547_v41 = vmul.f32 %v5594_v40, %v5590_v34 }
 0x3b2   :  { %v549_v43 = vpack.c.bf16 %v547_v41, %v547_v41 }
 0x3b3   :  { %v5596_v44 = vpop.eup %5595 }
 0x3b4   :  { %5087 = vmatmul.mubr.msk.bf16.vlgmr.msra.gmra.mxu0 %vm433_vm3, %v549_v43  ;;  %v546_v45 = vmul.f32 %v5596_v44, %v5592_v36 }
 0x3b5   :  { %5099 = vmatpush3.bf16.msra.mxu0 %v5533_v42  ;;  %5102 = vmatprep.mubr.msk.bf16.mxu0 %vm5670_vm0, %v5669_v0 }
 0x3b6   :  { %v548_v48 = vpack.c.bf16 %v546_v45, %v546_v45  ;;  %5100 = vmatprep.subr.bf16.mxu0 %v5669_v0 }
 0x3b8   :  { %5081 = vmatmul.mubr.msk.bf16.vlgmr.msra.gmra.mxu1 %vm433_vm3, %v548_v48 }
 0x3b9   :  { %5091 = vmatpush3.bf16.msra.mxu1 %v5534_v46  ;;  %5101 = vmatpush3.bf16.msra.mxu0 %v5535_v47 }
 0x3ba   :  { %5092 = vmatprep.subr.bf16.mxu1 %v5669_v0  ;;  %5094 = vmatprep.mubr.msk.bf16.mxu1 %vm5670_vm0, %v5669_v0 }
 0x3bb   :  { %5114 = vmatprep.subr.bf16.mxu0 %v5669_v0 }
 0x3bc   :  { %5103 = vmatmul.mubr.msk.bf16.vlgmr.msra.gmra.mxu0 %vm252_vm2, %v5863_v32 }
 0x3bd   :  { %5093 = vmatpush3.bf16.msra.mxu1 %v5536_v49  ;;  %5116 = vmatprep.mubr.msk.bf16.mxu0 %vm5670_vm0, %v5669_v0 }
 0x3be   :  { %5106 = vmatprep.subr.bf16.mxu1 %v5669_v0 }
 0x3c0   :  { %5095 = vmatmul.mubr.msk.bf16.vlgmr.msra.gmra.mxu1 %vm252_vm2, %v5863_v32 }
 0x3c1   :  { %5107 = vmatpush3.bf16.msra.mxu1 %v5537_v50  ;;  %5110 = vmatprep.mubr.msk.bf16.mxu1 %vm5670_vm0, %v5669_v0 }
 0x3c2   :  { %5108 = vmatprep.subr.bf16.mxu1 %v5669_v0 }
 0x3c5   :  { %5109 = vmatpush3.bf16.msra.mxu1 %v5538_v51 }
 0x3c6   :  { %5120 = vmatprep.subr.bf16.mxu1 %v5669_v0 }
 0x3c8   :  { %5111 = vmatmul.mubr.msk.bf16.vlgmr.msra.gmra.mxu1 %vm252_vm2, %v5863_v32 }
 0x3c9   :  { %5122 = vmatprep.mubr.msk.bf16.mxu1 %vm5670_vm0, %v5669_v0 }
 0x474   :  { %v5963_v52 = vpop.f32.mrf.mxu0 }
 0x476   :  { %v5088_v53 = vpop.f32.mrf.mxu0 }
 0x478   :  { %v5965_v54 = vpop.f32.mrf.mxu1  ;;  %v640_v55 = vpop.f32.mrf.mxu0 }
 0x479   :  { %v643_v56 = vpack.c.bf16 %v5963_v52, %v5965_v54  ;;  %v4601_v52 = vld [vmem:[%s6699_s13 + $0x4] sm:$0xf] }
 0x47a   :  { %v5082_v57 = vpop.f32.mrf.mxu1  ;;  %v5089_v58 = vpop.f32.mrf.mxu0  ;;  %v1066_v54 = vsel %vm553_vm4, %v4601_v52, 0 }
 0x47c   :  { %v594_v60 = vpop.f32.mrf.mxu1  ;;  %v772_v61 = vpop.f32.mrf.mxu0 }
 0x47d   :  { %v773_v62 = vadd.f32 %v4584_v59, %v772_v61 }
 0x47e   :  { %v5083_v63 = vpop.f32.mrf.mxu1  ;;  %v5104_v1 = vpop.f32.mrf.mxu0 }
 0x47f   :  { %v847_v3 = vpack.c.bf16 %v773_v62, %v773_v62 }
 0x480   :  { %v704_v4 = vpop.f32.mrf.mxu1  ;;  %v775_v5 = vpop.f32.mrf.mxu0 }
 0x481   :  { %v855_v6 = vsel %vm433_vm3, %v847_v3, 0  ;;  %v705_v7 = vadd.f32 %v4575_v2, %v704_v4  ;;  %v776_v8 = vadd.f32 %v4584_v59, %v775_v5  ;;  %v644_v4 = vld [vmem:[%s6699_s13] sm:$0xf] }
 0x482   :  { %v5096_v9 = vpop.f32.mrf.mxu1  ;;  %v5105_v10 = vpop.f32.mrf.mxu0  ;;  %5115 = vmatpush3.bf16.xpose.msra.mxu0 %v855_v6 }
 0x483   :  { %v711_v11 = vmul.f32 0.35355338, %v705_v7  ;;  %v848_v13 = vpack.c.bf16 %v776_v8, %v776_v8  ;;  %5126 = vmatprep.subr.bf16.mxu0 %v5669_v0  ;;  %v1113_v7 = vsel %vm553_vm4, %v644_v4, 0  ;;  %v5539_v8 = vld [vmem:[%s6733_s2 + $0x28] sm:$0xff]   ;;  %v5540_v9 = vld [vmem:[%s6733_s2 + $0x20] sm:$0xff]  }
 0x484   :  { %v707_v15 = vpop.f32.mrf.mxu1 }
 0x485   :  { %v901_v16 = vsel %vm433_vm3, %v848_v13, 0  ;;  %v708_v17 = vadd.f32 %v4575_v2, %v707_v15  ;;  %v845_v20 = vpack.c.bf16 %v711_v11, %v711_v11  ;;  %v5541_v15 = vld [vmem:[%s6732_s30 + $0x28] sm:$0xff]  }
 0x486   :  { %v5097_v18 = vpop.f32.mrf.mxu1  ;;  %5121 = vmatpush3.bf16.xpose.msra.mxu1 %v901_v16 }
 0x487   :  { %v712_v21 = vmul.f32 0.35355338, %v708_v17  ;;  %5132 = vmatprep.subr.bf16.mxu1 %v5669_v0 }
 0x488   :  { %v838_v22 = vpop.f32.mrf.mxu1 }
 0x489   :  { %v839_v23 = vadd.f32 %v4593_v19, %v838_v22  ;;  %5117 = vmatmul.mubr.msk.bf16.vlgmr.msra.gmra.mxu0 %vm433_vm3, %v845_v20  ;;  %v846_v25 = vpack.c.bf16 %v712_v21, %v712_v21  ;;  %v5542_v20 = vld [vmem:[%s6732_s30 + $0x20] sm:$0xff]  }
 0x48a   :  { %v5112_v24 = vpop.f32.mrf.mxu1  ;;  %5128 = vmatprep.mubr.msk.bf16.mxu0 %vm5670_vm0, %v5669_v0 }
 0x48b   :  { %v849_v26 = vpack.c.bf16 %v839_v23, %v839_v23  ;;  %v5543_v23 = vld [vmem:[%s6736_s0 + $0x28] sm:$0xff]  }
 0x48c   :  { %v841_v27 = vpop.f32.mrf.mxu1 }
 0x48d   :  { %v971_v28 = vsel %vm553_vm4, %v849_v26, 0  ;;  %v842_v31 = vadd.f32 %v4593_v19, %v841_v27  ;;  %5123 = vmatmul.mubr.msk.bf16.vlgmr.msra.gmra.mxu1 %vm433_vm3, %v846_v25  ;;  %v5544_v26 = vld [vmem:[%s6736_s0 + $0x20] sm:$0xff]  }
 0x48e   :  { %v5113_v33 = vpop.f32.mrf.mxu1  ;;  %5127 = vmatpush3.bf16.msra.mxu0 %v971_v28  ;;  %5134 = vmatprep.mubr.msk.bf16.mxu1 %vm5670_vm0, %v5669_v0  ;;  %v4618_v28 = vld [vmem:[%s6737_s28 + $0x2] ss:$0 sm:$0xff] }
 0x48f   :  { %v850_v34 = vpack.c.bf16 %v842_v31, %v842_v31  ;;  %5138 = vmatprep.subr.bf16.mxu0 %v5669_v0 }
 0x491   :  { %v1017_v35 = vsel %vm553_vm4, %v850_v34, 0 }
 0x492   :  { %5133 = vmatpush3.bf16.msra.mxu1 %v1017_v35 }
 0x493   :  { %5144 = vmatprep.subr.bf16.mxu1 %v5669_v0 }
 0x549   :  { %v891_v36 = vpop.f32.mrf.mxu0 }
 0x54a   :  { %v892_v37 = vadd.f32 %v891_v36, %v5913_v14 }
 0x54b   :  { %v5118_v38 = vpop.f32.mrf.mxu0 }
 0x54c   :  { %v943_v39 = vsel %vm433_vm3, %v892_v37, -inf }
 0x54d   :  { %944 = vmax.xlane.f32.xlu0 %v943_v39  ;;  %v894_v40 = vpop.f32.mrf.mxu0  ;;  %v937_v41 = vpop.f32.mrf.mxu1 }
 0x54e   :  { %v938_v42 = vadd.f32 %v937_v41, %v5911_v12 }
 0x54f   :  { %v5119_v43 = vpop.f32.mrf.mxu0  ;;  %v5124_v44 = vpop.f32.mrf.mxu1 }
 0x550   :  { %v946_v45 = vsel %vm433_vm3, %v938_v42, -inf }
 0x551   :  { %947 = vmax.xlane.f32.xlu1 %v946_v45  ;;  %v940_v46 = vpop.f32.mrf.mxu1 }
 0x552   :  { %v4609_v46 = vld [vmem:[%s6696_s10 + $0x2] ss:$0 sm:$0xff] }
 0x553   :  { %v5125_v47 = vpop.f32.mrf.mxu1 }
 0x5d6   :  { %v945_v48 = vpop.xlane.xlu0 %944 }
 0x5d7   :  { %v949_v49 = vsub.f32 %v892_v37, %v945_v48 }
 0x5d9   :  { %v951_v50 = vmul.f32 1.442695, %v949_v49 }
 0x5da   :  { %v948_v51 = vpop.xlane.xlu1 %947 }
 0x5db   :  { %5597 = vpow2.f32 %v951_v50  ;;  %v950_v53 = vsub.f32 %v938_v42, %v948_v51 }
 0x5dd   :  { %v953_v55 = vmul.f32 1.442695, %v950_v53 }
 0x5df   :  { %5599 = vpow2.f32 %v953_v55 }
 0x5e8   :  { %v5598_v57 = vpop.eup %5597 }
 0x5e9   :  { %v955_v58 = vsel %vm433_vm3, %v5598_v57, 0.0 }
 0x5ea   :  { %956 = vadd.xlane.f32.xlu0 %v955_v58  ;;  %v4627_v58 = vld [vmem:[%s6697_s12 + $0x2] ss:$0 sm:$0xff] }
 0x5ec   :  { %v5600_v59 = vpop.eup %5599 }
 0x5ed   :  { %v958_v60 = vsel %vm433_vm3, %v5600_v59, 0.0 }
 0x5ee   :  { %959 = vadd.xlane.f32.xlu1 %v958_v60 }
 0x673   :  { %v957_v61 = vpop.xlane.xlu0 %956 }
 0x674   :  { %5601 = vrcp.f32 %v957_v61 }
 0x677   :  { %v960_v62 = vpop.xlane.xlu1 %959 }
 0x678   :  { %5603 = vrcp.f32 %v960_v62 }
 0x681   :  { %v5602_v63 = vpop.eup %5601 }
 0x682   :  { %v963_v1 = vmul.f32 %v5602_v63, %v5598_v57 }
 0x684   :  { %v965_v2 = vpack.c.bf16 %v963_v1, %v963_v1 }
 0x685   :  { %v5604_v3 = vpop.eup %5603 }
 0x686   :  { %5129 = vmatmul.mubr.msk.bf16.vlgmr.msra.gmra.mxu0 %vm433_vm3, %v965_v2  ;;  %v964_v5 = vmul.f32 %v5604_v3, %v5600_v59 }
 0x687   :  { %5140 = vmatprep.mubr.msk.bf16.mxu0 %vm5670_vm0, %v5669_v0  ;;  %5139 = vmatpush3.bf16.msra.mxu0 %v1066_v54 }
 0x688   :  { %v966_v6 = vpack.c.bf16 %v964_v5, %v964_v5  ;;  %5150 = vmatprep.subr.bf16.mxu0 %v5669_v0 }
 0x68a   :  { %5135 = vmatmul.mubr.msk.bf16.vlgmr.msra.gmra.mxu1 %vm433_vm3, %v966_v6 }
 0x68b   :  { %5145 = vmatpush3.bf16.msra.mxu1 %v1113_v7  ;;  %5146 = vmatprep.mubr.msk.bf16.mxu1 %vm5670_vm0, %v5669_v0 }
 0x68c   :  { %5158 = vmatprep.subr.bf16.mxu1 %v5669_v0 }
 0x692   :  { %5147 = vmatmul.mubr.msk.bf16.vlgmr.msra.gmra.mxu1 %vm433_vm3, %v643_v56 }
 0x693   :  { %5159 = vmatpush3.bf16.msra.mxu1 %v5539_v8  ;;  %5162 = vmatprep.mubr.msk.bf16.mxu1 %vm5670_vm0, %v5669_v0 }
 0x694   :  { %5160 = vmatprep.subr.bf16.mxu1 %v5669_v0 }
 0x697   :  { %5161 = vmatpush3.bf16.msra.mxu1 %v5540_v9 }
 0x698   :  { %5174 = vmatprep.subr.bf16.mxu1 %v5669_v0 }
 0x69a   :  { %5163 = vmatmul.mubr.msk.bf16.vlgmr.msra.gmra.mxu1 %vm252_vm2, %v5863_v32 }
 0x69b   :  { %5176 = vmatprep.mubr.msk.bf16.mxu1 %vm5670_vm0, %v5669_v0 }
 0x746   :  { %v1007_v56 = vpop.f32.mrf.mxu0 }
 0x748   :  { %v5130_v10 = vpop.f32.mrf.mxu0 }
 0x74a   :  { %v1010_v11 = vpop.f32.mrf.mxu0  ;;  %v1053_v13 = vpop.f32.mrf.mxu1 }
 0x74b   :  { %v1059_v16 = vpack.c.bf16 %v1053_v13, %v1007_v56 }
 0x74c   :  { %v5131_v17 = vpop.f32.mrf.mxu0  ;;  %v5136_v18 = vpop.f32.mrf.mxu1 }
 0x74d   :  { %5141 = vmatmul.mubr.msk.bf16.vlgmr.msra.gmra.mxu0 %vm433_vm3, %v1059_v16 }
 0x74e   :  { %v1056_v19 = vpop.f32.mrf.mxu1  ;;  %5151 = vmatpush3.bf16.msra.mxu0 %v5541_v15  ;;  %5154 = vmatprep.mubr.msk.bf16.mxu0 %vm5670_vm0, %v5669_v0 }
 0x74f   :  { %5152 = vmatprep.subr.bf16.mxu0 %v5669_v0 }
 0x750   :  { %v5137_v21 = vpop.f32.mrf.mxu1 }
 0x752   :  { %v6042_v22 = vpop.f32.mrf.mxu1  ;;  %5153 = vmatpush3.bf16.msra.mxu0 %v5542_v20 }
 0x753   :  { %5166 = vmatprep.subr.bf16.mxu0 %v5669_v0 }
 0x754   :  { %v5148_v24 = vpop.f32.mrf.mxu1 }
 0x755   :  { %5155 = vmatmul.mubr.msk.bf16.vlgmr.msra.gmra.mxu0 %vm252_vm2, %v5863_v32 }
 0x756   :  { %v6050_v25 = vpop.f32.mrf.mxu1  ;;  %5167 = vmatpush3.bf16.msra.mxu0 %v5543_v23  ;;  %5170 = vmatprep.mubr.msk.bf16.mxu0 %vm5670_vm0, %v5669_v0 }
 0x757   :  { %5168 = vmatprep.subr.bf16.mxu0 %v5669_v0 }
 0x758   :  { %v5149_v27 = vpop.f32.mrf.mxu1 }
 0x75a   :  { %v1283_v31 = vpop.f32.mrf.mxu1  ;;  %5169 = vmatpush3.bf16.msra.mxu0 %v5544_v26 }
 0x75b   :  { %v1284_v33 = vadd.f32 %v4618_v28, %v1283_v31  ;;  %5180 = vmatprep.subr.bf16.mxu0 %v5669_v0 }
 0x75c   :  { %v5164_v34 = vpop.f32.mrf.mxu1 }
 0x75d   :  { %v1358_v35 = vpack.c.bf16 %v1284_v33, %v1284_v33  ;;  %5171 = vmatmul.mubr.msk.bf16.vlgmr.msra.gmra.mxu0 %vm252_vm2, %v5863_v32 }
 0x75e   :  { %v1286_v36 = vpop.f32.mrf.mxu1  ;;  %5182 = vmatprep.mubr.msk.bf16.mxu0 %vm5670_vm0, %v5669_v0 }
 0x75f   :  { %v1366_v37 = vsel %vm433_vm3, %v1358_v35, 0  ;;  %v1287_v38 = vadd.f32 %v4618_v28, %v1286_v36 }
 0x760   :  { %v5165_v39 = vpop.f32.mrf.mxu1  ;;  %5175 = vmatpush3.bf16.xpose.msra.mxu1 %v1366_v37 }
 0x761   :  { %v1359_v40 = vpack.c.bf16 %v1287_v38, %v1287_v38  ;;  %5186 = vmatprep.subr.bf16.mxu1 %v5669_v0 }
 0x763   :  { %v1412_v41 = vsel %vm433_vm3, %v1359_v40, 0 }
 0x764   :  { %5181 = vmatpush3.bf16.xpose.msra.mxu0 %v1412_v41  ;;  %v5545_v41 = vld [vmem:[%s6732_s30 + $0x38] sm:$0xff]  }
 0x765   :  { %5192 = vmatprep.subr.bf16.mxu0 %v5669_v0 }
 0x80d   :  { %v6070_v42 = vpop.f32.mrf.mxu0 }
 0x80f   :  { %v5142_v43 = vpop.f32.mrf.mxu0 }
 0x811   :  { %v6072_v44 = vpop.f32.mrf.mxu0 }
 0x813   :  { %v5143_v45 = vpop.f32.mrf.mxu0 }
 0x814   :  { %v5546_v45 = vld [vmem:[%s6732_s30 + $0x30] sm:$0xff]  }
 0x815   :  { %v1215_v47 = vpop.f32.mrf.mxu0 }
 0x816   :  { %v1216_v48 = vadd.f32 %v4609_v46, %v1215_v47  ;;  %v5548_v47 = vld [vmem:[%s6736_s0 + $0x30] sm:$0xff]  }
 0x817   :  { %v5156_v49 = vpop.f32.mrf.mxu0 }
 0x818   :  { %v1222_v50 = vmul.f32 0.35355338, %v1216_v48  ;;  %v4635_v48 = vld [vmem:[%s6699_s13 + $0x8] sm:$0xf] }
 0x819   :  { %v1218_v51 = vpop.f32.mrf.mxu0  ;;  %v1577_v49 = vsel %vm553_vm4, %v4635_v48, 0 }
 0x81a   :  { %v1356_v53 = vpack.c.bf16 %v1222_v50, %v1222_v50  ;;  %v1219_v55 = vadd.f32 %v4609_v46, %v1218_v51  ;;  %v5547_v46 = vld [vmem:[%s6736_s0 + $0x38] sm:$0xff]  }
 0x81b   :  { %v5157_v57 = vpop.f32.mrf.mxu0 }
 0x81c   :  { %v1223_v59 = vmul.f32 0.35355338, %v1219_v55  ;;  %5177 = vmatmul.mubr.msk.bf16.vlgmr.msra.gmra.mxu1 %vm433_vm3, %v1356_v53  ;;  %v5549_v57 = vld [vmem:[%s6733_s2 + $0x38] sm:$0xff]  }
 0x81d   :  { %v1349_v60 = vpop.f32.mrf.mxu0  ;;  %5188 = vmatprep.mubr.msk.bf16.mxu1 %vm5670_vm0, %v5669_v0 }
 0x81e   :  { %v1357_v61 = vpack.c.bf16 %v1223_v59, %v1223_v59  ;;  %v1350_v62 = vadd.f32 %v4627_v58, %v1349_v60 }
 0x81f   :  { %v5172_v63 = vpop.f32.mrf.mxu0 }
 0x820   :  { %v1360_v1 = vpack.c.bf16 %v1350_v62, %v1350_v62  ;;  %5183 = vmatmul.mubr.msk.bf16.vlgmr.msra.gmra.mxu0 %vm433_vm3, %v1357_v61  ;;  %v5550_v62 = vld [vmem:[%s6733_s2 + $0x30] sm:$0xff]  }
 0x821   :  { %v1352_v2 = vpop.f32.mrf.mxu0  ;;  %5194 = vmatprep.mubr.msk.bf16.mxu0 %vm5670_vm0, %v5669_v0 }
 0x822   :  { %v1482_v3 = vsel %vm553_vm4, %v1360_v1, 0  ;;  %v1353_v4 = vadd.f32 %v4627_v58, %v1352_v2 }
 0x823   :  { %v5173_v5 = vpop.f32.mrf.mxu0  ;;  %5187 = vmatpush3.bf16.msra.mxu1 %v1482_v3 }
 0x824   :  { %v1361_v6 = vpack.c.bf16 %v1353_v4, %v1353_v4  ;;  %5198 = vmatprep.subr.bf16.mxu1 %v5669_v0 }
 0x826   :  { %v1528_v7 = vsel %vm553_vm4, %v1361_v6, 0 }
 0x827   :  { %5193 = vmatpush3.bf16.msra.mxu0 %v1528_v7 }
 0x828   :  { %5204 = vmatprep.subr.bf16.mxu0 %v5669_v0 }
 0x8dc   :  { %v1402_v8 = vpop.f32.mrf.mxu1 }
 0x8dd   :  { %v1403_v9 = vadd.f32 %v1402_v8, %v5913_v14 }
 0x8de   :  { %v5178_v52 = vpop.f32.mrf.mxu1 }
 0x8df   :  { %v1454_v54 = vsel %vm433_vm3, %v1403_v9, -inf }
 0x8e0   :  { %v1448_v56 = vpop.f32.mrf.mxu0  ;;  %1455 = vmax.xlane.f32.xlu0 %v1454_v54  ;;  %v1405_v10 = vpop.f32.mrf.mxu1 }
 0x8e1   :  { %v1449_v11 = vadd.f32 %v1448_v56, %v5911_v12  ;;  %v1153_v10 = vadd.f32 %v6050_v25, %v6072_v44 }
 0x8e2   :  { %v5179_v13 = vpop.f32.mrf.mxu1  ;;  %v5184_v15 = vpop.f32.mrf.mxu0 }
 0x8e3   :  { %v1457_v16 = vsel %vm433_vm3, %v1449_v11, -inf  ;;  %v4651_v15 = vld [vmem:[%s6737_s28 + $0x3] ss:$0 sm:$0xff] }
 0x8e4   :  { %1458 = vmax.xlane.f32.xlu1 %v1457_v16  ;;  %v1451_v17 = vpop.f32.mrf.mxu0  ;;  %v4642_v16 = vld [vmem:[%s6696_s10 + $0x3] ss:$0 sm:$0xff] }
 0x8e5   :  { %v4660_v17 = vld [vmem:[%s6697_s12 + $0x3] ss:$0 sm:$0xff] }
 0x8e6   :  { %v5185_v18 = vpop.f32.mrf.mxu0 }
 0x969   :  { %v1456_v19 = vpop.xlane.xlu0 %1455 }
 0x96a   :  { %v1460_v20 = vsub.f32 %v1403_v9, %v1456_v19  ;;  %v1150_v9 = vadd.f32 %v6042_v22, %v6070_v42 }
 0x96c   :  { %v1462_v21 = vmul.f32 1.442695, %v1460_v20 }
 0x96d   :  { %v1459_v23 = vpop.xlane.xlu1 %1458 }
 0x96e   :  { %5605 = vpow2.f32 %v1462_v21  ;;  %v1461_v24 = vsub.f32 %v1449_v11, %v1459_v23 }
 0x970   :  { %v1464_v26 = vmul.f32 1.442695, %v1461_v24 }
 0x972   :  { %5607 = vpow2.f32 %v1464_v26 }
 0x97b   :  { %v5606_v27 = vpop.eup %5605 }
 0x97c   :  { %v1466_v28 = vsel %vm433_vm3, %v5606_v27, 0.0 }
 0x97d   :  { %1467 = vadd.xlane.f32.xlu0 %v1466_v28 }
 0x97f   :  { %v5608_v31 = vpop.eup %5607 }
 0x980   :  { %v1469_v33 = vsel %vm433_vm3, %v5608_v31, 0.0 }
 0x981   :  { %1470 = vadd.xlane.f32.xlu1 %v1469_v33 }
 0xa06   :  { %v1468_v34 = vpop.xlane.xlu0 %1467 }
 0xa07   :  { %5609 = vrcp.f32 %v1468_v34 }
 0xa0a   :  { %v1471_v35 = vpop.xlane.xlu1 %1470 }
 0xa0b   :  { %5611 = vrcp.f32 %v1471_v35 }
 0xa14   :  { %v5610_v36 = vpop.eup %5609 }
 0xa15   :  { %v1474_v37 = vmul.f32 %v5610_v36, %v5606_v27 }
 0xa17   :  { %v1476_v38 = vpack.c.bf16 %v1474_v37, %v1474_v37 }
 0xa18   :  { %v5612_v39 = vpop.eup %5611 }
 0xa19   :  { %5189 = vmatmul.mubr.msk.bf16.vlgmr.msra.gmra.mxu1 %vm433_vm3, %v1476_v38  ;;  %v1475_v40 = vmul.f32 %v5612_v39, %v5608_v31 }
 0xa1a   :  { %5200 = vmatprep.mubr.msk.bf16.mxu1 %vm5670_vm0, %v5669_v0  ;;  %5199 = vmatpush3.bf16.msra.mxu1 %v1577_v49 }
 0xa1b   :  { %v1477_v43 = vpack.c.bf16 %v1475_v40, %v1475_v40  ;;  %5212 = vmatprep.subr.bf16.mxu1 %v5669_v0 }
 0xa1d   :  { %5195 = vmatmul.mubr.msk.bf16.vlgmr.msra.gmra.mxu0 %vm433_vm3, %v1477_v43 }
 0xa1e   :  { %5205 = vmatpush3.bf16.msra.mxu0 %v5545_v41  ;;  %5208 = vmatprep.mubr.msk.bf16.mxu0 %vm5670_vm0, %v5669_v0 }
 0xa1f   :  { %5206 = vmatprep.subr.bf16.mxu0 %v5669_v0 }
 0xa22   :  { %5207 = vmatpush3.bf16.msra.mxu0 %v5546_v45 }
 0xa23   :  { %5220 = vmatprep.subr.bf16.mxu0 %v5669_v0 }
 0xa25   :  { %5209 = vmatmul.mubr.msk.bf16.vlgmr.msra.gmra.mxu0 %vm252_vm2, %v5863_v32 }
 0xa26   :  { %5221 = vmatpush3.bf16.msra.mxu0 %v5547_v46  ;;  %5224 = vmatprep.mubr.msk.bf16.mxu0 %vm5670_vm0, %v5669_v0 }
 0xa27   :  { %5222 = vmatprep.subr.bf16.mxu0 %v5669_v0 }
 0xa2a   :  { %5223 = vmatpush3.bf16.msra.mxu0 %v5548_v47 }
 0xa2b   :  { %5234 = vmatprep.subr.bf16.mxu0 %v5669_v0 }
 0xa2d   :  { %5225 = vmatmul.mubr.msk.bf16.vlgmr.msra.gmra.mxu0 %vm252_vm2, %v5863_v32 }
 0xa2e   :  { %5236 = vmatprep.mubr.msk.bf16.mxu0 %vm5670_vm0, %v5669_v0 }
 0xad9   :  { %v1518_v50 = vpop.f32.mrf.mxu1 }
 0xadb   :  { %v5190_v51 = vpop.f32.mrf.mxu1 }
 0xadd   :  { %v1521_v53 = vpop.f32.mrf.mxu1  ;;  %v1564_v55 = vpop.f32.mrf.mxu0 }
 0xade   :  { %v1570_v58 = vpack.c.bf16 %v1564_v55, %v1518_v50 }
 0xadf   :  { %v5191_v59 = vpop.f32.mrf.mxu1  ;;  %v5196_v60 = vpop.f32.mrf.mxu0 }
 0xae0   :  { %5201 = vmatmul.mubr.msk.bf16.vlgmr.msra.gmra.mxu1 %vm433_vm3, %v1570_v58 }
 0xae1   :  { %v1567_v61 = vpop.f32.mrf.mxu0  ;;  %5213 = vmatpush3.bf16.msra.mxu1 %v5549_v57  ;;  %5216 = vmatprep.mubr.msk.bf16.mxu1 %vm5670_vm0, %v5669_v0 }
 0xae2   :  { %5214 = vmatprep.subr.bf16.mxu1 %v5669_v0 }
 0xae3   :  { %v5197_v63 = vpop.f32.mrf.mxu0 }
 0xae5   :  { %v1681_v1 = vpop.f32.mrf.mxu0  ;;  %5215 = vmatpush3.bf16.msra.mxu1 %v5550_v62 }
 0xae6   :  { %5228 = vmatprep.subr.bf16.mxu1 %v5669_v0  ;;  %v1682_v25 = vadd.f32 %v4642_v16, %v1681_v1 }
 0xae7   :  { %v5210_v2 = vpop.f32.mrf.mxu0 }
 0xae8   :  { %5217 = vmatmul.mubr.msk.bf16.vlgmr.msra.gmra.mxu1 %vm252_vm2, %v5863_v32  ;;  %v1688_v26 = vmul.f32 0.35355338, %v1682_v25 }
 0xae9   :  { %v1684_v3 = vpop.f32.mrf.mxu0  ;;  %5230 = vmatprep.mubr.msk.bf16.mxu1 %vm5670_vm0, %v5669_v0 }
 0xaea   :  { %v1685_v27 = vadd.f32 %v4642_v16, %v1684_v3  ;;  %v1822_v35 = vpack.c.bf16 %v1688_v26, %v1688_v26 }
 0xaeb   :  { %v5211_v4 = vpop.f32.mrf.mxu0 }
 0xaec   :  { %v1689_v36 = vmul.f32 0.35355338, %v1685_v27 }
 0xaed   :  { %v1815_v5 = vpop.f32.mrf.mxu0 }
 0xaee   :  { %v1816_v20 = vadd.f32 %v4660_v17, %v1815_v5  ;;  %v1823_v39 = vpack.c.bf16 %v1689_v36, %v1689_v36 }
 0xaef   :  { %v5226_v6 = vpop.f32.mrf.mxu0 }
 0xaf0   :  { %v1826_v31 = vpack.c.bf16 %v1816_v20, %v1816_v20 }
 0xaf1   :  { %v1818_v7 = vpop.f32.mrf.mxu0 }
 0xaf2   :  { %v1819_v33 = vadd.f32 %v4660_v17, %v1818_v7  ;;  %v1948_v37 = vsel %vm553_vm4, %v1826_v31, 0 }
 0xaf3   :  { %v5227_v8 = vpop.f32.mrf.mxu0 }
 0xaf4   :  { %v1827_v38 = vpack.c.bf16 %v1819_v33, %v1819_v33 }
 0xaf6   :  { %v1994_v40 = vsel %vm553_vm4, %v1827_v38, 0 }
 0xba0   :  { %v1613_v52 = vpop.f32.mrf.mxu1 }
 0xba1   :  { %v6148_v54 = vadd.f32 %v1613_v52, %v1150_v9 }
 0xba2   :  { %v5202_v56 = vpop.f32.mrf.mxu1 }
 0xba4   :  { %v1616_v32 = vpop.f32.mrf.mxu1 }
 0xba5   :  { %v6152_v11 = vadd.f32 %v1616_v32, %v1153_v10  ;;  %v4668_v32 = vld [vmem:[%s6699_s13 + $0xc] sm:$0xf] }
 0xba6   :  { %v5203_v13 = vpop.f32.mrf.mxu1 }
 0xba7   :  { %v2043_v13 = vsel %vm553_vm4, %v4668_v32, 0 }
 0xba8   :  { %v1749_v22 = vpop.f32.mrf.mxu1 }
 0xba9   :  { %v1750_v42 = vadd.f32 %v4651_v15, %v1749_v22 }
 0xbaa   :  { %v5218_v18 = vpop.f32.mrf.mxu1 }
 0xbab   :  { %v1824_v44 = vpack.c.bf16 %v1750_v42, %v1750_v42 }
 0xbac   :  { %v1752_v19 = vpop.f32.mrf.mxu1 }
 0xbad   :  { %v1832_v21 = vsel %vm433_vm3, %v1824_v44, 0  ;;  %v1753_v23 = vadd.f32 %v4651_v15, %v1752_v19 }
 0xbae   :  { %v5219_v24 = vpop.f32.mrf.mxu1  ;;  %5229 = vmatpush3.bf16.xpose.msra.mxu1 %v1832_v21 }
 0xbaf   :  { %v1825_v28 = vpack.c.bf16 %v1753_v23, %v1753_v23  ;;  %5240 = vmatprep.subr.bf16.mxu1 %v5669_v0  ;;  %v4670_v24 = vld [vmem:[%s6700_s14] ss:$0 sm:$0xff] }
 0xbb1   :  { %v1878_v34 = vsel %vm433_vm3, %v1825_v28, 0 }
 0xbb2   :  { %5235 = vmatpush3.bf16.xpose.msra.mxu0 %v1878_v34 }
 0xbb3   :  { %5246 = vmatprep.subr.bf16.mxu0 %v5669_v0 }
 0xbb5   :  { %5231 = vmatmul.mubr.msk.bf16.vlgmr.msra.gmra.mxu1 %vm433_vm3, %v1822_v35 }
 0xbb6   :  { %5241 = vmatpush3.bf16.msra.mxu1 %v1948_v37  ;;  %5242 = vmatprep.mubr.msk.bf16.mxu1 %vm5670_vm0, %v5669_v0 }
 0xbb7   :  { %5252 = vmatprep.subr.bf16.mxu1 %v5669_v0 }
 0xbb9   :  { %5237 = vmatmul.mubr.msk.bf16.vlgmr.msra.gmra.mxu0 %vm433_vm3, %v1823_v39 }
 0xbba   :  { %5247 = vmatpush3.bf16.msra.mxu0 %v1994_v40  ;;  %5248 = vmatprep.mubr.msk.bf16.mxu0 %vm5670_vm0, %v5669_v0 }
 0xbbb   :  { %5258 = vmatprep.subr.bf16.mxu0 %v5669_v0 }
 0xc75   :  { %v1868_v41 = vpop.f32.mrf.mxu1 }
 0xc76   :  { %v1869_v43 = vadd.f32 %v1868_v41, %v5913_v14 }
 0xc77   :  { %v5232_v45 = vpop.f32.mrf.mxu1 }
 0xc78   :  { %v1920_v46 = vsel %vm433_vm3, %v1869_v43, -inf }
 0xc79   :  { %v1914_v47 = vpop.f32.mrf.mxu0  ;;  %1921 = vmax.xlane.f32.xlu0 %v1920_v46  ;;  %v1871_v48 = vpop.f32.mrf.mxu1  ;;  %v5551_v46 = vld [vmem:[%s6701_s17 + $0x8] sm:$0xff]  }
 0xc7a   :  { %v1915_v49 = vadd.f32 %v1914_v47, %v5911_v12  ;;  %v5552_v47 = vld [vmem:[%s6701_s17] sm:$0xff]   ;;  %v5553_v48 = vld [vmem:[%s6702_s19 + $0x18] sm:$0xff]  }
 0xc7b   :  { %v5233_v50 = vpop.f32.mrf.mxu1  ;;  %v5238_v51 = vpop.f32.mrf.mxu0 }
 0xc7c   :  { %v1923_v53 = vsel %vm433_vm3, %v1915_v49, -inf }
 0xc7d   :  { %1924 = vmax.xlane.f32.xlu1 %v1923_v53  ;;  %v1917_v55 = vpop.f32.mrf.mxu0 }
 0xc7f   :  { %v5239_v57 = vpop.f32.mrf.mxu0 }
 0xd02   :  { %v1922_v58 = vpop.xlane.xlu0 %1921 }
 0xd03   :  { %v1926_v59 = vsub.f32 %v1869_v43, %v1922_v58 }
 0xd05   :  { %v1928_v60 = vmul.f32 1.442695, %v1926_v59 }
 0xd06   :  { %v1925_v61 = vpop.xlane.xlu1 %1924 }
 0xd07   :  { %5613 = vpow2.f32 %v1928_v60  ;;  %v1927_v62 = vsub.f32 %v1915_v49, %v1925_v61  ;;  %v4671_v60 = vld [vmem:[%s6703_s15] ss:$0 sm:$0xff] }
 0xd09   :  { %v1930_v63 = vmul.f32 1.442695, %v1927_v62 }
 0xd0b   :  { %5615 = vpow2.f32 %v1930_v63 }
 0xd14   :  { %v5614_v1 = vpop.eup %5613 }
 0xd15   :  { %v1932_v2 = vsel %vm433_vm3, %v5614_v1, 0.0 }
 0xd16   :  { %1933 = vadd.xlane.f32.xlu0 %v1932_v2 }
 0xd18   :  { %v5616_v3 = vpop.eup %5615 }
 0xd19   :  { %v1935_v4 = vsel %vm433_vm3, %v5616_v3, 0.0 }
 0xd1a   :  { %1936 = vadd.xlane.f32.xlu1 %v1935_v4 }
 0xd9f   :  { %v1934_v5 = vpop.xlane.xlu0 %1933 }
 0xda0   :  { %5617 = vrcp.f32 %v1934_v5 }
 0xda3   :  { %v1937_v6 = vpop.xlane.xlu1 %1936 }
 0xda4   :  { %5619 = vrcp.f32 %v1937_v6  ;;  %v5554_v6 = vld [vmem:[%s6702_s19 + $0x10] sm:$0xff]  }
 0xdad   :  { %v5618_v7 = vpop.eup %5617 }
 0xdae   :  { %v1940_v8 = vmul.f32 %v5618_v7, %v5614_v1  ;;  %v4672_v1 = vld [vmem:[%s6704_s16] ss:$0 sm:$0xff]  ;;  %v5555_v7 = vld [vmem:[%s6702_s19 + $0x8] sm:$0xff]  }
 0xdb0   :  { %v1942_v9 = vpack.c.bf16 %v1940_v8, %v1940_v8  ;;  %v5556_v8 = vld [vmem:[%s6702_s19] sm:$0xff]  }
 0xdb1   :  { %v5620_v52 = vpop.eup %5619 }
 0xdb2   :  { %5243 = vmatmul.mubr.msk.bf16.vlgmr.msra.gmra.mxu1 %vm433_vm3, %v1942_v9  ;;  %v1941_v56 = vmul.f32 %v5620_v52, %v5616_v3  ;;  %v4673_v9 = vld [vmem:[%s6705_s18] ss:$0 sm:$0xff] }
 0xdb3   :  { %5254 = vmatprep.mubr.msk.bf16.mxu1 %vm5670_vm0, %v5669_v0  ;;  %5253 = vmatpush3.bf16.msra.mxu1 %v2043_v13 }
 0xdb4   :  { %v1943_v10 = vpack.c.bf16 %v1941_v56, %v1941_v56  ;;  %5266 = vmatprep.subr.bf16.mxu1 %v5669_v0 }
 0xdb6   :  { %5249 = vmatmul.mubr.msk.bf16.vlgmr.msra.gmra.mxu0 %vm433_vm3, %v1943_v10 }
 0xdb7   :  { %5262 = vmatprep.mubr.msk.bf16.mxu0 %vm5670_vm0, %v5669_v0  ;;  %5259 = vmatpush3.bf16.msra.mxu0 %v5551_v46 }
 0xdb8   :  { %5260 = vmatprep.subr.bf16.mxu0 %v5669_v0 }
 0xdbb   :  { %5261 = vmatpush3.bf16.msra.mxu0 %v5552_v47 }
 0xdbc   :  { %5278 = vmatprep.subr.bf16.mxu0 %v5669_v0 }
 0xe72   :  { %v1984_v15 = vpop.f32.mrf.mxu1 }
 0xe74   :  { %v5244_v16 = vpop.f32.mrf.mxu1 }
 0xe76   :  { %v1987_v22 = vpop.f32.mrf.mxu1  ;;  %v2030_v42 = vpop.f32.mrf.mxu0 }
 0xe77   :  { %v2036_v17 = vpack.c.bf16 %v2030_v42, %v1984_v15 }
 0xe78   :  { %v5245_v18 = vpop.f32.mrf.mxu1  ;;  %v5250_v25 = vpop.f32.mrf.mxu0 }
 0xe79   :  { %5255 = vmatmul.mubr.msk.bf16.vlgmr.msra.gmra.mxu1 %vm433_vm3, %v2036_v17  ;;  %v4677_v17 = vld [vmem:[%s6706_s20] ss:$0 sm:$0xff] }
 0xe7a   :  { %v2033_v44 = vpop.f32.mrf.mxu0  ;;  %5274 = vmatprep.mubr.msk.bf16.mxu1 %vm5670_vm0, %v5669_v0  ;;  %5267 = vmatpush3.bf16.msra.mxu1 %v5553_v48 }
 0xe7b   :  { %5268 = vmatprep.subr.bf16.mxu1 %v5669_v0 }
 0xe7c   :  { %v5251_v19 = vpop.f32.mrf.mxu0 }
 0xe7e   :  { %5269 = vmatpush3.bf16.msra.mxu1 %v5554_v6 }
 0xe7f   :  { %5270 = vmatprep.subr.bf16.mxu1 %v5669_v0 }
 0xe82   :  { %5271 = vmatpush3.bf16.msra.mxu1 %v5555_v7 }
 0xe83   :  { %5272 = vmatprep.subr.bf16.mxu1 %v5669_v0 }
 0xe86   :  { %5273 = vmatpush3.bf16.msra.mxu1 %v5556_v8 }
 0xe87   :  { %5294 = vmatprep.subr.bf16.mxu1 %v5669_v0 }
 0xf39   :  { %v2079_v20 = vpop.f32.mrf.mxu1 }
 0xf3a   :  { %v2086_v21 = vadd.f32 %v2079_v20, %v6148_v54 }
 0xf3b   :  { %v5256_v23 = vpop.f32.mrf.mxu1 }
 0xf3c   :  { %v2088_v26 = vadd.f32 %v2086_v21, %v5854_v29 }
 0xf3d   :  { %v2082_v27 = vpop.f32.mrf.mxu1 }
 0xf3e   :  { %v2087_v28 = vadd.f32 %v2082_v27, %v6152_v11  ;;  %v2097_v31 = vadd.f32 %v4670_v24, %v2088_v26 }
 0xf3f   :  { %v5257_v33 = vpop.f32.mrf.mxu1 }
 0xf40   :  { %v2089_v34 = vadd.f32 %v2087_v28, %v5856_v30  ;;  %v2101_v35 = vsel %vm252_vm2, %v2097_v31, 0.0 }
 0xf41   :  { %2102 = vadd.xlane.f32.xlu0 %v2101_v35 }
 0xf42   :  { %v2098_v36 = vadd.f32 %v4670_v24, %v2089_v34 }
 0xf44   :  { %v2104_v54 = vsel %vm252_vm2, %v2098_v36, 0.0 }
 0xf45   :  { %2105 = vadd.xlane.f32.xlu1 %v2104_v54 }
 0xfca   :  { %v2103_v37 = vpop.xlane.xlu0 %2102 }
 0xfcb   :  { %v2108_v38 = vmul.f32 0.03125, %v2103_v37 }
 0xfcd   :  { %v2110_v39 = vsub.f32 %v2097_v31, %v2108_v38 }
 0xfce   :  { %v2106_v40 = vpop.xlane.xlu1 %2105 }
 0xfcf   :  { %v2109_v41 = vmul.f32 0.03125, %v2106_v40  ;;  %v2112_v29 = vmul.f32 %v2110_v39, %v2110_v39  ;;  %v5557_v40 = vld [vmem:[%s6732_s30 + $0x48] sm:$0xff]  }
 0xfd1   :  { %v2111_v43 = vsub.f32 %v2098_v36, %v2109_v41  ;;  %v2114_v11 = vsel %vm252_vm2, %v2112_v29, 0.0  ;;  %v5558_v41 = vld [vmem:[%s6736_s0 + $0x48] sm:$0xff]   ;;  %v5559_v29 = vld [vmem:[%s6732_s30 + $0x40] sm:$0xff]  }
 0xfd2   :  { %2115 = vadd.xlane.f32.xlu0 %v2114_v11 }
 0xfd3   :  { %v2113_v45 = vmul.f32 %v2111_v43, %v2111_v43 }
 0xfd5   :  { %v2117_v30 = vsel %vm252_vm2, %v2113_v45, 0.0 }
 0xfd6   :  { %2118 = vadd.xlane.f32.xlu1 %v2117_v30 }
0x105b   :  { %v2116_v49 = vpop.xlane.xlu0 %2115 }
0x105c   :  { %v2120_v50 = vmul.f32 0.03125, %v2116_v49 }
0x105e   :  { %v2122_v51 = vadd.f32 1e-05, %v2120_v50 }
0x105f   :  { %v2119_v53 = vpop.xlane.xlu1 %2118 }
0x1060   :  { %5621 = vrsqrt.f32 %v2122_v51  ;;  %v2121_v55 = vmul.f32 0.03125, %v2119_v53  ;;  %v4683_v51 = vld [vmem:[%s6707_s21] ss:$0 sm:$0xff] }
0x1062   :  { %v2123_v57 = vadd.f32 1e-05, %v2121_v55 }
0x1064   :  { %5623 = vrsqrt.f32 %v2123_v57 }
0x106d   :  { %v5622_v58 = vpop.eup %5621 }
0x106e   :  { %v2126_v59 = vmul.f32 %v5622_v58, %v2110_v39  ;;  %v4684_v58 = vld [vmem:[%s6708_s22] ss:$0 sm:$0xff] }
0x1070   :  { %v2134_v63 = vmul.f32 %v4671_v60, %v2126_v59 }
0x1071   :  { %v5624_v61 = vpop.eup %5623 }
0x1072   :  { %v2127_v62 = vmul.f32 %v5624_v61, %v2111_v43  ;;  %v2142_v3 = vadd.f32 %v4672_v1, %v2134_v63  ;;  %v5560_v43 = vld [vmem:[%s6736_s0 + $0x40] sm:$0xff]  }
0x1074   :  { %v2135_v2 = vmul.f32 %v4671_v60, %v2127_v62  ;;  %v5561_v62 = vld [vmem:[%s6733_s2 + $0x48] sm:$0xff]  }
0x1076   :  { %v2143_v4 = vadd.f32 %v4672_v1, %v2135_v2  ;;  %v5562_v1 = vld [vmem:[%s6733_s2 + $0x40] sm:$0xff]  }
0x1078   :  { %v2144_v5 = vpack.c.bf16 %v2143_v4, %v2142_v3 }
0x107a   :  { %5263 = vmatmul.mubr.msk.bf16.vlgmr.msra.gmra.mxu0 %vm252_vm2, %v2144_v5 }
0x107b   :  { %5282 = vmatprep.mubr.msk.bf16.mxu0 %vm5670_vm0, %v5669_v0  ;;  %5279 = vmatpush3.bf16.msra.mxu0 %v5557_v40 }
0x107c   :  { %5280 = vmatprep.subr.bf16.mxu0 %v5669_v0 }
0x107f   :  { %5281 = vmatpush3.bf16.msra.mxu0 %v5559_v29 }
0x1080   :  { %5286 = vmatprep.subr.bf16.mxu0 %v5669_v0 }
0x113a   :  { %v2205_v52 = vpop.f32.mrf.mxu0 }
0x113b   :  { %v2206_v10 = vadd.f32 %v4673_v9, %v2205_v52  ;;  %v4699_v52 = vld [vmem:[%s6737_s28 + $0x4] ss:$0 sm:$0xff] }
0x113c   :  { %v5264_v56 = vpop.f32.mrf.mxu0 }
0x113d   :  { %v2212_v16 = vmax.f32 %v2206_v10, 0.0  ;;  %v4690_v56 = vld [vmem:[%s6696_s10 + $0x4] ss:$0 sm:$0xff] }
0x113e   :  { %v2208_v32 = vpop.f32.mrf.mxu0 }
0x113f   :  { %v2209_v13 = vadd.f32 %v4673_v9, %v2208_v32 }
0x1140   :  { %v5265_v15 = vpop.f32.mrf.mxu0 }
0x1141   :  { %v2213_v22 = vmax.f32 %v2209_v13, 0.0  ;;  %v4708_v13 = vld [vmem:[%s6697_s12 + $0x4] ss:$0 sm:$0xff] }
0x1143   :  { %v2214_v42 = vpack.c.bf16 %v2213_v22, %v2212_v16 }
0x1145   :  { %5275 = vmatmul.mubr.msk.bf16.vlgmr.msra.gmra.mxu1 %vm2254_vm6, %v2214_v42 }
0x1146   :  { %5298 = vmatprep.mubr.msk.bf16.mxu1 %vm5670_vm0, %v5669_v0  ;;  %5295 = vmatpush3.bf16.msra.mxu1 %v5558_v41 }
0x1147   :  { %5296 = vmatprep.subr.bf16.mxu1 %v5669_v0 }
0x114a   :  { %5297 = vmatpush3.bf16.msra.mxu1 %v5560_v43 }
0x114b   :  { %5308 = vmatprep.subr.bf16.mxu1 %v5669_v0 }
0x1205   :  { %v2292_v18 = vpop.f32.mrf.mxu1 }
0x1206   :  { %v2293_v25 = vadd.f32 %v4677_v17, %v2292_v18 }
0x1207   :  { %v5276_v44 = vpop.f32.mrf.mxu1 }
0x1208   :  { %v2299_v19 = vadd.f32 %v2293_v25, %v2142_v3 }
0x1209   :  { %v2295_v20 = vpop.f32.mrf.mxu1 }
0x120a   :  { %v2296_v21 = vadd.f32 %v4677_v17, %v2295_v20  ;;  %v2303_v23 = vsel %vm252_vm2, %v2299_v19, 0.0 }
0x120b   :  { %2304 = vadd.xlane.f32.xlu0 %v2303_v23  ;;  %v5277_v24 = vpop.f32.mrf.mxu1 }
0x120c   :  { %v2300_v26 = vadd.f32 %v2296_v21, %v2143_v4 }
0x120e   :  { %v2306_v27 = vsel %vm252_vm2, %v2300_v26, 0.0 }
0x120f   :  { %2307 = vadd.xlane.f32.xlu1 %v2306_v27 }
0x1294   :  { %v2305_v28 = vpop.xlane.xlu0 %2304 }
0x1295   :  { %v2309_v31 = vmul.f32 0.03125, %v2305_v28 }
0x1297   :  { %v2311_v33 = vsub.f32 %v2299_v19, %v2309_v31 }
0x1298   :  { %v2308_v34 = vpop.xlane.xlu1 %2307 }
0x1299   :  { %v2310_v35 = vmul.f32 0.03125, %v2308_v34  ;;  %v2313_v36 = vmul.f32 %v2311_v33, %v2311_v33 }
0x129b   :  { %v2312_v54 = vsub.f32 %v2300_v26, %v2310_v35  ;;  %v2315_v37 = vsel %vm252_vm2, %v2313_v36, 0.0 }
0x129c   :  { %2316 = vadd.xlane.f32.xlu0 %v2315_v37 }
0x129d   :  { %v2314_v38 = vmul.f32 %v2312_v54, %v2312_v54 }
0x129f   :  { %v2318_v39 = vsel %vm252_vm2, %v2314_v38, 0.0 }
0x12a0   :  { %2319 = vadd.xlane.f32.xlu1 %v2318_v39 }
0x1325   :  { %v2317_v11 = vpop.xlane.xlu0 %2316 }
0x1326   :  { %v2321_v45 = vmul.f32 0.03125, %v2317_v11 }
0x1328   :  { %v2323_v30 = vadd.f32 1e-05, %v2321_v45 }
0x1329   :  { %v2320_v46 = vpop.xlane.xlu1 %2319 }
0x132a   :  { %5625 = vrsqrt.f32 %v2323_v30  ;;  %v2322_v47 = vmul.f32 0.03125, %v2320_v46 }
0x132c   :  { %v2324_v48 = vadd.f32 1e-05, %v2322_v47 }
0x132e   :  { %5627 = vrsqrt.f32 %v2324_v48 }
0x1337   :  { %v5626_v49 = vpop.eup %5625 }
0x1338   :  { %v2327_v50 = vmul.f32 %v5626_v49, %v2311_v33 }
0x133a   :  { %v2335_v55 = vmul.f32 %v4683_v51, %v2327_v50 }
0x133b   :  { %v5628_v53 = vpop.eup %5627 }
0x133c   :  { %v2328_v57 = vmul.f32 %v5628_v53, %v2312_v54  ;;  %v6276_v60 = vadd.f32 %v4684_v58, %v2335_v55 }
0x133e   :  { %v2336_v59 = vmul.f32 %v4683_v51, %v2328_v57 }
0x1340   :  { %v6278_v61 = vadd.f32 %v4684_v58, %v2336_v59 }
0x1342   :  { %v6285_v63 = vpack.c.bf16 %v6278_v61, %v6276_v60 }
0x1344   :  { %5283 = vmatmul.mubr.msk.bf16.vlgmr.msra.gmra.mxu0 %vm252_vm2, %v6285_v63  ;;  %5299 = vmatmul.mubr.msk.bf16.vlgmr.msra.gmra.mxu1 %vm252_vm2, %v6285_v63 }
0x1345   :  { %5287 = vmatpush3.bf16.msra.mxu0 %v5561_v62  ;;  %5290 = vmatprep.mubr.msk.bf16.mxu0 %vm5670_vm0, %v5669_v0 }
0x1346   :  { %5288 = vmatprep.subr.bf16.mxu0 %v5669_v0  ;;  %5310 = vmatprep.mubr.msk.bf16.mxu1 %vm5670_vm0, %v5669_v0 }
0x1349   :  { %5289 = vmatpush3.bf16.msra.mxu0 %v5562_v1 }
0x134a   :  { %5302 = vmatprep.subr.bf16.mxu0 %v5669_v0 }
0x134c   :  { %5291 = vmatmul.mubr.msk.bf16.vlgmr.msra.gmra.mxu0 %vm252_vm2, %v6285_v63 }
0x134d   :  { %5304 = vmatprep.mubr.msk.bf16.mxu0 %vm5670_vm0, %v5669_v0 }
0x1404   :  { %v2408_v2 = vpop.f32.mrf.mxu0  ;;  %v2542_v3 = vpop.f32.mrf.mxu1 }
0x1405   :  { %v2409_v16 = vadd.f32 %v4690_v56, %v2408_v2  ;;  %v2543_v17 = vadd.f32 %v4708_v13, %v2542_v3  ;;  %v5563_v3 = vld [vmem:[%s6732_s30 + $0x58] sm:$0xff]  }
0x1406   :  { %v5284_v4 = vpop.f32.mrf.mxu0  ;;  %v5300_v5 = vpop.f32.mrf.mxu1 }
0x1407   :  { %v2415_v19 = vmul.f32 0.35355338, %v2409_v16  ;;  %v2553_v23 = vpack.c.bf16 %v2543_v17, %v2543_v17 }
0x1408   :  { %v2411_v6 = vpop.f32.mrf.mxu0  ;;  %v2545_v7 = vpop.f32.mrf.mxu1 }
0x1409   :  { %v2412_v20 = vadd.f32 %v4690_v56, %v2411_v6  ;;  %v2546_v24 = vadd.f32 %v4708_v13, %v2545_v7  ;;  %v2549_v27 = vpack.c.bf16 %v2415_v19, %v2415_v19  ;;  %v2675_v31 = vsel %vm553_vm4, %v2553_v23, 0  ;;  %v5564_v7 = vld [vmem:[%s6732_s30 + $0x50] sm:$0xff]   ;;  %v5567_v56 = vld [vmem:[%s6736_s0 + $0x58] sm:$0xff]  }
0x140a   :  { %v5285_v8 = vpop.f32.mrf.mxu0  ;;  %v5301_v9 = vpop.f32.mrf.mxu1 }
0x140b   :  { %v2416_v28 = vmul.f32 0.35355338, %v2412_v20  ;;  %v2554_v33 = vpack.c.bf16 %v2546_v24, %v2546_v24  ;;  %v5565_v8 = vld [vmem:[%s6733_s2 + $0x58] sm:$0xff]   ;;  %v4731_v20 = vld [vmem:[%s6737_s28 + $0x5] ss:$0 sm:$0xff] }
0x140c   :  { %v2476_v10 = vpop.f32.mrf.mxu0 }
0x140d   :  { %v2477_v32 = vadd.f32 %v4699_v52, %v2476_v10  ;;  %v2550_v34 = vpack.c.bf16 %v2416_v28, %v2416_v28  ;;  %v2721_v35 = vsel %vm553_vm4, %v2554_v33, 0  ;;  %v5568_v10 = vld [vmem:[%s6736_s0 + $0x50] sm:$0xff]  }
0x140e   :  { %v5292_v15 = vpop.f32.mrf.mxu0 }
0x140f   :  { %v2551_v22 = vpack.c.bf16 %v2477_v32, %v2477_v32 }
0x1410   :  { %v2479_v42 = vpop.f32.mrf.mxu0 }
0x1411   :  { %v2559_v18 = vsel %vm433_vm3, %v2551_v22, 0  ;;  %v2480_v25 = vadd.f32 %v4699_v52, %v2479_v42  ;;  %v5566_v52 = vld [vmem:[%s6733_s2 + $0x50] sm:$0xff]  }
0x1412   :  { %v5293_v44 = vpop.f32.mrf.mxu0  ;;  %5303 = vmatpush3.bf16.xpose.msra.mxu0 %v2559_v18 }
0x1413   :  { %v2552_v21 = vpack.c.bf16 %v2480_v25, %v2480_v25  ;;  %5314 = vmatprep.subr.bf16.mxu0 %v5669_v0 }
0x1415   :  { %v2605_v26 = vsel %vm433_vm3, %v2552_v21, 0  ;;  %v4722_v21 = vld [vmem:[%s6696_s10 + $0x5] ss:$0 sm:$0xff] }
0x1416   :  { %5309 = vmatpush3.bf16.xpose.msra.mxu1 %v2605_v26 }
0x1417   :  { %5320 = vmatprep.subr.bf16.mxu1 %v5669_v0 }
0x1419   :  { %5305 = vmatmul.mubr.msk.bf16.vlgmr.msra.gmra.mxu0 %vm433_vm3, %v2549_v27 }
0x141a   :  { %5315 = vmatpush3.bf16.msra.mxu0 %v2675_v31  ;;  %5316 = vmatprep.mubr.msk.bf16.mxu0 %vm5670_vm0, %v5669_v0  ;;  %v4740_v31 = vld [vmem:[%s6697_s12 + $0x5] ss:$0 sm:$0xff] }
0x141b   :  { %5326 = vmatprep.subr.bf16.mxu0 %v5669_v0 }
0x141d   :  { %5311 = vmatmul.mubr.msk.bf16.vlgmr.msra.gmra.mxu1 %vm433_vm3, %v2550_v34 }
0x141e   :  { %5321 = vmatpush3.bf16.msra.mxu1 %v2721_v35  ;;  %5322 = vmatprep.mubr.msk.bf16.mxu1 %vm5670_vm0, %v5669_v0 }
0x141f   :  { %5334 = vmatprep.subr.bf16.mxu1 %v5669_v0 }
0x14d9   :  { %v2595_v36 = vpop.f32.mrf.mxu0 }
0x14da   :  { %v2596_v54 = vadd.f32 %v2595_v36, %v5913_v14 }
0x14db   :  { %v5306_v37 = vpop.f32.mrf.mxu0 }
0x14dc   :  { %v2647_v38 = vsel %vm433_vm3, %v2596_v54, -inf }
0x14dd   :  { %2648 = vmax.xlane.f32.xlu1 %v2647_v38  ;;  %v2598_v39 = vpop.f32.mrf.mxu0  ;;  %v2641_v40 = vpop.f32.mrf.mxu1 }
0x14de   :  { %v2642_v41 = vadd.f32 %v2641_v40, %v5911_v12 }
0x14df   :  { %v5307_v29 = vpop.f32.mrf.mxu0  ;;  %v5312_v43 = vpop.f32.mrf.mxu1 }
0x14e0   :  { %v2650_v11 = vsel %vm433_vm3, %v2642_v41, -inf }
0x14e1   :  { %2651 = vmax.xlane.f32.xlu0 %v2650_v11  ;;  %v2644_v45 = vpop.f32.mrf.mxu1 }
0x14e3   :  { %v5313_v30 = vpop.f32.mrf.mxu1 }
0x1566   :  { %v2649_v46 = vpop.xlane.xlu1 %2648 }
0x1567   :  { %v2653_v47 = vsub.f32 %v2596_v54, %v2649_v46 }
0x1569   :  { %v2655_v48 = vmul.f32 1.442695, %v2653_v47 }
0x156a   :  { %v2652_v49 = vpop.xlane.xlu0 %2651 }
0x156b   :  { %5629 = vpow2.f32 %v2655_v48  ;;  %v2654_v50 = vsub.f32 %v2642_v41, %v2652_v49 }
0x156d   :  { %v2657_v51 = vmul.f32 1.442695, %v2654_v50 }
0x156f   :  { %5631 = vpow2.f32 %v2657_v51 }
0x1578   :  { %v5630_v53 = vpop.eup %5629 }
0x1579   :  { %v2659_v55 = vsel %vm433_vm3, %v5630_v53, 0.0 }
0x157a   :  { %2660 = vadd.xlane.f32.xlu1 %v2659_v55 }
0x157c   :  { %v5632_v57 = vpop.eup %5631 }
0x157d   :  { %v2662_v58 = vsel %vm433_vm3, %v5632_v57, 0.0 }
0x157e   :  { %2663 = vadd.xlane.f32.xlu0 %v2662_v58 }
0x1603   :  { %v2661_v59 = vpop.xlane.xlu1 %2660 }
0x1604   :  { %5633 = vrcp.f32 %v2661_v59 }
0x1607   :  { %v2664_v62 = vpop.xlane.xlu0 %2663 }
0x1608   :  { %5635 = vrcp.f32 %v2664_v62 }
0x1611   :  { %v5634_v1 = vpop.eup %5633 }
0x1612   :  { %v2667_v2 = vmul.f32 %v5634_v1, %v5630_v53 }
0x1614   :  { %v2669_v4 = vpack.c.bf16 %v2667_v2, %v2667_v2 }
0x1615   :  { %v5636_v5 = vpop.eup %5635 }
0x1616   :  { %5317 = vmatmul.mubr.msk.bf16.vlgmr.msra.gmra.mxu0 %vm433_vm3, %v2669_v4  ;;  %v2668_v6 = vmul.f32 %v5636_v5, %v5632_v57 }
0x1617   :  { %5327 = vmatpush3.bf16.msra.mxu0 %v5563_v3  ;;  %5330 = vmatprep.mubr.msk.bf16.mxu0 %vm5670_vm0, %v5669_v0 }
0x1618   :  { %v2670_v9 = vpack.c.bf16 %v2668_v6, %v2668_v6  ;;  %5328 = vmatprep.subr.bf16.mxu0 %v5669_v0 }
0x161a   :  { %5323 = vmatmul.mubr.msk.bf16.vlgmr.msra.gmra.mxu1 %vm433_vm3, %v2670_v9 }
0x161b   :  { %5329 = vmatpush3.bf16.msra.mxu0 %v5564_v7  ;;  %5335 = vmatpush3.bf16.msra.mxu1 %v5565_v8 }
0x161c   :  { %5336 = vmatprep.subr.bf16.mxu1 %v5669_v0  ;;  %5342 = vmatprep.subr.bf16.mxu0 %v5669_v0 }
0x161d   :  { %5338 = vmatprep.mubr.msk.bf16.mxu1 %vm5670_vm0, %v5669_v0 }
0x161e   :  { %5331 = vmatmul.mubr.msk.bf16.vlgmr.msra.gmra.mxu0 %vm252_vm2, %v6285_v63 }
0x161f   :  { %5337 = vmatpush3.bf16.msra.mxu1 %v5566_v52  ;;  %5343 = vmatpush3.bf16.msra.mxu0 %v5567_v56 }
0x1620   :  { %5344 = vmatprep.subr.bf16.mxu0 %v5669_v0  ;;  %5346 = vmatprep.mubr.msk.bf16.mxu0 %vm5670_vm0, %v5669_v0 }
0x1621   :  { %5350 = vmatprep.subr.bf16.mxu1 %v5669_v0 }
0x1622   :  { %5339 = vmatmul.mubr.msk.bf16.vlgmr.msra.gmra.mxu1 %vm252_vm2, %v6285_v63 }
0x1623   :  { %5345 = vmatpush3.bf16.msra.mxu0 %v5568_v10  ;;  %5352 = vmatprep.mubr.msk.bf16.mxu1 %vm5670_vm0, %v5669_v0 }
0x1624   :  { %5356 = vmatprep.subr.bf16.mxu0 %v5669_v0 }
0x1626   :  { %5347 = vmatmul.mubr.msk.bf16.vlgmr.msra.gmra.mxu0 %vm252_vm2, %v6285_v63 }
0x1627   :  { %5358 = vmatprep.mubr.msk.bf16.mxu0 %vm5670_vm0, %v5669_v0 }
0x16d6   :  { %v6375_v32 = vpop.f32.mrf.mxu0 }
0x16d8   :  { %v5318_v13 = vpop.f32.mrf.mxu0 }
0x16da   :  { %v2714_v15 = vpop.f32.mrf.mxu0  ;;  %v6377_v16 = vpop.f32.mrf.mxu1 }
0x16db   :  { %v2763_v22 = vpack.c.bf16 %v6377_v16, %v6375_v32  ;;  %v4748_v32 = vld [vmem:[%s6699_s13 + $0x14] sm:$0xf] }
0x16dc   :  { %v5319_v42 = vpop.f32.mrf.mxu0  ;;  %v5324_v17 = vpop.f32.mrf.mxu1  ;;  %v3187_v16 = vsel %vm553_vm4, %v4748_v32, 0 }
0x16de   :  { %v2760_v18 = vpop.f32.mrf.mxu1  ;;  %v2825_v25 = vpop.f32.mrf.mxu0 }
0x16df   :  { %v2826_v33 = vadd.f32 %v4722_v21, %v2825_v25 }
0x16e0   :  { %v5325_v44 = vpop.f32.mrf.mxu1  ;;  %v5332_v19 = vpop.f32.mrf.mxu0 }
0x16e1   :  { %v2832_v41 = vmul.f32 0.35355338, %v2826_v33  ;;  %v5569_v33 = vld [vmem:[%s6733_s2 + $0x68] sm:$0xff]  }
0x16e2   :  { %v2828_v23 = vpop.f32.mrf.mxu0  ;;  %v2893_v24 = vpop.f32.mrf.mxu1 }
0x16e3   :  { %v2894_v26 = vadd.f32 %v4731_v20, %v2893_v24  ;;  %v2829_v29 = vadd.f32 %v4722_v21, %v2828_v23  ;;  %v2966_v48 = vpack.c.bf16 %v2832_v41, %v2832_v41 }
0x16e4   :  { %v5333_v27 = vpop.f32.mrf.mxu0  ;;  %v5340_v28 = vpop.f32.mrf.mxu1 }
0x16e5   :  { %v2968_v34 = vpack.c.bf16 %v2894_v26, %v2894_v26  ;;  %v2833_v49 = vmul.f32 0.35355338, %v2829_v29  ;;  %v4716_v26 = vld [vmem:[%s6699_s13 + $0x10] sm:$0xf]  ;;  %v5572_v29 = vld [vmem:[%s6732_s30 + $0x60] sm:$0xff]  }
0x16e6   :  { %v2896_v35 = vpop.f32.mrf.mxu1  ;;  %v2959_v36 = vpop.f32.mrf.mxu0 }
0x16e7   :  { %v2976_v54 = vsel %vm433_vm3, %v2968_v34, 0  ;;  %v2897_v37 = vadd.f32 %v4731_v20, %v2896_v35  ;;  %v2960_v38 = vadd.f32 %v4740_v31, %v2959_v36  ;;  %v2967_v53 = vpack.c.bf16 %v2833_v49, %v2833_v49  ;;  %v5570_v34 = vld [vmem:[%s6733_s2 + $0x60] sm:$0xff]  }
0x16e8   :  { %v5341_v39 = vpop.f32.mrf.mxu1  ;;  %v5348_v40 = vpop.f32.mrf.mxu0  ;;  %5351 = vmatpush3.bf16.xpose.msra.mxu1 %v2976_v54  ;;  %v4765_v49 = vld [vmem:[%s6737_s28 + $0x6] ss:$0 sm:$0xff] }
0x16e9   :  { %v2969_v43 = vpack.c.bf16 %v2897_v37, %v2897_v37  ;;  %5362 = vmatprep.subr.bf16.mxu1 %v5669_v0  ;;  %v2970_v30 = vpack.c.bf16 %v2960_v38, %v2960_v38  ;;  %v5571_v37 = vld [vmem:[%s6732_s30 + $0x68] sm:$0xff]  }
0x16ea   :  { %v2962_v11 = vpop.f32.mrf.mxu0 }
0x16eb   :  { %v3022_v45 = vsel %vm433_vm3, %v2969_v43, 0  ;;  %v2963_v46 = vadd.f32 %v4740_v31, %v2962_v11  ;;  %v3092_v50 = vsel %vm553_vm4, %v2970_v30, 0  ;;  %v3234_v31 = vsel %vm553_vm4, %v4716_v26, 0 }
0x16ec   :  { %v5349_v47 = vpop.f32.mrf.mxu0  ;;  %5357 = vmatpush3.bf16.xpose.msra.mxu0 %v3022_v45  ;;  %v5573_v45 = vld [vmem:[%s6736_s0 + $0x68] sm:$0xff]  }
0x16ed   :  { %5368 = vmatprep.subr.bf16.mxu0 %v5669_v0  ;;  %v2971_v51 = vpack.c.bf16 %v2963_v46, %v2963_v46  ;;  %v5574_v47 = vld [vmem:[%s6736_s0 + $0x60] sm:$0xff]  }
0x16ef   :  { %5353 = vmatmul.mubr.msk.bf16.vlgmr.msra.gmra.mxu1 %vm433_vm3, %v2966_v48  ;;  %v3138_v55 = vsel %vm553_vm4, %v2971_v51, 0 }
0x16f0   :  { %5363 = vmatpush3.bf16.msra.mxu1 %v3092_v50  ;;  %5364 = vmatprep.mubr.msk.bf16.mxu1 %vm5670_vm0, %v5669_v0 }
0x16f1   :  { %5374 = vmatprep.subr.bf16.mxu1 %v5669_v0 }
0x16f3   :  { %5359 = vmatmul.mubr.msk.bf16.vlgmr.msra.gmra.mxu0 %vm433_vm3, %v2967_v53 }
0x16f4   :  { %5369 = vmatpush3.bf16.msra.mxu0 %v3138_v55  ;;  %5370 = vmatprep.mubr.msk.bf16.mxu0 %vm5670_vm0, %v5669_v0 }
0x16f5   :  { %5380 = vmatprep.subr.bf16.mxu0 %v5669_v0 }
0x17af   :  { %v3012_v57 = vpop.f32.mrf.mxu1 }
0x17b0   :  { %v3013_v58 = vadd.f32 %v3012_v57, %v5913_v14 }
0x17b1   :  { %v5354_v59 = vpop.f32.mrf.mxu1 }
0x17b2   :  { %v3064_v62 = vsel %vm433_vm3, %v3013_v58, -inf }
0x17b3   :  { %v3058_v1 = vpop.f32.mrf.mxu0  ;;  %3065 = vmax.xlane.f32.xlu0 %v3064_v62  ;;  %v3015_v2 = vpop.f32.mrf.mxu1 }
0x17b4   :  { %v3059_v3 = vadd.f32 %v3058_v1, %v5911_v12 }
0x17b5   :  { %v5355_v4 = vpop.f32.mrf.mxu1  ;;  %v5360_v5 = vpop.f32.mrf.mxu0 }
0x17b6   :  { %v3067_v6 = vsel %vm433_vm3, %v3059_v3, -inf }
0x17b7   :  { %3068 = vmax.xlane.f32.xlu1 %v3067_v6  ;;  %v3061_v7 = vpop.f32.mrf.mxu0 }
0x17b8   :  { %v4756_v7 = vld [vmem:[%s6696_s10 + $0x6] ss:$0 sm:$0xff] }
0x17b9   :  { %v5361_v8 = vpop.f32.mrf.mxu0 }
0x183c   :  { %v3066_v9 = vpop.xlane.xlu0 %3065 }
0x183d   :  { %v3070_v52 = vsub.f32 %v3013_v58, %v3066_v9 }
0x183f   :  { %v3072_v56 = vmul.f32 1.442695, %v3070_v52 }
0x1840   :  { %v3069_v10 = vpop.xlane.xlu1 %3068 }
0x1841   :  { %5637 = vpow2.f32 %v3072_v56  ;;  %v3071_v13 = vsub.f32 %v3059_v3, %v3069_v10 }
0x1843   :  { %v3074_v15 = vmul.f32 1.442695, %v3071_v13 }
0x1845   :  { %5639 = vpow2.f32 %v3074_v15 }
0x184e   :  { %v5638_v42 = vpop.eup %5637 }
0x184f   :  { %v3076_v17 = vsel %vm433_vm3, %v5638_v42, 0.0 }
0x1850   :  { %3077 = vadd.xlane.f32.xlu0 %v3076_v17  ;;  %v4774_v17 = vld [vmem:[%s6697_s12 + $0x6] ss:$0 sm:$0xff] }
0x1852   :  { %v5640_v18 = vpop.eup %5639 }
0x1853   :  { %v3079_v25 = vsel %vm433_vm3, %v5640_v18, 0.0 }
0x1854   :  { %3080 = vadd.xlane.f32.xlu1 %v3079_v25 }
0x18d9   :  { %v3078_v44 = vpop.xlane.xlu0 %3077 }
0x18da   :  { %5641 = vrcp.f32 %v3078_v44 }
0x18dd   :  { %v3081_v19 = vpop.xlane.xlu1 %3080 }
0x18de   :  { %5643 = vrcp.f32 %v3081_v19 }
0x18e7   :  { %v5642_v20 = vpop.eup %5641 }
0x18e8   :  { %v3084_v21 = vmul.f32 %v5642_v20, %v5638_v42 }
0x18ea   :  { %v3086_v23 = vpack.c.bf16 %v3084_v21, %v3084_v21 }
0x18eb   :  { %v5644_v24 = vpop.eup %5643 }
0x18ec   :  { %5365 = vmatmul.mubr.msk.bf16.vlgmr.msra.gmra.mxu1 %vm433_vm3, %v3086_v23  ;;  %v3085_v27 = vmul.f32 %v5644_v24, %v5640_v18 }
0x18ed   :  { %5376 = vmatprep.mubr.msk.bf16.mxu1 %vm5670_vm0, %v5669_v0  ;;  %5375 = vmatpush3.bf16.msra.mxu1 %v3187_v16 }
0x18ee   :  { %v3087_v28 = vpack.c.bf16 %v3085_v27, %v3085_v27  ;;  %5386 = vmatprep.subr.bf16.mxu1 %v5669_v0 }
0x18f0   :  { %5371 = vmatmul.mubr.msk.bf16.vlgmr.msra.gmra.mxu0 %vm433_vm3, %v3087_v28 }
0x18f1   :  { %5381 = vmatpush3.bf16.msra.mxu0 %v3234_v31  ;;  %5382 = vmatprep.mubr.msk.bf16.mxu0 %vm5670_vm0, %v5669_v0 }
0x18f2   :  { %5394 = vmatprep.subr.bf16.mxu0 %v5669_v0 }
0x18f8   :  { %5383 = vmatmul.mubr.msk.bf16.vlgmr.msra.gmra.mxu0 %vm433_vm3, %v2763_v22 }
0x18f9   :  { %5395 = vmatpush3.bf16.msra.mxu0 %v5569_v33  ;;  %5398 = vmatprep.mubr.msk.bf16.mxu0 %vm5670_vm0, %v5669_v0 }
0x18fa   :  { %5396 = vmatprep.subr.bf16.mxu0 %v5669_v0 }
0x18fd   :  { %5397 = vmatpush3.bf16.msra.mxu0 %v5570_v34 }
0x18fe   :  { %5410 = vmatprep.subr.bf16.mxu0 %v5669_v0 }
0x1900   :  { %5399 = vmatmul.mubr.msk.bf16.vlgmr.msra.gmra.mxu0 %vm252_vm2, %v6285_v63 }
0x1901   :  { %5412 = vmatprep.mubr.msk.bf16.mxu0 %vm5670_vm0, %v5669_v0 }
0x19ac   :  { %v3128_v22 = vpop.f32.mrf.mxu1 }
0x19ae   :  { %v5366_v35 = vpop.f32.mrf.mxu1 }
0x19b0   :  { %v3131_v36 = vpop.f32.mrf.mxu1  ;;  %v3174_v54 = vpop.f32.mrf.mxu0 }
0x19b1   :  { %v3180_v38 = vpack.c.bf16 %v3174_v54, %v3128_v22 }
0x19b2   :  { %v5367_v39 = vpop.f32.mrf.mxu1  ;;  %v5372_v40 = vpop.f32.mrf.mxu0 }
0x19b3   :  { %5377 = vmatmul.mubr.msk.bf16.vlgmr.msra.gmra.mxu1 %vm433_vm3, %v3180_v38 }
0x19b4   :  { %v3177_v41 = vpop.f32.mrf.mxu0  ;;  %5387 = vmatpush3.bf16.msra.mxu1 %v5571_v37  ;;  %5390 = vmatprep.mubr.msk.bf16.mxu1 %vm5670_vm0, %v5669_v0 }
0x19b5   :  { %5388 = vmatprep.subr.bf16.mxu1 %v5669_v0 }
0x19b6   :  { %v5373_v43 = vpop.f32.mrf.mxu0 }
0x19b8   :  { %v6454_v11 = vpop.f32.mrf.mxu0  ;;  %5389 = vmatpush3.bf16.msra.mxu1 %v5572_v29 }
0x19b9   :  { %5402 = vmatprep.subr.bf16.mxu1 %v5669_v0 }
0x19ba   :  { %v5384_v30 = vpop.f32.mrf.mxu0 }
0x19bb   :  { %5391 = vmatmul.mubr.msk.bf16.vlgmr.msra.gmra.mxu1 %vm252_vm2, %v6285_v63 }
0x19bc   :  { %v6462_v46 = vpop.f32.mrf.mxu0  ;;  %5403 = vmatpush3.bf16.msra.mxu1 %v5573_v45  ;;  %5406 = vmatprep.mubr.msk.bf16.mxu1 %vm5670_vm0, %v5669_v0 }
0x19bd   :  { %5404 = vmatprep.subr.bf16.mxu1 %v5669_v0 }
0x19be   :  { %v5385_v48 = vpop.f32.mrf.mxu0 }
0x19c0   :  { %v3404_v50 = vpop.f32.mrf.mxu0  ;;  %5405 = vmatpush3.bf16.msra.mxu1 %v5574_v47 }
0x19c1   :  { %v3405_v51 = vadd.f32 %v4765_v49, %v3404_v50  ;;  %5416 = vmatprep.subr.bf16.mxu1 %v5669_v0 }
0x19c2   :  { %v5400_v53 = vpop.f32.mrf.mxu0 }
0x19c3   :  { %v3479_v55 = vpack.c.bf16 %v3405_v51, %v3405_v51  ;;  %5407 = vmatmul.mubr.msk.bf16.vlgmr.msra.gmra.mxu1 %vm252_vm2, %v6285_v63 }
0x19c4   :  { %v3407_v57 = vpop.f32.mrf.mxu0  ;;  %5418 = vmatprep.mubr.msk.bf16.mxu1 %vm5670_vm0, %v5669_v0 }
0x19c5   :  { %v3487_v58 = vsel %vm433_vm3, %v3479_v55, 0  ;;  %v3408_v59 = vadd.f32 %v4765_v49, %v3407_v57 }
0x19c6   :  { %v5401_v62 = vpop.f32.mrf.mxu0  ;;  %5411 = vmatpush3.bf16.xpose.msra.mxu0 %v3487_v58 }
0x19c7   :  { %v3480_v1 = vpack.c.bf16 %v3408_v59, %v3408_v59  ;;  %5422 = vmatprep.subr.bf16.mxu0 %v5669_v0 }
0x19c9   :  { %v3533_v2 = vsel %vm433_vm3, %v3480_v1, 0 }
0x19ca   :  { %5417 = vmatpush3.bf16.xpose.msra.mxu1 %v3533_v2  ;;  %v5575_v2 = vld [vmem:[%s6732_s30 + $0x78] sm:$0xff]  }
0x19cb   :  { %5428 = vmatprep.subr.bf16.mxu1 %v5669_v0 }
0x1a73   :  { %v6482_v3 = vpop.f32.mrf.mxu1 }
0x1a75   :  { %v5378_v4 = vpop.f32.mrf.mxu1 }
0x1a77   :  { %v6484_v5 = vpop.f32.mrf.mxu1 }
0x1a79   :  { %v5379_v6 = vpop.f32.mrf.mxu1 }
0x1a7a   :  { %v5576_v6 = vld [vmem:[%s6732_s30 + $0x70] sm:$0xff]  }
0x1a7b   :  { %v3336_v8 = vpop.f32.mrf.mxu1 }
0x1a7c   :  { %v3337_v9 = vadd.f32 %v4756_v7, %v3336_v8  ;;  %v5578_v8 = vld [vmem:[%s6736_s0 + $0x70] sm:$0xff]  }
0x1a7d   :  { %v5392_v52 = vpop.f32.mrf.mxu1 }
0x1a7e   :  { %v3343_v56 = vmul.f32 0.35355338, %v3337_v9  ;;  %v4782_v9 = vld [vmem:[%s6699_s13 + $0x18] sm:$0xf] }
0x1a7f   :  { %v3339_v10 = vpop.f32.mrf.mxu1  ;;  %v3698_v52 = vsel %vm553_vm4, %v4782_v9, 0 }
0x1a80   :  { %v3477_v13 = vpack.c.bf16 %v3343_v56, %v3343_v56  ;;  %v3340_v15 = vadd.f32 %v4756_v7, %v3339_v10  ;;  %v5577_v7 = vld [vmem:[%s6736_s0 + $0x78] sm:$0xff]  }
0x1a81   :  { %v5393_v42 = vpop.f32.mrf.mxu1 }
0x1a82   :  { %v3344_v18 = vmul.f32 0.35355338, %v3340_v15  ;;  %5413 = vmatmul.mubr.msk.bf16.vlgmr.msra.gmra.mxu0 %vm433_vm3, %v3477_v13  ;;  %v5579_v42 = vld [vmem:[%s6733_s2 + $0x78] sm:$0xff]  }
0x1a83   :  { %v3470_v25 = vpop.f32.mrf.mxu1  ;;  %5424 = vmatprep.mubr.msk.bf16.mxu0 %vm5670_vm0, %v5669_v0 }
0x1a84   :  { %v3478_v44 = vpack.c.bf16 %v3344_v18, %v3344_v18  ;;  %v3471_v19 = vadd.f32 %v4774_v17, %v3470_v25 }
0x1a85   :  { %v5408_v20 = vpop.f32.mrf.mxu1 }
0x1a86   :  { %v3481_v21 = vpack.c.bf16 %v3471_v19, %v3471_v19  ;;  %5419 = vmatmul.mubr.msk.bf16.vlgmr.msra.gmra.mxu1 %vm433_vm3, %v3478_v44  ;;  %v5580_v19 = vld [vmem:[%s6733_s2 + $0x70] sm:$0xff]  }
0x1a87   :  { %v3473_v23 = vpop.f32.mrf.mxu1  ;;  %5430 = vmatprep.mubr.msk.bf16.mxu1 %vm5670_vm0, %v5669_v0 }
0x1a88   :  { %v3603_v24 = vsel %vm553_vm4, %v3481_v21, 0  ;;  %v3474_v26 = vadd.f32 %v4774_v17, %v3473_v23 }
0x1a89   :  { %v5409_v27 = vpop.f32.mrf.mxu1  ;;  %5423 = vmatpush3.bf16.msra.mxu0 %v3603_v24 }
0x1a8a   :  { %v3482_v28 = vpack.c.bf16 %v3474_v26, %v3474_v26  ;;  %5434 = vmatprep.subr.bf16.mxu0 %v5669_v0 }
0x1a8c   :  { %v3649_v31 = vsel %vm553_vm4, %v3482_v28, 0 }
0x1a8d   :  { %5429 = vmatpush3.bf16.msra.mxu1 %v3649_v31 }
0x1a8e   :  { %5440 = vmatprep.subr.bf16.mxu1 %v5669_v0 }
0x1b42   :  { %v3523_v33 = vpop.f32.mrf.mxu0 }
0x1b43   :  { %v3524_v34 = vadd.f32 %v3523_v33, %v5913_v14 }
0x1b44   :  { %v5414_v32 = vpop.f32.mrf.mxu0 }
0x1b45   :  { %v3575_v16 = vsel %vm433_vm3, %v3524_v34, -inf }
0x1b46   :  { %3576 = vmax.xlane.f32.xlu0 %v3575_v16  ;;  %v3526_v22 = vpop.f32.mrf.mxu0  ;;  %v3569_v35 = vpop.f32.mrf.mxu1 }
0x1b47   :  { %v3570_v36 = vadd.f32 %v3569_v35, %v5911_v12  ;;  %v3274_v35 = vadd.f32 %v6462_v46, %v6484_v5 }
0x1b48   :  { %v5415_v54 = vpop.f32.mrf.mxu0  ;;  %v5420_v37 = vpop.f32.mrf.mxu1 }
0x1b49   :  { %v3578_v38 = vsel %vm433_vm3, %v3570_v36, -inf  ;;  %v4798_v37 = vld [vmem:[%s6737_s28 + $0x7] ss:$0 sm:$0xff] }
0x1b4a   :  { %3579 = vmax.xlane.f32.xlu1 %v3578_v38  ;;  %v3572_v39 = vpop.f32.mrf.mxu1  ;;  %v4789_v38 = vld [vmem:[%s6696_s10 + $0x7] ss:$0 sm:$0xff] }
0x1b4b   :  { %v4807_v39 = vld [vmem:[%s6697_s12 + $0x7] ss:$0 sm:$0xff] }
0x1b4c   :  { %v5421_v40 = vpop.f32.mrf.mxu1 }
0x1bcf   :  { %v3577_v41 = vpop.xlane.xlu0 %3576 }
0x1bd0   :  { %v3581_v29 = vsub.f32 %v3524_v34, %v3577_v41  ;;  %v3271_v34 = vadd.f32 %v6454_v11, %v6482_v3 }
0x1bd2   :  { %v3583_v43 = vmul.f32 1.442695, %v3581_v29 }
0x1bd3   :  { %v3580_v45 = vpop.xlane.xlu1 %3579 }
0x1bd4   :  { %5645 = vpow2.f32 %v3583_v43  ;;  %v3582_v30 = vsub.f32 %v3570_v36, %v3580_v45 }
0x1bd6   :  { %v3585_v47 = vmul.f32 1.442695, %v3582_v30 }
0x1bd8   :  { %5647 = vpow2.f32 %v3585_v47 }
0x1be1   :  { %v5646_v48 = vpop.eup %5645 }
0x1be2   :  { %v3587_v49 = vsel %vm433_vm3, %v5646_v48, 0.0 }
0x1be3   :  { %3588 = vadd.xlane.f32.xlu0 %v3587_v49 }
0x1be5   :  { %v5648_v50 = vpop.eup %5647 }
0x1be6   :  { %v3590_v51 = vsel %vm433_vm3, %v5648_v50, 0.0 }
0x1be7   :  { %3591 = vadd.xlane.f32.xlu1 %v3590_v51 }
0x1c6c   :  { %v3589_v53 = vpop.xlane.xlu0 %3588 }
0x1c6d   :  { %5649 = vrcp.f32 %v3589_v53 }
0x1c70   :  { %v3592_v55 = vpop.xlane.xlu1 %3591 }
0x1c71   :  { %5651 = vrcp.f32 %v3592_v55 }
0x1c7a   :  { %v5650_v57 = vpop.eup %5649 }
0x1c7b   :  { %v3595_v58 = vmul.f32 %v5650_v57, %v5646_v48 }
0x1c7d   :  { %v3597_v59 = vpack.c.bf16 %v3595_v58, %v3595_v58 }
0x1c7e   :  { %v5652_v62 = vpop.eup %5651 }
0x1c7f   :  { %v3596_v1 = vmul.f32 %v5652_v62, %v5648_v50  ;;  %5425 = vmatmul.mubr.msk.bf16.vlgmr.msra.gmra.mxu0 %vm433_vm3, %v3597_v59 }
0x1c80   :  { %5436 = vmatprep.mubr.msk.bf16.mxu0 %vm5670_vm0, %v5669_v0  ;;  %5435 = vmatpush3.bf16.msra.mxu0 %v3698_v52 }
0x1c81   :  { %v3598_v4 = vpack.c.bf16 %v3596_v1, %v3596_v1  ;;  %5448 = vmatprep.subr.bf16.mxu0 %v5669_v0 }
0x1c83   :  { %5431 = vmatmul.mubr.msk.bf16.vlgmr.msra.gmra.mxu1 %vm433_vm3, %v3598_v4 }
0x1c84   :  { %5441 = vmatpush3.bf16.msra.mxu1 %v5575_v2  ;;  %5444 = vmatprep.mubr.msk.bf16.mxu1 %vm5670_vm0, %v5669_v0 }
0x1c85   :  { %5442 = vmatprep.subr.bf16.mxu1 %v5669_v0 }
0x1c88   :  { %5443 = vmatpush3.bf16.msra.mxu1 %v5576_v6 }
0x1c89   :  { %5456 = vmatprep.subr.bf16.mxu1 %v5669_v0 }
0x1c8b   :  { %5445 = vmatmul.mubr.msk.bf16.vlgmr.msra.gmra.mxu1 %vm252_vm2, %v6285_v63 }
0x1c8c   :  { %5457 = vmatpush3.bf16.msra.mxu1 %v5577_v7  ;;  %5460 = vmatprep.mubr.msk.bf16.mxu1 %vm5670_vm0, %v5669_v0 }
0x1c8d   :  { %5458 = vmatprep.subr.bf16.mxu1 %v5669_v0 }
0x1c90   :  { %5459 = vmatpush3.bf16.msra.mxu1 %v5578_v8 }
0x1c91   :  { %5470 = vmatprep.subr.bf16.mxu1 %v5669_v0 }
0x1c93   :  { %5461 = vmatmul.mubr.msk.bf16.vlgmr.msra.gmra.mxu1 %vm252_vm2, %v6285_v63 }
0x1c94   :  { %5472 = vmatprep.mubr.msk.bf16.mxu1 %vm5670_vm0, %v5669_v0 }
0x1d3f   :  { %v3639_v56 = vpop.f32.mrf.mxu0 }
0x1d41   :  { %v5426_v10 = vpop.f32.mrf.mxu0 }
0x1d43   :  { %v3642_v13 = vpop.f32.mrf.mxu0  ;;  %v3685_v15 = vpop.f32.mrf.mxu1 }
0x1d44   :  { %v3691_v17 = vpack.c.bf16 %v3685_v15, %v3639_v56 }
0x1d45   :  { %v5427_v18 = vpop.f32.mrf.mxu0  ;;  %v5432_v25 = vpop.f32.mrf.mxu1 }
0x1d46   :  { %5437 = vmatmul.mubr.msk.bf16.vlgmr.msra.gmra.mxu0 %vm433_vm3, %v3691_v17 }
0x1d47   :  { %v3688_v44 = vpop.f32.mrf.mxu1  ;;  %5449 = vmatpush3.bf16.msra.mxu0 %v5579_v42  ;;  %5452 = vmatprep.mubr.msk.bf16.mxu0 %vm5670_vm0, %v5669_v0 }
0x1d48   :  { %5450 = vmatprep.subr.bf16.mxu0 %v5669_v0 }
0x1d49   :  { %v5433_v20 = vpop.f32.mrf.mxu1 }
0x1d4b   :  { %v3802_v21 = vpop.f32.mrf.mxu1  ;;  %5451 = vmatpush3.bf16.msra.mxu0 %v5580_v19 }
0x1d4c   :  { %5464 = vmatprep.subr.bf16.mxu0 %v5669_v0  ;;  %v3803_v46 = vadd.f32 %v4789_v38, %v3802_v21 }
0x1d4d   :  { %v5446_v23 = vpop.f32.mrf.mxu1 }
0x1d4e   :  { %5453 = vmatmul.mubr.msk.bf16.vlgmr.msra.gmra.mxu0 %vm252_vm2, %v6285_v63  ;;  %v3809_v47 = vmul.f32 0.35355338, %v3803_v46 }
0x1d4f   :  { %v3805_v24 = vpop.f32.mrf.mxu1  ;;  %5466 = vmatprep.mubr.msk.bf16.mxu0 %vm5670_vm0, %v5669_v0 }
0x1d50   :  { %v3806_v48 = vadd.f32 %v4789_v38, %v3805_v24  ;;  %v3943_v55 = vpack.c.bf16 %v3809_v47, %v3809_v47 }
0x1d51   :  { %v5447_v26 = vpop.f32.mrf.mxu1 }
0x1d52   :  { %v3810_v57 = vmul.f32 0.35355338, %v3806_v48 }
0x1d53   :  { %v3936_v27 = vpop.f32.mrf.mxu1 }
0x1d54   :  { %v3937_v29 = vadd.f32 %v4807_v39, %v3936_v27  ;;  %v3944_v62 = vpack.c.bf16 %v3810_v57, %v3810_v57 }
0x1d55   :  { %v5462_v28 = vpop.f32.mrf.mxu1 }
0x1d56   :  { %v3947_v50 = vpack.c.bf16 %v3937_v29, %v3937_v29 }
0x1d57   :  { %v3939_v31 = vpop.f32.mrf.mxu1 }
0x1d58   :  { %v3940_v51 = vadd.f32 %v4807_v39, %v3939_v31  ;;  %v4069_v58 = vsel %vm553_vm4, %v3947_v50, 0 }
0x1d59   :  { %v5463_v33 = vpop.f32.mrf.mxu1 }
0x1d5a   :  { %v3948_v59 = vpack.c.bf16 %v3940_v51, %v3940_v51 }
0x1d5c   :  { %v4115_v1 = vsel %vm553_vm4, %v3948_v59, 0 }
0x1e06   :  { %v3734_v32 = vpop.f32.mrf.mxu0 }
0x1e07   :  { %v6560_v16 = vadd.f32 %v3734_v32, %v3271_v34 }
0x1e08   :  { %v5438_v22 = vpop.f32.mrf.mxu0 }
0x1e09   :  { %v4815_v22 = vld [vmem:[%s6699_s13 + $0x1c] sm:$0xf] }
0x1e0a   :  { %v3737_v63 = vpop.f32.mrf.mxu0 }
0x1e0b   :  { %v6564_v36 = vadd.f32 %v3737_v63, %v3274_v35  ;;  %v4164_v35 = vsel %vm553_vm4, %v4815_v22, 0 }
0x1e0c   :  { %v5439_v54 = vpop.f32.mrf.mxu0 }
0x1e0e   :  { %v3870_v11 = vpop.f32.mrf.mxu0 }
0x1e0f   :  { %v3871_v3 = vadd.f32 %v4798_v37, %v3870_v11 }
0x1e10   :  { %v5454_v40 = vpop.f32.mrf.mxu0 }
0x1e11   :  { %v3945_v5 = vpack.c.bf16 %v3871_v3, %v3871_v3 }
0x1e12   :  { %v3873_v41 = vpop.f32.mrf.mxu0 }
0x1e13   :  { %v3953_v43 = vsel %vm433_vm3, %v3945_v5, 0  ;;  %v3874_v45 = vadd.f32 %v4798_v37, %v3873_v41 }
0x1e14   :  { %v5455_v30 = vpop.f32.mrf.mxu0  ;;  %5465 = vmatpush3.bf16.xpose.msra.mxu0 %v3953_v43  ;;  %v4818_v43 = vld [vmem:[%s6700_s14 + $0x1] ss:$0 sm:$0xff] }
0x1e15   :  { %v3946_v49 = vpack.c.bf16 %v3874_v45, %v3874_v45  ;;  %5476 = vmatprep.subr.bf16.mxu0 %v5669_v0 }
0x1e17   :  { %v3999_v53 = vsel %vm433_vm3, %v3946_v49, 0 }
0x1e18   :  { %5471 = vmatpush3.bf16.xpose.msra.mxu1 %v3999_v53 }
0x1e19   :  { %5482 = vmatprep.subr.bf16.mxu1 %v5669_v0 }
0x1e1b   :  { %5467 = vmatmul.mubr.msk.bf16.vlgmr.msra.gmra.mxu0 %vm433_vm3, %v3943_v55 }
0x1e1c   :  { %5477 = vmatpush3.bf16.msra.mxu0 %v4069_v58  ;;  %5478 = vmatprep.mubr.msk.bf16.mxu0 %vm5670_vm0, %v5669_v0 }
0x1e1d   :  { %5488 = vmatprep.subr.bf16.mxu0 %v5669_v0 }
0x1e1f   :  { %5473 = vmatmul.mubr.msk.bf16.vlgmr.msra.gmra.mxu1 %vm433_vm3, %v3944_v62 }
0x1e20   :  { %5483 = vmatpush3.bf16.msra.mxu1 %v4115_v1  ;;  %5484 = vmatprep.mubr.msk.bf16.mxu1 %vm5670_vm0, %v5669_v0 }
0x1e21   :  { %5494 = vmatprep.subr.bf16.mxu1 %v5669_v0 }
0x1edb   :  { %v3989_v2 = vpop.f32.mrf.mxu0 }
0x1edc   :  { %v3990_v4 = vadd.f32 %v3989_v2, %v5913_v14 }
0x1edd   :  { %v5468_v6 = vpop.f32.mrf.mxu0 }
0x1ede   :  { %v4041_v7 = vsel %vm433_vm3, %v3990_v4, -inf  ;;  %v5582_v6 = vld [vmem:[%s6701_s17 + $0x10] sm:$0xff]  }
0x1edf   :  { %4042 = vmax.xlane.f32.xlu0 %v4041_v7  ;;  %v3992_v8 = vpop.f32.mrf.mxu0  ;;  %v4035_v9 = vpop.f32.mrf.mxu1  ;;  %v5583_v7 = vld [vmem:[%s6702_s19 + $0x38] sm:$0xff]  }
0x1ee0   :  { %v4036_v52 = vadd.f32 %v4035_v9, %v5911_v12 }
0x1ee1   :  { %v5469_v56 = vpop.f32.mrf.mxu0  ;;  %v5474_v10 = vpop.f32.mrf.mxu1 }
0x1ee2   :  { %v4044_v13 = vsel %vm433_vm3, %v4036_v52, -inf }
0x1ee3   :  { %4045 = vmax.xlane.f32.xlu1 %v4044_v13  ;;  %v4038_v15 = vpop.f32.mrf.mxu1 }
0x1ee5   :  { %v5475_v42 = vpop.f32.mrf.mxu1 }
0x1f68   :  { %v4043_v17 = vpop.xlane.xlu0 %4042 }
0x1f69   :  { %v4047_v18 = vsub.f32 %v3990_v4, %v4043_v17  ;;  %v5581_v4 = vld [vmem:[%s6701_s17 + $0x18] sm:$0xff]   ;;  %v4821_v17 = vld [vmem:[%s6703_s15 + $0x1] ss:$0 sm:$0xff] }
0x1f6b   :  { %v4049_v25 = vmul.f32 1.442695, %v4047_v18 }
0x1f6c   :  { %v4046_v44 = vpop.xlane.xlu1 %4045 }
0x1f6d   :  { %5653 = vpow2.f32 %v4049_v25  ;;  %v4048_v14 = vsub.f32 %v4036_v52, %v4046_v44 }
0x1f6f   :  { %v4051_v19 = vmul.f32 1.442695, %v4048_v14  ;;  %v4822_v14 = vld [vmem:[%s6704_s16 + $0x1] ss:$0 sm:$0xff] }
0x1f71   :  { %5655 = vpow2.f32 %v4051_v19 }
0x1f7a   :  { %v5654_v20 = vpop.eup %5653 }
0x1f7b   :  { %v4053_v21 = vsel %vm433_vm3, %v5654_v20, 0.0 }
0x1f7c   :  { %4054 = vadd.xlane.f32.xlu0 %v4053_v21 }
0x1f7e   :  { %v5656_v12 = vpop.eup %5655 }
0x1f7f   :  { %v4056_v23 = vsel %vm433_vm3, %v5656_v12, 0.0 }
0x1f80   :  { %4057 = vadd.xlane.f32.xlu1 %v4056_v23  ;;  %v5584_v23 = vld [vmem:[%s6702_s19 + $0x30] sm:$0xff]  }
0x2005   :  { %v4055_v24 = vpop.xlane.xlu0 %4054 }
0x2006   :  { %5657 = vrcp.f32 %v4055_v24  ;;  %v5585_v24 = vld [vmem:[%s6702_s19 + $0x28] sm:$0xff]  }
0x2009   :  { %v4058_v26 = vpop.xlane.xlu1 %4057 }
0x200a   :  { %5659 = vrcp.f32 %v4058_v26  ;;  %v5586_v26 = vld [vmem:[%s6702_s19 + $0x20] sm:$0xff]  }
0x2013   :  { %v5658_v27 = vpop.eup %5657 }
0x2014   :  { %v4061_v28 = vmul.f32 %v5658_v27, %v5654_v20  ;;  %v4828_v27 = vld [vmem:[%s6705_s18 + $0x1] ss:$0 sm:$0xff] }
0x2016   :  { %v4063_v31 = vpack.c.bf16 %v4061_v28, %v4061_v28 }
0x2017   :  { %v5660_v33 = vpop.eup %5659 }
0x2018   :  { %v4062_v34 = vmul.f32 %v5660_v33, %v5656_v12  ;;  %5479 = vmatmul.mubr.msk.bf16.vlgmr.msra.gmra.mxu0 %vm433_vm3, %v4063_v31 }
0x2019   :  { %5490 = vmatprep.mubr.msk.bf16.mxu0 %vm5670_vm0, %v5669_v0  ;;  %5489 = vmatpush3.bf16.msra.mxu0 %v4164_v35 }
0x201a   :  { %v4064_v32 = vpack.c.bf16 %v4062_v34, %v4062_v34  ;;  %5502 = vmatprep.subr.bf16.mxu0 %v5669_v0 }
0x201c   :  { %5485 = vmatmul.mubr.msk.bf16.vlgmr.msra.gmra.mxu1 %vm433_vm3, %v4064_v32 }
0x201d   :  { %5498 = vmatprep.mubr.msk.bf16.mxu1 %vm5670_vm0, %v5669_v0  ;;  %5495 = vmatpush3.bf16.msra.mxu1 %v5581_v4 }
0x201e   :  { %5496 = vmatprep.subr.bf16.mxu1 %v5669_v0 }
0x2021   :  { %5497 = vmatpush3.bf16.msra.mxu1 %v5582_v6  ;;  %v4849_v6 = vld [vmem:[%s6707_s21 + $0x1] ss:$0 sm:$0xff] }
0x2022   :  { %5514 = vmatprep.subr.bf16.mxu1 %v5669_v0 }
0x20d8   :  { %v4105_v63 = vpop.f32.mrf.mxu0 }
0x20da   :  { %v5480_v54 = vpop.f32.mrf.mxu0 }
0x20dc   :  { %v4108_v37 = vpop.f32.mrf.mxu0  ;;  %v4151_v38 = vpop.f32.mrf.mxu1 }
0x20dd   :  { %v4157_v11 = vpack.c.bf16 %v4151_v38, %v4105_v63  ;;  %v4841_v37 = vld [vmem:[%s6706_s20 + $0x1] ss:$0 sm:$0xff] }
0x20de   :  { %v5481_v3 = vpop.f32.mrf.mxu0  ;;  %v5486_v39 = vpop.f32.mrf.mxu1 }
0x20df   :  { %5491 = vmatmul.mubr.msk.bf16.vlgmr.msra.gmra.mxu0 %vm433_vm3, %v4157_v11 }
0x20e0   :  { %v4154_v40 = vpop.f32.mrf.mxu1  ;;  %5510 = vmatprep.mubr.msk.bf16.mxu0 %vm5670_vm0, %v5669_v0  ;;  %5503 = vmatpush3.bf16.msra.mxu0 %v5583_v7 }
0x20e1   :  { %5504 = vmatprep.subr.bf16.mxu0 %v5669_v0 }
0x20e2   :  { %v5487_v46 = vpop.f32.mrf.mxu1 }
0x20e4   :  { %5505 = vmatpush3.bf16.msra.mxu0 %v5584_v23 }
0x20e5   :  { %5506 = vmatprep.subr.bf16.mxu0 %v5669_v0 }
0x20e8   :  { %5507 = vmatpush3.bf16.msra.mxu0 %v5585_v24 }
0x20e9   :  { %5508 = vmatprep.subr.bf16.mxu0 %v5669_v0 }
0x20ec   :  { %5509 = vmatpush3.bf16.msra.mxu0 %v5586_v26 }
0x219f   :  { %v4200_v5 = vpop.f32.mrf.mxu0 }
0x21a0   :  { %v4207_v41 = vadd.f32 %v4200_v5, %v6560_v16 }
0x21a1   :  { %v5492_v29 = vpop.f32.mrf.mxu0 }
0x21a2   :  { %v4209_v45 = vadd.f32 %v4207_v41, %v6276_v60 }
0x21a3   :  { %v4203_v30 = vpop.f32.mrf.mxu0 }
0x21a4   :  { %v4208_v47 = vadd.f32 %v4203_v30, %v6564_v36  ;;  %v4219_v48 = vadd.f32 %v4818_v43, %v4209_v45 }
0x21a5   :  { %v5493_v49 = vpop.f32.mrf.mxu0 }
0x21a6   :  { %v4210_v50 = vadd.f32 %v4208_v47, %v6278_v61  ;;  %v4225_v51 = vsel %vm252_vm2, %v4219_v48, 0.0 }
0x21a7   :  { %4226 = vadd.xlane.f32.xlu0 %v4225_v51 }
0x21a8   :  { %v4220_v53 = vadd.f32 %v4818_v43, %v4210_v50 }
0x21aa   :  { %v4228_v16 = vsel %vm252_vm2, %v4220_v53, 0.0 }
0x21ab   :  { %4229 = vadd.xlane.f32.xlu1 %v4228_v16 }
0x2230   :  { %v4227_v55 = vpop.xlane.xlu0 %4226 }
0x2231   :  { %v4231_v57 = vmul.f32 0.03125, %v4227_v55 }
0x2233   :  { %v4233_v58 = vsub.f32 %v4219_v48, %v4231_v57  ;;  %v5587_v57 = vld [vmem:[%s6709_s23 + $0x8] sm:$0xff]  }
0x2234   :  { %v4230_v59 = vpop.xlane.xlu1 %4229 }
0x2235   :  { %v4232_v62 = vmul.f32 0.03125, %v4230_v59  ;;  %v4235_v60 = vmul.f32 %v4233_v58, %v4233_v58 }
0x2237   :  { %v4234_v1 = vsub.f32 %v4220_v53, %v4232_v62  ;;  %v4237_v36 = vsel %vm252_vm2, %v4235_v60, 0.0 }
0x2238   :  { %4238 = vadd.xlane.f32.xlu0 %v4237_v36 }
0x2239   :  { %v4236_v2 = vmul.f32 %v4234_v1, %v4234_v1 }
0x223b   :  { %v4240_v61 = vsel %vm252_vm2, %v4236_v2, 0.0 }
0x223c   :  { %4241 = vadd.xlane.f32.xlu1 %v4240_v61 }
0x22c1   :  { %v4239_v8 = vpop.xlane.xlu0 %4238 }
0x22c2   :  { %v4243_v9 = vmul.f32 0.03125, %v4239_v8 }
0x22c4   :  { %v4245_v52 = vadd.f32 1e-05, %v4243_v9  ;;  %v4850_v9 = vld [vmem:[%s6708_s22 + $0x1] ss:$0 sm:$0xff] }
0x22c5   :  { %v4242_v56 = vpop.xlane.xlu1 %4241 }
0x22c6   :  { %5661 = vrsqrt.f32 %v4245_v52  ;;  %v4244_v10 = vmul.f32 0.03125, %v4242_v56 }
0x22c8   :  { %v4246_v13 = vadd.f32 1e-05, %v4244_v10 }
0x22ca   :  { %5663 = vrsqrt.f32 %v4246_v13 }
0x22d3   :  { %v5662_v15 = vpop.eup %5661 }
0x22d4   :  { %v4249_v42 = vmul.f32 %v5662_v15, %v4233_v58  ;;  %v5588_v58 = vld [vmem:[%s6709_s23] sm:$0xff]  }
0x22d5   :  { %v4851_v15 = vld [vmem:[%s6710_s24] ss:$0 sm:$0xff] }
0x22d6   :  { %v4257_v25 = vmul.f32 %v4821_v17, %v4249_v42 }
0x22d7   :  { %v5664_v18 = vpop.eup %5663 }
0x22d8   :  { %v4250_v44 = vmul.f32 %v5664_v18, %v4234_v1  ;;  %v4265_v20 = vadd.f32 %v4822_v14, %v4257_v25 }
0x22da   :  { %v4258_v19 = vmul.f32 %v4821_v17, %v4250_v44 }
0x22dc   :  { %v4266_v21 = vadd.f32 %v4822_v14, %v4258_v19 }
0x22de   :  { %v4267_v12 = vpack.c.bf16 %v4266_v21, %v4265_v20 }
0x22e0   :  { %5499 = vmatmul.mubr.msk.bf16.vlgmr.msra.gmra.mxu1 %vm252_vm2, %v4267_v12 }
0x22e1   :  { %5518 = vmatprep.mubr.msk.bf16.mxu1 %vm5670_vm0, %v5669_v0  ;;  %5515 = vmatpush3.bf16.msra.mxu1 %v5587_v57 }
0x22e2   :  { %5516 = vmatprep.subr.bf16.mxu1 %v5669_v0 }
0x22e5   :  { %5517 = vmatpush3.bf16.msra.mxu1 %v5588_v58 }
0x23a0   :  { %v4330_v28 = vpop.f32.mrf.mxu1 }
0x23a1   :  { %v4331_v33 = vadd.f32 %v4828_v27, %v4330_v28 }
0x23a2   :  { %v5500_v31 = vpop.f32.mrf.mxu1 }
0x23a3   :  { %v4337_v35 = vmax.f32 %v4331_v33, 0.0 }
0x23a4   :  { %v4333_v34 = vpop.f32.mrf.mxu1 }
0x23a5   :  { %v4334_v32 = vadd.f32 %v4828_v27, %v4333_v34 }
0x23a6   :  { %v5501_v22 = vpop.f32.mrf.mxu1 }
0x23a7   :  { %v4338_v63 = vmax.f32 %v4334_v32, 0.0 }
0x23a9   :  { %v4339_v54 = vpack.c.bf16 %v4338_v63, %v4337_v35 }
0x23ab   :  { %5511 = vmatmul.mubr.msk.bf16.vlgmr.msra.gmra.mxu0 %vm2254_vm6, %v4339_v54 }
0x246b   :  { %v4418_v38 = vpop.f32.mrf.mxu0 }
0x246c   :  { %v4419_v11 = vadd.f32 %v4841_v37, %v4418_v38 }
0x246d   :  { %v5512_v3 = vpop.f32.mrf.mxu0 }
0x246e   :  { %v4425_v39 = vadd.f32 %v4419_v11, %v4265_v20 }
0x246f   :  { %v4421_v40 = vpop.f32.mrf.mxu0 }
0x2470   :  { %v4422_v46 = vadd.f32 %v4841_v37, %v4421_v40  ;;  %v4431_v5 = vsel %vm252_vm2, %v4425_v39, 0.0 }
0x2471   :  { %4432 = vadd.xlane.f32.xlu0 %v4431_v5  ;;  %v5513_v41 = vpop.f32.mrf.mxu0 }
0x2472   :  { %v4426_v29 = vadd.f32 %v4422_v46, %v4266_v21 }
0x2474   :  { %v4434_v43 = vsel %vm252_vm2, %v4426_v29, 0.0 }
0x2475   :  { %4435 = vadd.xlane.f32.xlu1 %v4434_v43 }
0x24fa   :  { %v4433_v45 = vpop.xlane.xlu0 %4432 }
0x24fb   :  { %v4437_v30 = vmul.f32 0.03125, %v4433_v45 }
0x24fd   :  { %v4439_v47 = vsub.f32 %v4425_v39, %v4437_v30 }
0x24fe   :  { %v4436_v48 = vpop.xlane.xlu1 %4435 }
0x24ff   :  { %v4438_v49 = vmul.f32 0.03125, %v4436_v48  ;;  %v4441_v50 = vmul.f32 %v4439_v47, %v4439_v47 }
0x2501   :  { %v4440_v51 = vsub.f32 %v4426_v29, %v4438_v49  ;;  %v4443_v53 = vsel %vm252_vm2, %v4441_v50, 0.0 }
0x2502   :  { %4444 = vadd.xlane.f32.xlu0 %v4443_v53 }
0x2503   :  { %v4442_v16 = vmul.f32 %v4440_v51, %v4440_v51 }
0x2505   :  { %v4446_v55 = vsel %vm252_vm2, %v4442_v16, 0.0 }
0x2506   :  { %4447 = vadd.xlane.f32.xlu1 %v4446_v55 }
0x258b   :  { %v4445_v59 = vpop.xlane.xlu0 %4444 }
0x258c   :  { %v4449_v62 = vmul.f32 0.03125, %v4445_v59 }
0x258e   :  { %v4451_v60 = vadd.f32 1e-05, %v4449_v62 }
0x258f   :  { %v4448_v1 = vpop.xlane.xlu1 %4447 }
0x2590   :  { %5665 = vrsqrt.f32 %v4451_v60  ;;  %v4450_v36 = vmul.f32 0.03125, %v4448_v1 }
0x2592   :  { %v4452_v2 = vadd.f32 1e-05, %v4450_v36 }
0x2594   :  { %5667 = vrsqrt.f32 %v4452_v2 }
0x259d   :  { %v5666_v61 = vpop.eup %5665 }
0x259e   :  { %v4455_v4 = vmul.f32 %v5666_v61, %v4439_v47 }
0x25a0   :  { %v4463_v7 = vmul.f32 %v4849_v6, %v4455_v4 }
0x25a1   :  { %v5668_v0 = vpop.eup %5667 }
0x25a2   :  { %v4456_v8 = vmul.f32 %v5668_v0, %v4440_v51  ;;  %v4471_v56 = vadd.f32 %v4850_v9, %v4463_v7 }
0x25a4   :  { %v4464_v52 = vmul.f32 %v4849_v6, %v4456_v8 }
0x25a6   :  { %v4472_v10 = vadd.f32 %v4850_v9, %v4464_v52 }
0x25a8   :  { %v4473_v13 = vpack.c.bf16 %v4472_v10, %v4471_v56 }
0x25aa   :  { %5519 = vmatmul.mubr.msk.bf16.vlgmr.msra.gmra.mxu1 %vm252_vm2, %v4473_v13 }
0x266a   :  { %v4534_v42 = vpop.f32.mrf.mxu1 }
0x266b   :  { %v4535_v17 = vadd.f32 %v4851_v15, %v4534_v42 }
0x266c   :  { %v5520_v18 = vpop.f32.mrf.mxu1 }
0x266d   :  { %4541 = vst [vmem:[%s6711_s25] sm:$0x3f] %v4535_v17 }
0x266e   :  { %v4537_v25 = vpop.f32.mrf.mxu1 }
0x266f   :  { %v4538_v44 = vadd.f32 %v4851_v15, %v4537_v25 }
0x2670   :  { %v5521_v14 = vpop.f32.mrf.mxu1 }
0x2671   :  { %4542 = vst [vmem:[%s6711_s25 + $0x8] sm:$0x3f] %v4538_v44 }

</bundles_post_ra>
